<compile_context>
chip_gen: v7x
topology: tpu7x:2x2x1
jax: 0.10.0
libtpu: 0.0.40
codegen_flags: <defaults>
</compile_context>

<pallas_src>
import functools

import jax
import jax.numpy as jnp
from jax.experimental import pallas as pl
from jax.experimental.pallas import tpu as pltpu


def _affinity_kernel(x1_ref, x2_ref,
                     w1a_ref, w1b_ref, b1_ref,
                     w2_ref, b2_ref, w3_ref, b3_ref,
                     w4_ref, b4_ref, w5_ref, b5_ref, w6_ref, b6_ref,
                     out_ref, *, act_dtype, precision):
    def dense(h, w_ref, b_ref):
        # MXU inputs in the weight dtype, f32 accumulation, f32 bias add.
        return (jnp.dot(h.astype(w_ref.dtype), w_ref[...],
                        preferred_element_type=jnp.float32,
                        precision=precision)
                + b_ref[...])

    # fc1 as split-K partial matmuls against the two halves of the fc1
    # weight: same MXU flops as a fused concat, no materialized cross-lane
    # relayout, and works for arbitrary (non-128-aligned) dim1/dim2.
    a1 = (jnp.dot(x1_ref[...], w1a_ref[...],
                  preferred_element_type=jnp.float32, precision=precision)
          + jnp.dot(x2_ref[...], w1b_ref[...],
                    preferred_element_type=jnp.float32, precision=precision)
          + b1_ref[...])

    # Activation math in act_dtype (bf16 on v6e/v7x halves VPU/EUP vreg work;
    # the following matmul consumes bf16 anyway).  Accumulators stay f32.
    h1 = jax.nn.sigmoid(a1.astype(act_dtype))
    h2 = jax.nn.sigmoid(dense(h1, w2_ref, b2_ref).astype(act_dtype))
    h3 = jax.nn.sigmoid(dense(h2, w3_ref, b3_ref).astype(act_dtype))
    h4 = jax.nn.sigmoid(dense(h3, w4_ref, b4_ref).astype(act_dtype))
    h5 = jnp.maximum(dense(h4, w5_ref, b5_ref).astype(act_dtype), 0.0)
    out_ref[...] = dense(h5, w6_ref, b6_ref).astype(out_ref.dtype)


def _default_batch_tile(B):
    """Sublane-aligned batch tile: >=2 grid steps for B>=256 (v7x 2-TC
    sharding via the 'parallel' axis), capped at 2048 rows (amortizes the
    ~0.35 us/step grid overhead; working set stays a few MiB)."""
    rounded = ((B + 7) // 8) * 8
    if rounded < 256:
        return rounded                      # one (possibly padded) tile
    half = ((rounded // 2 + 7) // 8) * 8    # ~B/2 -> at least 2 grid steps
    return max(128, min(half, 2048))


def affinity_merge_forward(x1, x2, params, *, batch_tile=None,
                           mxu_dtype=jnp.bfloat16, act_dtype=None,
                           precision=None):
    """Forward pass. params = [(w_i, b_i)] * 6, weights shaped (in, out).

    mxu_dtype : matmul-input dtype (bf16 = MXU-native on v6e/v7x, halves
                input/weight HBM bytes).  Use jnp.float32 together with
                precision=jax.lax.Precision.HIGHEST for exact checking.
    act_dtype : dtype of sigmoid/relu math; defaults to mxu_dtype.  Pass
                jnp.float32 on v5e (no bf16 VPU/EUP paths there).
    """
    if act_dtype is None:
        act_dtype = mxu_dtype

    B, dim1 = x1.shape
    B2, dim2 = x2.shape
    assert B == B2, "x1/x2 batch mismatch"
    (w1, b1), (w2, b2), (w3, b3), (w4, b4), (w5, b5), (w6, b6) = params
    assert w1.shape[0] == dim1 + dim2
    dim_out = w6.shape[1]

    if batch_tile is None:
        batch_tile = _default_batch_tile(B)
    grid_m = -(-B // batch_tile)            # cdiv
    b_pad = grid_m * batch_tile

    # Pre-cast inputs once at the boundary (inputs are ~97% of HBM bytes) and
    # pad the batch up to a tile multiple; padded rows are sliced off below.
    x1p = x1.astype(mxu_dtype)
    x2p = x2.astype(mxu_dtype)
    if b_pad != B:
        x1p = jnp.pad(x1p, ((0, b_pad - B), (0, 0)))
        x2p = jnp.pad(x2p, ((0, b_pad - B), (0, 0)))

    # fc1 weight split into the x1 / x2 halves (split-K inside the kernel).
    w1a, w1b = w1[:dim1], w1[dim1:]
    weights = [w.astype(mxu_dtype) for w in (w1a, w1b, w2, w3, w4, w5, w6)]
    biases = [b.reshape(1, -1).astype(jnp.float32)
              for b in (b1, b2, b3, b4, b5, b6)]

    ops = [x1p, x2p,
           weights[0], weights[1], biases[0],
           weights[2], biases[1],
           weights[3], biases[2],
           weights[4], biases[3],
           weights[5], biases[4],
           weights[6], biases[5]]

    def batch_spec(feat):
        return pl.BlockSpec((batch_tile, feat), lambda i: (i, 0))

    def const_spec(arr):                    # grid-invariant, full-array block
        return pl.BlockSpec(arr.shape, lambda i: (0, 0))

    in_specs = ([batch_spec(dim1), batch_spec(dim2)]
                + [const_spec(a) for a in ops[2:]])

    # VMEM working set: double-buffered IO tiles + resident weights/biases +
    # f32 intermediates.  Request ~2x that (floor 16 MiB for v5e's small
    # scoped default), never the full physical VMEM.
    itemsize = jnp.dtype(mxu_dtype).itemsize
    out_widths = [w2.shape[0], w3.shape[0], w4.shape[0], w5.shape[0],
                  w6.shape[0], dim_out]
    vmem_need = (2 * 2 * batch_tile * (dim1 + dim2) * itemsize   # x1+x2, 2-buf
                 + 2 * batch_tile * dim_out * 4                  # out, 2-buf
                 + 2 * sum(w.size * itemsize for w in weights)
                 + 2 * sum(b.size * 4 for b in biases)
                 + 2 * batch_tile * sum(out_widths) * 4)         # f32 interm.
    vmem_limit = int(min(max(2 * vmem_need, 16 * 1024 * 1024),
                         64 * 1024 * 1024))

    # Advisory cost estimate so XLA schedules neighbours sensibly.
    layer_widths = [dim1 + dim2] + out_widths
    flops = 2 * b_pad * sum(layer_widths[i] * layer_widths[i + 1]
                            for i in range(6))
    transcendentals = b_pad * sum(layer_widths[1:5])   # 4 sigmoid layers
    bytes_accessed = (sum(int(o.size) * o.dtype.itemsize for o in ops)
                      + b_pad * dim_out * 4)

    kernel = functools.partial(_affinity_kernel, act_dtype=act_dtype,
                               precision=precision)

    out = pl.pallas_call(
        kernel,
        out_shape=jax.ShapeDtypeStruct((b_pad, dim_out), jnp.float32),
        grid_spec=pltpu.PrefetchScalarGridSpec(
            num_scalar_prefetch=0,
            grid=(grid_m,),
            in_specs=in_specs,
            out_specs=batch_spec(dim_out),
        ),
        compiler_params=pltpu.CompilerParams(
            dimension_semantics=("parallel",),
            vmem_limit_bytes=vmem_limit,
        ),
        cost_estimate=pl.CostEstimate(
            flops=flops,
            transcendentals=transcendentals,
            bytes_accessed=bytes_accessed,
        ),
    )(*ops)
    return out[:B] if b_pad != B else out


def init_params(key, dim1, dim2, dim3, dim4):
    """Parameter init mirroring the PyTorch module.

    fc1/fc2 weights: xavier_normal_.  fc3..fc6 weights and all biases:
    PyTorch-default uniform(-1/sqrt(fan_in), 1/sqrt(fan_in)).
    Weights stored transposed: (in_features, out_features).
    """
    dims = [dim1 + dim2, dim3 * 2, dim3 * 4, dim3 * 8,
            dim3 * 4, dim3 * 2, dim4]
    params = []
    keys = jax.random.split(key, 12)
    for li in range(6):
        fan_in, fan_out = dims[li], dims[li + 1]
        wk, bk = keys[2 * li], keys[2 * li + 1]
        if li < 2:   # xavier_normal_
            std = (2.0 / (fan_in + fan_out)) ** 0.5
            w = std * jax.random.normal(wk, (fan_in, fan_out), jnp.float32)
        else:        # PyTorch default Linear weight init
            bound = 1.0 / (fan_in ** 0.5)
            w = jax.random.uniform(wk, (fan_in, fan_out), jnp.float32,
                                   -bound, bound)
        bbound = 1.0 / (fan_in ** 0.5)
        b = jax.random.uniform(bk, (fan_out,), jnp.float32, -bbound, bbound)
        params.append((w, b))
    return params


def reference_forward(x1, x2, params):
    (w1, b1), (w2, b2), (w3, b3), (w4, b4), (w5, b5), (w6, b6) = params
    x = jnp.concatenate([x1, x2], axis=1)
    h1 = jax.nn.sigmoid(x @ w1 + b1)
    h2 = jax.nn.sigmoid(h1 @ w2 + b2)
    h3 = jax.nn.sigmoid(h2 @ w3 + b3)
    h4 = jax.nn.sigmoid(h3 @ w4 + b4)
    h5 = jnp.maximum(h4 @ w5 + b5, 0.0)
    return h5 @ w6 + b6


def _run_case(key, B, dim1, dim2, dim3, dim4, tag):
    kx1, kx2, kp = jax.random.split(key, 3)
    x1 = jax.random.normal(kx1, (B, dim1), jnp.float32)
    x2 = jax.random.normal(kx2, (B, dim2), jnp.float32)
    params = init_params(kp, dim1, dim2, dim3, dim4)
    ref = reference_forward(x1, x2, params)

    # Exact f32 MXU path (HIGHEST precision): tight correctness check.
    out_f32 = jax.block_until_ready(
        affinity_merge_forward(x1, x2, params, mxu_dtype=jnp.float32,
                               precision=jax.lax.Precision.HIGHEST))
    assert out_f32.shape == (B, dim4)
    assert jnp.allclose(out_f32, ref, atol=1e-4, rtol=1e-4), \
        f"{tag}: f32 kernel mismatch vs reference"

    # Default bf16 MXU + bf16 activation path (perf config for v6e/v7x).
    out_bf16 = jax.block_until_ready(affinity_merge_forward(x1, x2, params))
    assert out_bf16.shape == (B, dim4)
    assert jnp.allclose(out_bf16, ref, atol=5e-2, rtol=5e-2), \
        f"{tag}: bf16 kernel mismatch vs reference"


if __name__ == "__main__":
    key = jax.random.PRNGKey(0)
    k1, k2 = jax.random.split(key, 2)

    # Case 1: lane-aligned concat halves, small batch.
    _run_case(k1, B=8, dim1=128, dim2=128, dim3=32, dim4=8, tag="aligned")

    # Case 2: non-128-aligned dims + batch that needs padding (exercises the
    # split-K fc1 path and the padded cdiv grid / output slice).
    _run_case(k2, B=10, dim1=100, dim2=72, dim3=16, dim4=4, tag="unaligned")

    print("KERNEL_OK")
</pallas_src>

<mosaic_0001>
module attributes {stable_mosaic.version = 11 : i64} {
  func.func @_affinity_kernel(%arg0: i32, %arg1: memref<8x128xf32, #tpu.memory_space<vmem>>, %arg2: memref<8x128xf32, #tpu.memory_space<vmem>>, %arg3: memref<128x64xf32, #tpu.memory_space<vmem>>, %arg4: memref<128x64xf32, #tpu.memory_space<vmem>>, %arg5: memref<1x64xf32, #tpu.memory_space<vmem>>, %arg6: memref<64x128xf32, #tpu.memory_space<vmem>>, %arg7: memref<1x128xf32, #tpu.memory_space<vmem>>, %arg8: memref<128x256xf32, #tpu.memory_space<vmem>>, %arg9: memref<1x256xf32, #tpu.memory_space<vmem>>, %arg10: memref<256x128xf32, #tpu.memory_space<vmem>>, %arg11: memref<1x128xf32, #tpu.memory_space<vmem>>, %arg12: memref<128x64xf32, #tpu.memory_space<vmem>>, %arg13: memref<1x64xf32, #tpu.memory_space<vmem>>, %arg14: memref<64x8xf32, #tpu.memory_space<vmem>>, %arg15: memref<1x8xf32, #tpu.memory_space<vmem>>, %arg16: memref<8x8xf32, #tpu.memory_space<vmem>>) attributes {dimension_semantics = [#tpu.dimension_semantics<parallel>], iteration_bounds = array<i64: 1>, scalar_prefetch = 0 : i64, scratch_operands = 0 : i64, tpu.core_type = #tpu.core_type<tc>, window_params = [{transform_indices = @transform_0, window_bounds = array<i64: 8, 128>}, {transform_indices = @transform_1, window_bounds = array<i64: 8, 128>}, {pipeline_mode = #tpu.pipeline_mode<synchronous>, transform_indices = @transform_2, window_bounds = array<i64: 128, 64>}, {pipeline_mode = #tpu.pipeline_mode<synchronous>, transform_indices = @transform_3, window_bounds = array<i64: 128, 64>}, {pipeline_mode = #tpu.pipeline_mode<synchronous>, transform_indices = @transform_4, window_bounds = array<i64: 1, 64>}, {pipeline_mode = #tpu.pipeline_mode<synchronous>, transform_indices = @transform_5, window_bounds = array<i64: 64, 128>}, {pipeline_mode = #tpu.pipeline_mode<synchronous>, transform_indices = @transform_6, window_bounds = array<i64: 1, 128>}, {pipeline_mode = #tpu.pipeline_mode<synchronous>, transform_indices = @transform_7, window_bounds = array<i64: 128, 256>}, {pipeline_mode = #tpu.pipeline_mode<synchronous>, transform_indices = @transform_8, window_bounds = array<i64: 1, 256>}, {pipeline_mode = #tpu.pipeline_mode<synchronous>, transform_indices = @transform_9, window_bounds = array<i64: 256, 128>}, {pipeline_mode = #tpu.pipeline_mode<synchronous>, transform_indices = @transform_10, window_bounds = array<i64: 1, 128>}, {pipeline_mode = #tpu.pipeline_mode<synchronous>, transform_indices = @transform_11, window_bounds = array<i64: 128, 64>}, {pipeline_mode = #tpu.pipeline_mode<synchronous>, transform_indices = @transform_12, window_bounds = array<i64: 1, 64>}, {pipeline_mode = #tpu.pipeline_mode<synchronous>, transform_indices = @transform_13, window_bounds = array<i64: 64, 8>}, {pipeline_mode = #tpu.pipeline_mode<synchronous>, transform_indices = @transform_14, window_bounds = array<i64: 1, 8>}, {transform_indices = @transform_15, window_bounds = array<i64: 8, 8>}]} {
    %c0 = arith.constant 0 : index
    %c0_0 = arith.constant 0 : index
    %0 = vector.load %arg1[%c0, %c0_0] : memref<8x128xf32, #tpu.memory_space<vmem>>, vector<8x128xf32>
    %c0_1 = arith.constant 0 : index
    %c0_2 = arith.constant 0 : index
    %1 = vector.load %arg3[%c0_1, %c0_2] : memref<128x64xf32, #tpu.memory_space<vmem>>, vector<128x64xf32>
    %cst = arith.constant dense<0.000000e+00> : vector<8x64xf32>
    %2 = tpu.matmul %0, %1, %cst {dimension_numbers = #tpu.dot_dimension_numbers<[1], [0], [0], [1], [0, 0, 1, 1], [], []>, precision = #tpu.contract_precision<fp32>} : vector<8x128xf32>, vector<128x64xf32>, vector<8x64xf32> -> vector<8x64xf32>
    %c0_3 = arith.constant 0 : index
    %c0_4 = arith.constant 0 : index
    %3 = vector.load %arg2[%c0_3, %c0_4] : memref<8x128xf32, #tpu.memory_space<vmem>>, vector<8x128xf32>
    %c0_5 = arith.constant 0 : index
    %c0_6 = arith.constant 0 : index
    %4 = vector.load %arg4[%c0_5, %c0_6] : memref<128x64xf32, #tpu.memory_space<vmem>>, vector<128x64xf32>
    %cst_7 = arith.constant dense<0.000000e+00> : vector<8x64xf32>
    %5 = tpu.matmul %3, %4, %cst_7 {dimension_numbers = #tpu.dot_dimension_numbers<[1], [0], [0], [1], [0, 0, 1, 1], [], []>, precision = #tpu.contract_precision<fp32>} : vector<8x128xf32>, vector<128x64xf32>, vector<8x64xf32> -> vector<8x64xf32>
    %6 = arith.addf %2, %5 : vector<8x64xf32>
    %c0_8 = arith.constant 0 : index
    %c0_9 = arith.constant 0 : index
    %7 = vector.load %arg5[%c0_8, %c0_9] : memref<1x64xf32, #tpu.memory_space<vmem>>, vector<1x64xf32>
    %8 = vector.broadcast %7 : vector<1x64xf32> to vector<8x64xf32>
    %9 = arith.addf %6, %8 : vector<8x64xf32>
    %10 = arith.negf %9 : vector<8x64xf32>
    %11 = math.exp %10 : vector<8x64xf32>
    %cst_10 = arith.constant 1.000000e+00 : f32
    %12 = vector.broadcast %cst_10 : f32 to vector<8x64xf32>
    %13 = arith.addf %12, %11 : vector<8x64xf32>
    %14 = arith.divf %12, %13 : vector<8x64xf32>
    %c0_11 = arith.constant 0 : index
    %c0_12 = arith.constant 0 : index
    %15 = vector.load %arg6[%c0_11, %c0_12] : memref<64x128xf32, #tpu.memory_space<vmem>>, vector<64x128xf32>
    %cst_13 = arith.constant dense<0.000000e+00> : vector<8x128xf32>
    %16 = tpu.matmul %14, %15, %cst_13 {dimension_numbers = #tpu.dot_dimension_numbers<[1], [0], [0], [1], [0, 0, 1, 1], [], []>, precision = #tpu.contract_precision<fp32>} : vector<8x64xf32>, vector<64x128xf32>, vector<8x128xf32> -> vector<8x128xf32>
    %c0_14 = arith.constant 0 : index
    %c0_15 = arith.constant 0 : index
    %17 = vector.load %arg7[%c0_14, %c0_15] : memref<1x128xf32, #tpu.memory_space<vmem>>, vector<1x128xf32>
    %18 = vector.broadcast %17 : vector<1x128xf32> to vector<8x128xf32>
    %19 = arith.addf %16, %18 : vector<8x128xf32>
    %20 = arith.negf %19 : vector<8x128xf32>
    %21 = math.exp %20 : vector<8x128xf32>
    %cst_16 = arith.constant 1.000000e+00 : f32
    %22 = vector.broadcast %cst_16 : f32 to vector<8x128xf32>
    %23 = arith.addf %22, %21 : vector<8x128xf32>
    %24 = arith.divf %22, %23 : vector<8x128xf32>
    %c0_17 = arith.constant 0 : index
    %c0_18 = arith.constant 0 : index
    %25 = vector.load %arg8[%c0_17, %c0_18] : memref<128x256xf32, #tpu.memory_space<vmem>>, vector<128x256xf32>
    %cst_19 = arith.constant dense<0.000000e+00> : vector<8x256xf32>
    %26 = tpu.matmul %24, %25, %cst_19 {dimension_numbers = #tpu.dot_dimension_numbers<[1], [0], [0], [1], [0, 0, 1, 1], [], []>, precision = #tpu.contract_precision<fp32>} : vector<8x128xf32>, vector<128x256xf32>, vector<8x256xf32> -> vector<8x256xf32>
    %c0_20 = arith.constant 0 : index
    %c0_21 = arith.constant 0 : index
    %27 = vector.load %arg9[%c0_20, %c0_21] : memref<1x256xf32, #tpu.memory_space<vmem>>, vector<1x256xf32>
    %28 = vector.broadcast %27 : vector<1x256xf32> to vector<8x256xf32>
    %29 = arith.addf %26, %28 : vector<8x256xf32>
    %30 = arith.negf %29 : vector<8x256xf32>
    %31 = math.exp %30 : vector<8x256xf32>
    %cst_22 = arith.constant 1.000000e+00 : f32
    %32 = vector.broadcast %cst_22 : f32 to vector<8x256xf32>
    %33 = arith.addf %32, %31 : vector<8x256xf32>
    %34 = arith.divf %32, %33 : vector<8x256xf32>
    %c0_23 = arith.constant 0 : index
    %c0_24 = arith.constant 0 : index
    %35 = vector.load %arg10[%c0_23, %c0_24] : memref<256x128xf32, #tpu.memory_space<vmem>>, vector<256x128xf32>
    %cst_25 = arith.constant dense<0.000000e+00> : vector<8x128xf32>
    %36 = tpu.matmul %34, %35, %cst_25 {dimension_numbers = #tpu.dot_dimension_numbers<[1], [0], [0], [1], [0, 0, 1, 1], [], []>, precision = #tpu.contract_precision<fp32>} : vector<8x256xf32>, vector<256x128xf32>, vector<8x128xf32> -> vector<8x128xf32>
    %c0_26 = arith.constant 0 : index
    %c0_27 = arith.constant 0 : index
    %37 = vector.load %arg11[%c0_26, %c0_27] : memref<1x128xf32, #tpu.memory_space<vmem>>, vector<1x128xf32>
    %38 = vector.broadcast %37 : vector<1x128xf32> to vector<8x128xf32>
    %39 = arith.addf %36, %38 : vector<8x128xf32>
    %40 = arith.negf %39 : vector<8x128xf32>
    %41 = math.exp %40 : vector<8x128xf32>
    %cst_28 = arith.constant 1.000000e+00 : f32
    %42 = vector.broadcast %cst_28 : f32 to vector<8x128xf32>
    %43 = arith.addf %42, %41 : vector<8x128xf32>
    %44 = arith.divf %42, %43 : vector<8x128xf32>
    %c0_29 = arith.constant 0 : index
    %c0_30 = arith.constant 0 : index
    %45 = vector.load %arg12[%c0_29, %c0_30] : memref<128x64xf32, #tpu.memory_space<vmem>>, vector<128x64xf32>
    %cst_31 = arith.constant dense<0.000000e+00> : vector<8x64xf32>
    %46 = tpu.matmul %44, %45, %cst_31 {dimension_numbers = #tpu.dot_dimension_numbers<[1], [0], [0], [1], [0, 0, 1, 1], [], []>, precision = #tpu.contract_precision<fp32>} : vector<8x128xf32>, vector<128x64xf32>, vector<8x64xf32> -> vector<8x64xf32>
    %c0_32 = arith.constant 0 : index
    %c0_33 = arith.constant 0 : index
    %47 = vector.load %arg13[%c0_32, %c0_33] : memref<1x64xf32, #tpu.memory_space<vmem>>, vector<1x64xf32>
    %48 = vector.broadcast %47 : vector<1x64xf32> to vector<8x64xf32>
    %49 = arith.addf %46, %48 : vector<8x64xf32>
    %cst_34 = arith.constant 0.000000e+00 : f32
    %50 = vector.broadcast %cst_34 : f32 to vector<8x64xf32>
    %51 = arith.maximumf %49, %50 : vector<8x64xf32>
    %c0_35 = arith.constant 0 : index
    %c0_36 = arith.constant 0 : index
    %52 = vector.load %arg14[%c0_35, %c0_36] : memref<64x8xf32, #tpu.memory_space<vmem>>, vector<64x8xf32>
    %cst_37 = arith.constant dense<0.000000e+00> : vector<8x8xf32>
    %53 = tpu.matmul %51, %52, %cst_37 {dimension_numbers = #tpu.dot_dimension_numbers<[1], [0], [0], [1], [0, 0, 1, 1], [], []>, precision = #tpu.contract_precision<fp32>} : vector<8x64xf32>, vector<64x8xf32>, vector<8x8xf32> -> vector<8x8xf32>
    %c0_38 = arith.constant 0 : index
    %c0_39 = arith.constant 0 : index
    %54 = vector.load %arg15[%c0_38, %c0_39] : memref<1x8xf32, #tpu.memory_space<vmem>>, vector<1x8xf32>
    %55 = vector.broadcast %54 : vector<1x8xf32> to vector<8x8xf32>
    %56 = arith.addf %53, %55 : vector<8x8xf32>
    %c0_40 = arith.constant 0 : index
    %c0_41 = arith.constant 0 : index
    %57 = vector.load %arg16[%c0_40, %c0_41] : memref<8x8xf32, #tpu.memory_space<vmem>>, vector<8x8xf32>
    tpu.vector_store %arg16[%c0_40, %c0_41], %56 {strides = array<i32>} : memref<8x8xf32, #tpu.memory_space<vmem>>, vector<8x8xf32>,
    return
  }
  func.func @transform_0(%arg0: i32) -> (i32, i32) {
    %c0_i32 = arith.constant 0 : i32
    %c0_i32_0 = arith.constant 0 : i32
    return %arg0, %c0_i32 : i32, i32
  }
  func.func @transform_1(%arg0: i32) -> (i32, i32) {
    %c0_i32 = arith.constant 0 : i32
    %c0_i32_0 = arith.constant 0 : i32
    return %arg0, %c0_i32 : i32, i32
  }
  func.func @transform_2(%arg0: i32) -> (i32, i32) {
    %c0_i32 = arith.constant 0 : i32
    %c0_i32_0 = arith.constant 0 : i32
    %c0_i32_1 = arith.constant 0 : i32
    return %c0_i32, %c0_i32_0 : i32, i32
  }
  func.func @transform_3(%arg0: i32) -> (i32, i32) {
    %c0_i32 = arith.constant 0 : i32
    %c0_i32_0 = arith.constant 0 : i32
    %c0_i32_1 = arith.constant 0 : i32
    return %c0_i32, %c0_i32_0 : i32, i32
  }
  func.func @transform_4(%arg0: i32) -> (i32, i32) {
    %c0_i32 = arith.constant 0 : i32
    %c0_i32_0 = arith.constant 0 : i32
    %c0_i32_1 = arith.constant 0 : i32
    return %c0_i32, %c0_i32_0 : i32, i32
  }
  func.func @transform_5(%arg0: i32) -> (i32, i32) {
    %c0_i32 = arith.constant 0 : i32
    %c0_i32_0 = arith.constant 0 : i32
    %c0_i32_1 = arith.constant 0 : i32
    return %c0_i32, %c0_i32_0 : i32, i32
  }
  func.func @transform_6(%arg0: i32) -> (i32, i32) {
    %c0_i32 = arith.constant 0 : i32
    %c0_i32_0 = arith.constant 0 : i32
    %c0_i32_1 = arith.constant 0 : i32
    return %c0_i32, %c0_i32_0 : i32, i32
  }
  func.func @transform_7(%arg0: i32) -> (i32, i32) {
    %c0_i32 = arith.constant 0 : i32
    %c0_i32_0 = arith.constant 0 : i32
    %c0_i32_1 = arith.constant 0 : i32
    return %c0_i32, %c0_i32_0 : i32, i32
  }
  func.func @transform_8(%arg0: i32) -> (i32, i32) {
    %c0_i32 = arith.constant 0 : i32
    %c0_i32_0 = arith.constant 0 : i32
    %c0_i32_1 = arith.constant 0 : i32
    return %c0_i32, %c0_i32_0 : i32, i32
  }
  func.func @transform_9(%arg0: i32) -> (i32, i32) {
    %c0_i32 = arith.constant 0 : i32
    %c0_i32_0 = arith.constant 0 : i32
    %c0_i32_1 = arith.constant 0 : i32
    return %c0_i32, %c0_i32_0 : i32, i32
  }
  func.func @transform_10(%arg0: i32) -> (i32, i32) {
    %c0_i32 = arith.constant 0 : i32
    %c0_i32_0 = arith.constant 0 : i32
    %c0_i32_1 = arith.constant 0 : i32
    return %c0_i32, %c0_i32_0 : i32, i32
  }
  func.func @transform_11(%arg0: i32) -> (i32, i32) {
    %c0_i32 = arith.constant 0 : i32
    %c0_i32_0 = arith.constant 0 : i32
    %c0_i32_1 = arith.constant 0 : i32
    return %c0_i32, %c0_i32_0 : i32, i32
  }
  func.func @transform_12(%arg0: i32) -> (i32, i32) {
    %c0_i32 = arith.constant 0 : i32
    %c0_i32_0 = arith.constant 0 : i32
    %c0_i32_1 = arith.constant 0 : i32
    return %c0_i32, %c0_i32_0 : i32, i32
  }
  func.func @transform_13(%arg0: i32) -> (i32, i32) {
    %c0_i32 = arith.constant 0 : i32
    %c0_i32_0 = arith.constant 0 : i32
    %c0_i32_1 = arith.constant 0 : i32
    return %c0_i32, %c0_i32_0 : i32, i32
  }
  func.func @transform_14(%arg0: i32) -> (i32, i32) {
    %c0_i32 = arith.constant 0 : i32
    %c0_i32_0 = arith.constant 0 : i32
    %c0_i32_1 = arith.constant 0 : i32
    return %c0_i32, %c0_i32_0 : i32, i32
  }
  func.func @transform_15(%arg0: i32) -> (i32, i32) {
    %c0_i32 = arith.constant 0 : i32
    %c0_i32_0 = arith.constant 0 : i32
    return %arg0, %c0_i32 : i32, i32
  }
}

</mosaic_0001>

<bundles_post_ra>
// kernel: tpu_custom_call.1
= control target key start
LH: loop header
LB: loop body
LE: loop exit
PB: predicated region body
PF: predicated region fallthrough
CT: control target
= control target key end

     0   :  { %20 = vsyncpa [#allocation3], 0  ;;  %s10196_s0 = inlined_call_operand.vmem [shape: f32[8,128], index: 0, kind: input, shape index: {}]   ;;  %s10197_s1 = inlined_call_operand.hbm [shape: f32[8,128], index: 1, kind: input, shape index: {}]   ;;  %s10198_s2 = inlined_call_operand.vmem [shape: f32[128,64], index: 2, kind: input, shape index: {}]   ;;  %s10199_s3 = inlined_call_operand.vmem [shape: f32[128,64], index: 3, kind: input, shape index: {}]   ;;  %s10200_s4 = inlined_call_operand.vmem [shape: f32[1,64], index: 4, kind: input, shape index: {}]   ;;  %s10201_s5 = inlined_call_operand.hbm [shape: f32[64,128], index: 5, kind: input, shape index: {}]   ;;  %s10202_s6 = inlined_call_operand.vmem [shape: f32[1,128], index: 6, kind: input, shape index: {}]   ;;  %s10203_s7 = inlined_call_operand.vmem [shape: f32[128,256], index: 7, kind: input, shape index: {}]   ;;  %s10204_s8 = inlined_call_operand.vmem [shape: f32[1,256], index: 8, kind: input, shape index: {}]   ;;  %s10205_s9 = inlined_call_operand.vmem [shape: f32[256,128], index: 9, kind: input, shape index: {}]   ;;  %s10206_s10 = inlined_call_operand.vmem [shape: f32[1,128], index: 10, kind: input, shape index: {}]   ;;  %s10207_s11 = inlined_call_operand.vmem [shape: f32[128,64], index: 11, kind: input, shape index: {}]   ;;  %s10208_s12 = inlined_call_operand.vmem [shape: f32[1,64], index: 12, kind: input, shape index: {}]   ;;  %s10209_s13 = inlined_call_operand.vmem [shape: f32[64,8], index: 13, kind: input, shape index: {}]   ;;  %s10210_s14 = inlined_call_operand.vmem [shape: f32[1,8], index: 14, kind: input, shape index: {}]   ;;  %s10211_s15 = inlined_call_operand.hbm [shape: f32[8,8], index: 15, kind: output, shape index: {}]  }
   0x1   :  { %21 = vsyncpa [#allocation6], 0 }
   0x2   :  { %22 = vsyncpa [#allocation4], 0  ;;  %s7622_s18 = smov [#allocation2]   ;;  %s7623_s20 = smov [#allocation5]  }
   0x3   :  { %s31_s19 = sshll.u32 %s7622_s18, 4  ;;  %s46_s21 = sshll.u32 %s7623_s20, 4  ;;  %s32_s19 = int_to_ptr.vmem [resolvable:$true] %s31_s19  ;;  %s7710_s21 = int_to_ptr.vmem [resolvable:$true] %s46_s21 }
   0x4   :  { %s7550_s24 = scalar_lea.hbm %s10197_s1, 128 }
   0x5   :  { %p7551_p0 = scmp.ne.s32.totalorder %s10197_s1, %s7550_s24  ;;  %p7554_p1 = scmp.lt.u32.totalorder %s7550_s24, %s10197_s1 }
   0x7   :  { %p7556_p2 = pnand %p7554_p1, %p7551_p0 }
   0x9   :  { %7559 = shalt.err (!%p7556_p2)
}
   0xa   :  { %s7560_s29 = scalar_lea.vmem %s32_s19, 128  ;;  %p7565_p4 = scmp.lt.s32.totalorder %s32_s19, %s32_s19 }
   0xb   :  { %p7561_p3 = scmp.ne.s32.totalorder %s32_s19, %s7560_s29  ;;  %p7566_p5 = scmp.lt.s32.totalorder %s7560_s29, %s7560_s29 }
   0xd   :  { %p7567_p6 = por %p7566_p5, %p7565_p4 }
   0xf   :  { %p7568_p7 = pnand %p7567_p6, %p7561_p3 }
  0x11   :  { %7571 = shalt.err (!%p7568_p7)
}
  0x12   :  { %34 = dma.hbm_to_vmem [thread:$0]  %s10197_s1, 128, %s32_s19, [#allocation3]  }
  0x13   :  { %s7572_s20 = scalar_lea.hbm %s10201_s5, 1024 }
  0x14   :  { %p7573_p8 = scmp.ne.s32.totalorder %s10201_s5, %s7572_s20  ;;  %p7576_p9 = scmp.lt.u32.totalorder %s7572_s20, %s10201_s5 }
  0x16   :  { %p7578_p10 = pnand %p7576_p9, %p7573_p8 }
  0x18   :  { %7581 = shalt.err (!%p7578_p10)
}
  0x19   :  { %s7582_s26 = scalar_lea.vmem %s7710_s21, 1024  ;;  %p7587_p12 = scmp.lt.s32.totalorder %s7710_s21, %s7710_s21 }
  0x1a   :  { %p7583_p11 = scmp.ne.s32.totalorder %s7710_s21, %s7582_s26  ;;  %p7588_p13 = scmp.lt.s32.totalorder %s7582_s26, %s7582_s26 }
  0x1c   :  { %p7589_p0 = por %p7588_p13, %p7587_p12 }
  0x1e   :  { %p7590_p1 = pnand %p7589_p0, %p7583_p11 }
  0x20   :  { %7593 = shalt.err (!%p7590_p1)
}
  0x21   :  { %s7624_s1 = smov 128   ;;  %s7625_s19 = smov 8  }
  0x22   :  { %52 = dma.hbm_to_vmem [thread:$0]  %s10201_s5, 1024, %s7710_s21, [#allocation6], %s7624_s1, %s7624_s1, %s7625_s19  }
  0x23   :  { %7616 = dma.done.wait [#allocation3], 128  }
  0x24   :  { %7617 = vsyncadd [#allocation3], 4294967168 }
  0x25   :  { %7618 = dma.done.wait [#allocation6], 1024  }
  0x26   :  { %7619 = vsyncadd [#allocation6], 4294966272  ;;  %v10216_v0 = vmov 0.0|0.0   ;;  %vm7627_vm0 = vmmov 0   ;;  %v10212_v1 = vmov 0.0   ;;  %v95_v2 = vld [vmem:[%s10199_s3] sm:$0xff] }
  0x27   :  { %6517 = vmatprep.subr.bf16.mxu0 %v10216_v0  ;;  %5691 = vmatprep.mubr.msk.f32.mxu0 %vm7627_vm0, %v10212_v1  ;;  %v96_v3 = vld [vmem:[%s10199_s3 + $0x8] sm:$0xff]  ;;  %v97_v4 = vld [vmem:[%s10199_s3 + $0x10] sm:$0xff]  ;;  %v112_v5 = vand.u32 4294901760, %v95_v2  ;;  %v98_v7 = vld [vmem:[%s10199_s3 + $0x18] sm:$0xff]  ;;  %vm1422_vm1 = vcmask 523264   ;;  %vm5007_vm2 = vcmask 64512  }
  0x28   :  { %6589 = vmatprep.subr.bf16.mxu1 %v10216_v0  ;;  %5796 = vmatprep.mubr.msk.f32.mxu1 %vm7627_vm0, %v10212_v1  ;;  %v115_v6 = vand.u32 4294901760, %v96_v3  ;;  %v118_v8 = vand.u32 4294901760, %v97_v4  ;;  %v121_v9 = vand.u32 4294901760, %v98_v7  ;;  %v99_v10 = vld [vmem:[%s10199_s3 + $0x20] sm:$0xff]  ;;  %v100_v11 = vld [vmem:[%s10199_s3 + $0x28] sm:$0xff]  ;;  %v101_v16 = vld [vmem:[%s10199_s3 + $0x30] sm:$0xff] }
  0x29   :  { %v124_v14 = vand.u32 4294901760, %v99_v10  ;;  %v127_v15 = vand.u32 4294901760, %v100_v11  ;;  %v102_v17 = vld [vmem:[%s10199_s3 + $0x38] sm:$0xff]  ;;  %v130_v19 = vand.u32 4294901760, %v101_v16  ;;  %v103_v21 = vld [vmem:[%s10199_s3 + $0x40] sm:$0xff]  ;;  %v104_v22 = vld [vmem:[%s10199_s3 + $0x48] sm:$0xff]  ;;  %v7791_v24 = vsub.f32 %v95_v2, %v112_v5 }
  0x2a   :  { %v7765_v12 = vpack.c.bf16 %v115_v6, %v112_v5  ;;  %v7768_v13 = vpack.c.bf16 %v121_v9, %v118_v8  ;;  %v133_v20 = vand.u32 4294901760, %v102_v17  ;;  %v94_v23 = vld [vmem:[#allocation2] sm:$0xff]  ;;  %v136_v26 = vand.u32 4294901760, %v103_v21  ;;  %v105_v29 = vld [vmem:[%s10199_s3 + $0x50] sm:$0xff]  ;;  %v106_v30 = vld [vmem:[%s10199_s3 + $0x58] sm:$0xff] }
  0x2b   :  { %v7780_v18 = vpack.c.bf16 %v127_v15, %v124_v14  ;;  %v139_v27 = vand.u32 4294901760, %v104_v22  ;;  %v7797_v28 = vsub.f32 %v96_v3, %v115_v6  ;;  %v7806_v31 = vand.u32 4294901760, %v94_v23  ;;  %v107_v34 = vld [vmem:[%s10199_s3 + $0x60] sm:$0xff]  ;;  %v108_v35 = vld [vmem:[%s10199_s3 + $0x68] sm:$0xff]  ;;  %v109_v39 = vld [vmem:[%s10199_s3 + $0x70] sm:$0xff] }
  0x2c   :  { %6519 = vmatpush3.bf16.msra.mxu0 %v7765_v12  ;;  %6591 = vmatpush3.bf16.msra.mxu1 %v7765_v12  ;;  %v7794_v25 = vpack.c.bf16 %v133_v20, %v130_v19  ;;  %v7809_v32 = vsub.f32 %v97_v4, %v118_v8  ;;  %v7811_v33 = vsub.f32 %v98_v7, %v121_v9  ;;  %v142_v37 = vand.u32 4294901760, %v105_v29  ;;  %v110_v40 = vld [vmem:[%s10199_s3 + $0x78] sm:$0xff] }
  0x2d   :  { %6520 = vmatprep.subr.bf16.mxu0 %v10216_v0  ;;  %6592 = vmatprep.subr.bf16.mxu1 %v10216_v0  ;;  %v7820_v36 = vpack.c.bf16 %v139_v27, %v136_v26  ;;  %v145_v38 = vand.u32 4294901760, %v106_v30  ;;  %v205_v41 = vand.u32 4294901760, %v7791_v24  ;;  %v7830_v42 = vsub.f32 %v99_v10, %v124_v14 }
  0x2e   :  { %v7832_v43 = vsub.f32 %v100_v11, %v127_v15  ;;  %v7836_v44 = vsub.f32 %v94_v23, %v7806_v31  ;;  %v212_v45 = vand.u32 4294901760, %v7797_v28  ;;  %v7840_v46 = vsub.f32 %v101_v16, %v130_v19 }
  0x2f   :  { %v7842_v47 = vsub.f32 %v102_v17, %v133_v20  ;;  %v148_v48 = vand.u32 4294901760, %v107_v34  ;;  %v151_v49 = vand.u32 4294901760, %v108_v35  ;;  %v7844_v50 = vsub.f32 %v103_v21, %v136_v26 }
  0x30   :  { %6522 = vmatpush3.bf16.msra.mxu0 %v7768_v13  ;;  %6594 = vmatpush3.bf16.msra.mxu1 %v7768_v13  ;;  %v154_v51 = vand.u32 4294901760, %v109_v39  ;;  %v157_v52 = vand.u32 4294901760, %v110_v40  ;;  %v219_v53 = vand.u32 4294901760, %v7809_v32  ;;  %v7848_v54 = vsub.f32 %v104_v22, %v139_v27 }
  0x31   :  { %6523 = vmatprep.subr.bf16.mxu0 %v10216_v0  ;;  %6595 = vmatprep.subr.bf16.mxu1 %v10216_v0  ;;  %v7850_v55 = vpack.c.bf16 %v145_v38, %v142_v37  ;;  %v206_v56 = vsub.f32 %v7791_v24, %v205_v41  ;;  %v7855_v57 = vsub.f32 %v105_v29, %v142_v37  ;;  %v194_v58 = vand.u32 4294901760, %v7836_v44 }
  0x32   :  { %v213_v59 = vsub.f32 %v7797_v28, %v212_v45  ;;  %v226_v60 = vand.u32 4294901760, %v7811_v33  ;;  %v7861_v61 = vsub.f32 %v106_v30, %v145_v38  ;;  %v7863_v62 = vpack.c.bf16 %v151_v49, %v148_v48 }
  0x33   :  { %v7865_v63 = vsub.f32 %v107_v34, %v148_v48  ;;  %v7867_v2 = vsub.f32 %v108_v35, %v151_v49  ;;  %v7869_v3 = vpack.c.bf16 %v157_v52, %v154_v51  ;;  %v7871_v4 = vsub.f32 %v109_v39, %v154_v51 }
  0x34   :  { %6525 = vmatpush3.bf16.msra.mxu0 %v7780_v18  ;;  %6597 = vmatpush3.bf16.msra.mxu1 %v7780_v18  ;;  %v7873_v5 = vsub.f32 %v110_v40, %v157_v52  ;;  %v220_v6 = vsub.f32 %v7809_v32, %v219_v53  ;;  %v207_v7 = vand.u32 4294901760, %v206_v56  ;;  %v233_v8 = vand.u32 4294901760, %v7830_v42 }
  0x35   :  { %6526 = vmatprep.subr.bf16.mxu0 %v10216_v0  ;;  %6598 = vmatprep.subr.bf16.mxu1 %v10216_v0  ;;  %v240_v9 = vand.u32 4294901760, %v7832_v43  ;;  %v247_v10 = vand.u32 4294901760, %v7840_v46  ;;  %v195_v11 = vsub.f32 %v7836_v44, %v194_v58  ;;  %v214_v14 = vand.u32 4294901760, %v213_v59 }
  0x36   :  { %v227_v15 = vsub.f32 %v7811_v33, %v226_v60  ;;  %v254_v16 = vand.u32 4294901760, %v7842_v47  ;;  %v261_v17 = vand.u32 4294901760, %v7844_v50  ;;  %v268_v19 = vand.u32 4294901760, %v7848_v54 }
  0x37   :  { %v275_v20 = vand.u32 4294901760, %v7855_v57  ;;  %v282_v21 = vand.u32 4294901760, %v7861_v61  ;;  %v289_v22 = vand.u32 4294901760, %v7865_v63  ;;  %v296_v23 = vand.u32 4294901760, %v7867_v2 }
  0x38   :  { %6528 = vmatpush3.bf16.msra.mxu0 %v7794_v25  ;;  %6600 = vmatpush3.bf16.msra.mxu1 %v7794_v25  ;;  %v7892_v26 = vpack.c.bf16 %v212_v45, %v205_v41  ;;  %v7894_v27 = vpack.c.bf16 %v226_v60, %v219_v53  ;;  %v303_v29 = vand.u32 4294901760, %v7871_v4  ;;  %v310_v30 = vand.u32 4294901760, %v7873_v5 }
  0x39   :  { %6529 = vmatprep.subr.bf16.mxu0 %v10216_v0  ;;  %6601 = vmatprep.subr.bf16.mxu1 %v10216_v0  ;;  %v7900_v34 = vpack.c.bf16 %v240_v9, %v233_v8  ;;  %v7902_v35 = vpack.c.bf16 %v254_v16, %v247_v10  ;;  %v7906_v37 = vpack.c.bf16 %v268_v19, %v261_v17  ;;  %v196_v41 = vand.u32 4294901760, %v195_v11 }
  0x3a   :  { %v7908_v38 = vpack.c.bf16 %v282_v21, %v275_v20  ;;  %v7912_v39 = vpack.c.bf16 %v296_v23, %v289_v22  ;;  %v7918_v40 = vpack.c.bf16 %v310_v30, %v303_v29  ;;  %v221_v45 = vand.u32 4294901760, %v220_v6 }
  0x3b   :  { %10394 = vst [vmem:[#allocation11_spill] sm:$0xff] %v7902_v35  ;;  %10395 = vst [vmem:[#allocation12_spill] sm:$0xff] %v7906_v37  ;;  %v6542_v48 = vpack.c.bf16 %v214_v14, %v207_v7  ;;  %v228_v49 = vand.u32 4294901760, %v227_v15  ;;  %v234_v51 = vsub.f32 %v7830_v42, %v233_v8  ;;  %v241_v52 = vsub.f32 %v7832_v43, %v240_v9 }
  0x3c   :  { %6531 = vmatpush3.bf16.msra.mxu0 %v7820_v36  ;;  %6603 = vmatpush3.bf16.msra.mxu1 %v7820_v36  ;;  %10396 = vst [vmem:[#allocation13_spill] sm:$0xff] %v7908_v38  ;;  %10397 = vst [vmem:[#allocation14_spill] sm:$0xff] %v7912_v39  ;;  %v248_v53 = vsub.f32 %v7840_v46, %v247_v10  ;;  %v255_v56 = vsub.f32 %v7842_v47, %v254_v16  ;;  %v7952_v16 = vld [vmem:[%s10198_s2 + $0x8] sm:$0xff] }
  0x3d   :  { %6532 = vmatprep.subr.bf16.mxu0 %v10216_v0  ;;  %6604 = vmatprep.subr.bf16.mxu1 %v10216_v0  ;;  %10398 = vst [vmem:[#allocation15_spill] sm:$0xff] %v7918_v40  ;;  %v6545_v59 = vpack.c.bf16 %v228_v49, %v221_v45  ;;  %v235_v60 = vand.u32 4294901760, %v234_v51  ;;  %v242_v6 = vand.u32 4294901760, %v241_v52  ;;  %v269_v9 = vsub.f32 %v7848_v54, %v268_v19  ;;  %v7968_v19 = vld [vmem:[%s10198_s2 + $0x20] sm:$0xff]  ;;  %v7973_v45 = vld [vmem:[%s10198_s2 + $0x28] sm:$0xff]  ;;  %v7983_v49 = vld [vmem:[%s10198_s2 + $0x38] sm:$0xff] }
  0x3e   :  { %v249_v7 = vand.u32 4294901760, %v248_v53  ;;  %v256_v8 = vand.u32 4294901760, %v255_v56  ;;  %v276_v10 = vsub.f32 %v7855_v57, %v275_v20  ;;  %v283_v14 = vsub.f32 %v7861_v61, %v282_v21  ;;  %10400 = vst [vmem:[#allocation17_spill] sm:$0xff] %v7983_v49 }
  0x3f   :  { %v6548_v11 = vpack.c.bf16 %v242_v6, %v235_v60  ;;  %v7940_v15 = vsub.f32 %v7865_v63, %v289_v22  ;;  %v270_v22 = vand.u32 4294901760, %v269_v9  ;;  %v7989_v53 = vsub.f32 %v7867_v2, %v296_v23  ;;  %v8000_v60 = vld [vmem:[%s10198_s2 + $0x48] sm:$0xff]  ;;  %v8020_v9 = vld [vmem:[%s10198_s2 + $0x58] sm:$0xff] }
  0x40   :  { %6534 = vmatpush3.bf16.msra.mxu0 %v7850_v55  ;;  %6606 = vmatpush3.bf16.msra.mxu1 %v7850_v55  ;;  %v6551_v20 = vpack.c.bf16 %v256_v8, %v249_v7  ;;  %v284_v51 = vand.u32 4294901760, %v283_v14  ;;  %10402 = vst [vmem:[#allocation19_spill] sm:$0xff] %v8000_v60  ;;  %v8006_v6 = vsub.f32 %v7871_v4, %v303_v29  ;;  %v10215_v23 = vand.u32 4294901760, %v7952_v16 }
  0x41   :  { %6535 = vmatprep.subr.bf16.mxu0 %v10216_v0  ;;  %6607 = vmatprep.subr.bf16.mxu1 %v10216_v0  ;;  %10404 = vst [vmem:[#allocation21_spill] sm:$0xff] %v8020_v9  ;;  %v10218_v29 = vand.u32 4294901760, %v7973_v45  ;;  %v10416_v38 = vand.u32 4294901760, %v8020_v9  ;;  %v10417_v40 = vmov 0.0|0.0  }
  0x44   :  { %6537 = vmatpush3.bf16.msra.mxu0 %v7863_v62  ;;  %6609 = vmatpush3.bf16.msra.mxu1 %v7863_v62 }
  0x45   :  { %6538 = vmatprep.subr.bf16.mxu0 %v10216_v0  ;;  %6610 = vmatprep.subr.bf16.mxu1 %v10216_v0 }
  0x48   :  { %6540 = vmatpush3.bf16.msra.mxu0 %v7869_v3  ;;  %6612 = vmatpush3.bf16.msra.mxu1 %v7869_v3 }
  0x49   :  { %6541 = vmatprep.subr.bf16.mxu0 %v10216_v0  ;;  %6637 = vmatprep.subr.bf16.mxu1 %v10216_v0 }
  0x4b   :  { %5692 = vmatmul.mubr.f32.vlgmr.msra.gmra.mrb[0].mxu0 %v196_v41  ;;  %5797 = vmatmul.mubr.f32.vlgmr.msra.gmra.mrb[0].mxu1 %v194_v58  ;;  %v262_v58 = vsub.f32 %v7844_v50, %v261_v17  ;;  %v7958_v17 = vld [vmem:[%s10198_s2 + $0x10] sm:$0xff]  ;;  %v277_v41 = vand.u32 4294901760, %v276_v10 }
  0x4c   :  { %6543 = vmatpush3.bf16.msra.mxu0 %v6542_v48  ;;  %5726 = vmatprep.mubr.msk.f32.mxu0 %vm7627_vm0, %v10212_v1  ;;  %v7978_v48 = vld [vmem:[%s10198_s2 + $0x30] sm:$0xff] }
  0x4d   :  { %6544 = vmatprep.subr.bf16.mxu0 %v10216_v0  ;;  %6639 = vmatpush3.bf16.msra.mxu1 %v7765_v12  ;;  %v7947_v12 = vld [vmem:[%s10198_s2] sm:$0xff]  ;;  %v263_v21 = vand.u32 4294901760, %v262_v58  ;;  %10399 = vst [vmem:[#allocation16_spill] sm:$0xff] %v7978_v48  ;;  %v8015_v58 = vld [vmem:[%s10198_s2 + $0x50] sm:$0xff]  ;;  %v6557_v7 = vpack.c.bf16 %v284_v51, %v277_v41  ;;  %v10407_v41 = vand.u32 4294901760, %v7958_v17 }
  0x4e   :  { %6640 = vmatprep.subr.bf16.mxu1 %v10216_v0  ;;  %5866 = vmatprep.mubr.msk.f32.mxu1 %vm7627_vm0, %v10212_v1  ;;  %v10214_v56 = vand.u32 4294901760, %v7947_v12  ;;  %10403 = vst [vmem:[#allocation20_spill] sm:$0xff] %v8015_v58  ;;  %v311_v1 = vsub.f32 %v7873_v5, %v310_v30  ;;  %v8047_v30 = vld [vmem:[%s10198_s2 + $0x68] sm:$0xff]  ;;  %v10415_v39 = vand.u32 4294901760, %v8015_v58 }
  0x4f   :  { %v6554_v14 = vpack.c.bf16 %v270_v22, %v263_v21  ;;  %v8042_v21 = vld [vmem:[%s10198_s2 + $0x60] sm:$0xff]  ;;  %v8055_v22 = vsub.f32 %v7952_v16, %v10215_v23  ;;  %v8060_v51 = vsub.f32 %v7958_v17, %v10407_v41  ;;  %v8076_v23 = vsub.f32 %v7973_v45, %v10218_v29 }
  0x50   :  { %6546 = vmatpush3.bf16.msra.mxu0 %v6545_v59  ;;  %v7995_v59 = vld [vmem:[%s10198_s2 + $0x40] sm:$0xff]  ;;  %v10412_v41 = vand.u32 4294901760, %v7978_v48  ;;  %v312_v35 = vand.u32 4294901760, %v311_v1 }
  0x51   :  { %6547 = vmatprep.subr.bf16.mxu0 %v10216_v0  ;;  %6642 = vmatpush3.bf16.msra.mxu1 %v7768_v13  ;;  %v7963_v13 = vld [vmem:[%s10198_s2 + $0x18] sm:$0xff]  ;;  %10401 = vst [vmem:[#allocation18_spill] sm:$0xff] %v7995_v59  ;;  %v10219_v52 = vand.u32 4294901760, %v7995_v59  ;;  %10406 = vst [vmem:[#allocation23_spill] sm:$0xff] %v8055_v22 }
  0x52   :  { %6643 = vmatprep.subr.bf16.mxu1 %v10216_v0  ;;  %10408 = vst [vmem:[#allocation24_spill] sm:$0xff] %v8060_v51  ;;  %v8081_v10 = vsub.f32 %v7978_v48, %v10412_v41  ;;  %v8118_v41 = vld [vmem:[%s10198_s2 + $0x78] sm:$0xff] }
  0x54   :  { %6549 = vmatpush3.bf16.msra.mxu0 %v6548_v11 }
  0x55   :  { %6550 = vmatprep.subr.bf16.mxu0 %v10216_v0  ;;  %6645 = vmatpush3.bf16.msra.mxu1 %v7780_v18  ;;  %v8035_v18 = vsub.f32 %v7947_v12, %v10214_v56  ;;  %v10409_v56 = vand.u32 4294901760, %v7963_v13 }
  0x56   :  { %6646 = vmatprep.subr.bf16.mxu1 %v10216_v0 }
  0x57   :  { %10405 = vst [vmem:[#allocation22_spill] sm:$0xff] %v8035_v18  ;;  %v8065_v11 = vsub.f32 %v7963_v13, %v10409_v56  ;;  %v10413_v56 = vand.u32 4294901760, %v7983_v49 }
  0x58   :  { %6552 = vmatpush3.bf16.msra.mxu0 %v6551_v20  ;;  %v298_v20 = vand.u32 4294901760, %v7989_v53  ;;  %v10411_v53 = vand.u32 4294901760, %v7968_v19 }
  0x59   :  { %6553 = vmatprep.subr.bf16.mxu0 %v10216_v0  ;;  %6648 = vmatpush3.bf16.msra.mxu1 %v7794_v25  ;;  %10410 = vst [vmem:[#allocation25_spill] sm:$0xff] %v8065_v11  ;;  %v8086_v8 = vsub.f32 %v7983_v49, %v10413_v56  ;;  %v8103_v56 = vsub.f32 %v8015_v58, %v10415_v39  ;;  %v853_v58 = vand.u32 4294901760, %v8055_v22  ;;  %v305_v39 = vand.u32 4294901760, %v8006_v6 }
  0x5a   :  { %6649 = vmatprep.subr.bf16.mxu1 %v10216_v0  ;;  %v8071_v25 = vsub.f32 %v7968_v19, %v10411_v53  ;;  %v8091_v53 = vsub.f32 %v7995_v59, %v10219_v52  ;;  %v10414_v0 = vand.u32 4294901760, %v8000_v60  ;;  %v8108_v52 = vsub.f32 %v8020_v9, %v10416_v38 }
  0x5b   :  { %v846_v38 = vand.u32 4294901760, %v8035_v18  ;;  %v10419_v9 = vand.u32 4294901760, %v8047_v30 }
  0x5c   :  { %v8096_v29 = vsub.f32 %v8000_v60, %v10414_v0  ;;  %6555 = vmatpush3.bf16.msra.mxu0 %v6554_v14  ;;  %v8113_v0 = vld [vmem:[%s10198_s2 + $0x70] sm:$0xff]  ;;  %v10228_v60 = vand.u32 4294901760, %v8118_v41  ;;  %v10420_v14 = vand.u32 4294901760, %v7940_v15  ;;  %v854_v15 = vsub.f32 %v8055_v22, %v853_v58 }
  0x5d   :  { %6556 = vmatprep.subr.bf16.mxu0 %v10417_v40  ;;  %6651 = vmatpush3.bf16.msra.mxu1 %v7820_v36  ;;  %v10418_v36 = vand.u32 4294901760, %v8042_v21  ;;  %v8145_v37 = vsub.f32 %v8047_v30, %v10419_v9  ;;  %v867_v9 = vand.u32 4294901760, %v8065_v11  ;;  %v10421_v6 = vand.u32 4294901760, %v8113_v0 }
  0x5e   :  { %6652 = vmatprep.subr.bf16.mxu1 %v10417_v40  ;;  %v6560_v48 = vpack.c.bf16 %v298_v20, %v10420_v14  ;;  %v6563_v20 = vpack.c.bf16 %v312_v35, %v305_v39  ;;  %v874_v14 = vand.u32 4294901760, %v8071_v25  ;;  %v6566_v35 = vpack.c.bf16 %v7797_v28, %v7791_v24 }
  0x5f   :  { %v8140_v59 = vsub.f32 %v8042_v21, %v10418_v36  ;;  %v860_v36 = vand.u32 4294901760, %v8060_v51  ;;  %v8164_v1 = vsub.f32 %v8113_v0, %v10421_v6  ;;  %v881_v6 = vand.u32 4294901760, %v8076_v23 }
  0x60   :  { %6558 = vmatpush3.bf16.msra.mxu0 %v6557_v7  ;;  %v847_v7 = vsub.f32 %v8035_v18, %v846_v38  ;;  %v868_v18 = vsub.f32 %v8065_v11, %v867_v9  ;;  %v6569_v24 = vpack.c.bf16 %v7811_v33, %v7809_v32  ;;  %v10423_v28 = vmov 0.0  }
  0x61   :  { %6559 = vmatprep.subr.bf16.mxu0 %v10417_v40  ;;  %6654 = vmatpush3.bf16.msra.mxu1 %v7850_v55  ;;  %v8169_v55 = vsub.f32 %v8118_v41, %v10228_v60  ;;  %v861_v49 = vsub.f32 %v8060_v51, %v860_v36  ;;  %v875_v51 = vsub.f32 %v8071_v25, %v874_v14 }
  0x62   :  { %6655 = vmatprep.subr.bf16.mxu1 %v10417_v40  ;;  %v848_v60 = vand.u32 4294901760, %v847_v7  ;;  %v869_v39 = vand.u32 4294901760, %v868_v18  ;;  %v882_v11 = vsub.f32 %v8076_v23, %v881_v6  ;;  %v888_v7 = vand.u32 4294901760, %v8081_v10 }
  0x63   :  { %v6572_v33 = vpack.c.bf16 %v7832_v43, %v7830_v42  ;;  %v6575_v42 = vpack.c.bf16 %v7842_v47, %v7840_v46  ;;  %v6578_v46 = vpack.c.bf16 %v7848_v54, %v7844_v50  ;;  %v6581_v50 = vpack.c.bf16 %v7861_v61, %v7855_v57 }
  0x64   :  { %6561 = vmatpush3.bf16.msra.mxu0 %v6560_v48  ;;  %v855_v48 = vand.u32 4294901760, %v854_v15  ;;  %v895_v15 = vand.u32 4294901760, %v8086_v8 }
  0x65   :  { %6562 = vmatprep.subr.bf16.mxu0 %v10417_v40  ;;  %6657 = vmatpush3.bf16.msra.mxu1 %v7863_v62  ;;  %v862_v62 = vand.u32 4294901760, %v861_v49  ;;  %v876_v49 = vand.u32 4294901760, %v875_v51 }
  0x66   :  { %6658 = vmatprep.subr.bf16.mxu1 %v10417_v40  ;;  %v6686_v22 = vpack.c.bf16 %v855_v48, %v848_v60  ;;  %v909_v60 = vand.u32 4294901760, %v8096_v29  ;;  %v889_v48 = vsub.f32 %v8081_v10, %v888_v7  ;;  %v896_v32 = vsub.f32 %v8086_v8, %v895_v15 }
  0x67   :  { %v6689_v18 = vpack.c.bf16 %v869_v39, %v862_v62 }
  0x68   :  { %6564 = vmatpush3.bf16.msra.mxu0 %v6563_v20  ;;  %v8189_v20 = vpack.c.bf16 %v853_v58, %v846_v38  ;;  %v8200_v58 = vpack.c.bf16 %v867_v9, %v860_v36  ;;  %v883_v38 = vand.u32 4294901760, %v882_v11  ;;  %v916_v11 = vand.u32 4294901760, %v8103_v56 }
  0x69   :  { %6565 = vmatprep.subr.bf16.mxu0 %v10417_v40  ;;  %6660 = vmatpush3.bf16.msra.mxu1 %v7869_v3  ;;  %v902_v3 = vand.u32 4294901760, %v8091_v53  ;;  %v923_v36 = vand.u32 4294901760, %v8108_v52  ;;  %v8214_v9 = vpack.c.bf16 %v881_v6, %v874_v14  ;;  %v890_v62 = vand.u32 4294901760, %v889_v48 }
  0x6a   :  { %6685 = vmatprep.subr.bf16.mxu1 %v10417_v40  ;;  %10422 = vst [vmem:[#allocation26_spill] sm:$0xff] %v8189_v20  ;;  %10424 = vst [vmem:[#allocation27_spill] sm:$0xff] %v8200_v58  ;;  %v897_v39 = vand.u32 4294901760, %v896_v32  ;;  %v917_v58 = vsub.f32 %v8103_v56, %v916_v11  ;;  %v8222_v14 = vpack.c.bf16 %v895_v15, %v888_v7 }
  0x6b   :  { %5727 = vmatmul.mubr.f32.vlgmr.msra.gmra.mrb[2].mxu0 %v7806_v31  ;;  %v903_v51 = vsub.f32 %v8091_v53, %v902_v3  ;;  %v924_v20 = vsub.f32 %v8108_v52, %v923_v36  ;;  %v8230_v32 = vpack.c.bf16 %v909_v60, %v902_v3 }
  0x6c   :  { %6567 = vmatpush3.bf16.msra.mxu0 %v6566_v35  ;;  %5761 = vmatprep.mubr.msk.f32.mxu0 %vm7627_vm0, %v10423_v28  ;;  %v6692_v35 = vpack.c.bf16 %v883_v38, %v876_v49  ;;  %v6695_v6 = vpack.c.bf16 %v897_v39, %v890_v62  ;;  %v930_v49 = vand.u32 4294901760, %v8140_v59  ;;  %v918_v38 = vand.u32 4294901760, %v917_v58 }
  0x6d   :  { %6568 = vmatprep.subr.bf16.mxu0 %v10417_v40  ;;  %5867 = vmatmul.mubr.f32.vlgmr.msra.gmra.mrb[2].mxu1 %v7806_v31  ;;  %v904_v43 = vand.u32 4294901760, %v903_v51  ;;  %v925_v48 = vand.u32 4294901760, %v924_v20  ;;  %v951_v51 = vand.u32 4294901760, %v8169_v55  ;;  %v8240_v20 = vpack.c.bf16 %v923_v36, %v916_v11 }
  0x6e   :  { %6687 = vmatpush3.bf16.msra.mxu1 %v6686_v22  ;;  %5936 = vmatprep.mubr.msk.f32.mxu1 %vm7627_vm0, %v10423_v28  ;;  %v910_v22 = vsub.f32 %v8096_v29, %v909_v60  ;;  %v931_v7 = vsub.f32 %v8140_v59, %v930_v49  ;;  %v6587_v62 = vpack.c.bf16 %v7873_v5, %v7871_v4  ;;  %v10425_v4 = vand.u32 4294901760, %v7947_v12 }
  0x6f   :  { %6688 = vmatprep.subr.bf16.mxu1 %v10417_v40  ;;  %v6701_v54 = vpack.c.bf16 %v925_v48, %v918_v38  ;;  %v10426_v5 = vand.u32 4294901760, %v7952_v16  ;;  %v10429_v16 = vand.u32 4294901760, %v7968_v19  ;;  %v10437_v19 = vld [vmem:[#allocation18_spill] sm:$0xff] }
  0x70   :  { %6570 = vmatpush3.bf16.msra.mxu0 %v6569_v24  ;;  %v911_v24 = vand.u32 4294901760, %v910_v22  ;;  %v932_v3 = vand.u32 4294901760, %v931_v7  ;;  %v952_v22 = vsub.f32 %v8169_v55, %v951_v51  ;;  %v10441_v7 = vld [vmem:[#allocation13_spill] sm:$0xff] }
  0x71   :  { %6571 = vmatprep.subr.bf16.mxu0 %v10417_v40 }
  0x72   :  { %6690 = vmatpush3.bf16.msra.mxu1 %v6689_v18  ;;  %v937_v18 = vand.u32 4294901760, %v8145_v37  ;;  %v6698_v47 = vpack.c.bf16 %v911_v24, %v904_v43  ;;  %v953_v36 = vand.u32 4294901760, %v952_v22  ;;  %v6662_v43 = vpack.c.bf16 %v10426_v5, %v10425_v4  ;;  %v10456_v4 = vld [vmem:[#allocation24_spill] sm:$0xff] }
  0x73   :  { %6691 = vmatprep.subr.bf16.mxu1 %v10417_v40  ;;  %v10430_v24 = vand.u32 4294901760, %v7973_v45  ;;  %v10438_v45 = vand.u32 4294901760, %v10437_v19 }
  0x74   :  { %6573 = vmatpush3.bf16.msra.mxu0 %v6572_v33  ;;  %v938_v15 = vsub.f32 %v8145_v37, %v937_v18  ;;  %v944_v33 = vand.u32 4294901760, %v8164_v1  ;;  %v8248_v57 = vpack.c.bf16 %v937_v18, %v930_v49  ;;  %v10434_v49 = vld [vmem:[#allocation17_spill] sm:$0xff] }
  0x75   :  { %6574 = vmatprep.subr.bf16.mxu0 %v10417_v40  ;;  %v10435_v18 = vand.u32 4294901760, %v10434_v49 }
  0x76   :  { %6693 = vmatpush3.bf16.msra.mxu1 %v6692_v35  ;;  %v939_v60 = vand.u32 4294901760, %v938_v15  ;;  %v945_v58 = vsub.f32 %v8164_v1, %v944_v33  ;;  %v6584_v35 = vpack.c.bf16 %v7867_v2, %v7865_v63  ;;  %v8254_v39 = vpack.c.bf16 %v951_v51, %v944_v33  ;;  %v77_v2 = vld [vmem:[%s10196_s0] sm:$0xff]  ;;  %v10442_v15 = vld [vmem:[#allocation20_spill] sm:$0xff] }
  0x77   :  { %6694 = vmatprep.subr.bf16.mxu1 %v10417_v40  ;;  %v10443_v33 = vand.u32 4294901760, %v10442_v15  ;;  %v10444_v51 = vld [vmem:[#allocation21_spill] sm:$0xff] }
  0x78   :  { %6576 = vmatpush3.bf16.msra.mxu0 %v6575_v42  ;;  %v6704_v61 = vpack.c.bf16 %v939_v60, %v932_v3  ;;  %v946_v11 = vand.u32 4294901760, %v945_v58  ;;  %v8262_v42 = vand.u32 4294901760, %v77_v2  ;;  %v10446_v3 = vld [vmem:[#allocation14_spill] sm:$0xff]  ;;  %v10447_v60 = vand.u32 4294901760, %v8042_v21 }
  0x79   :  { %6577 = vmatprep.subr.bf16.mxu0 %v10417_v40  ;;  %v10448_v58 = vand.u32 4294901760, %v8047_v30 }
  0x7a   :  { %6696 = vmatpush3.bf16.msra.mxu1 %v6695_v6  ;;  %v6707_v63 = vpack.c.bf16 %v953_v36, %v946_v11  ;;  %v6668_v6 = vpack.c.bf16 %v10430_v24, %v10429_v16  ;;  %v10450_v11 = vand.u32 4294901760, %v8113_v0  ;;  %v10451_v36 = vand.u32 4294901760, %v8118_v41  ;;  %v10452_v41 = vld [vmem:[#allocation23_spill] sm:$0xff]  ;;  %v10453_v0 = vld [vmem:[#allocation22_spill] sm:$0xff] }
  0x7b   :  { %6697 = vmatprep.subr.bf16.mxu1 %v10417_v40  ;;  %v6680_v22 = vpack.c.bf16 %v10448_v58, %v10447_v60  ;;  %v1408_v24 = vld [vmem:[#allocation5 + $0x8] sm:$0xff] }
  0x7c   :  { %6579 = vmatpush3.bf16.msra.mxu0 %v6578_v46 }
  0x7d   :  { %6580 = vmatprep.subr.bf16.mxu0 %v10417_v40 }
  0x7e   :  { %6699 = vmatpush3.bf16.msra.mxu1 %v6698_v47  ;;  %v10439_v47 = vld [vmem:[#allocation19_spill] sm:$0xff] }
  0x7f   :  { %6700 = vmatprep.subr.bf16.mxu1 %v10417_v40  ;;  %v10440_v38 = vand.u32 4294901760, %v10439_v47  ;;  %v1413_v47 = vld [vmem:[#allocation5 + $0x30] sm:$0xff] }
  0x80   :  { %6582 = vmatpush3.bf16.msra.mxu0 %v6581_v50  ;;  %v10445_v50 = vand.u32 4294901760, %v10444_v51  ;;  %v1445_v60 = vand.u32 4294901760, %v1413_v47 }
  0x81   :  { %6583 = vmatprep.subr.bf16.mxu0 %v10417_v40  ;;  %v6674_v48 = vpack.c.bf16 %v10440_v38, %v10438_v45  ;;  %v1414_v38 = vld [vmem:[#allocation5 + $0x38] sm:$0xff] }
  0x82   :  { %6702 = vmatpush3.bf16.msra.mxu1 %v6701_v54  ;;  %v6677_v54 = vpack.c.bf16 %v10445_v50, %v10443_v33  ;;  %v1448_v58 = vand.u32 4294901760, %v1414_v38 }
  0x83   :  { %6703 = vmatprep.subr.bf16.mxu1 %v10417_v40 }
  0x84   :  { %6585 = vmatpush3.bf16.msra.mxu0 %v6584_v35  ;;  %v8319_v35 = vsub.f32 %v77_v2, %v8262_v42  ;;  %v10455_v2 = vld [vmem:[#allocation25_spill] sm:$0xff] }
  0x85   :  { %6586 = vmatprep.subr.bf16.mxu0 %v10417_v40  ;;  %v10457_v5 = vpack.c.bf16 %v10455_v2, %v10456_v4 }
  0x86   :  { %6705 = vmatpush3.bf16.msra.mxu1 %v6704_v61  ;;  %v10449_v61 = vld [vmem:[#allocation15_spill] sm:$0xff]  ;;  %v835_v21 = vand.u32 4294901760, %v8319_v35 }
  0x87   :  { %6706 = vmatprep.subr.bf16.mxu1 %v10417_v40 }
  0x88   :  { %6588 = vmatpush3.bf16.msra.mxu0 %v6587_v62  ;;  %v6683_v62 = vpack.c.bf16 %v10451_v36, %v10450_v11 }
  0x89   :  { %6613 = vmatprep.subr.bf16.mxu0 %v10417_v40 }
  0x8a   :  { %6708 = vmatpush3.bf16.msra.mxu1 %v6707_v63  ;;  %v10454_v63 = vpack.c.bf16 %v10452_v41, %v10453_v0  ;;  %v8438_v41 = vpack.c.bf16 %v1448_v58, %v1445_v60 }
  0x8b   :  { %5762 = vmatmul.mubr.f32.vlgmr.msra.gmra.mrb[4].mxu0 %v7836_v44  ;;  %6733 = vmatprep.subr.bf16.mxu1 %v10417_v40  ;;  %v10427_v44 = vand.u32 4294901760, %v7958_v17  ;;  %v10432_v17 = vld [vmem:[#allocation16_spill] sm:$0xff] }
  0x8c   :  { %6615 = vmatpush3.bf16.msra.mxu0 %v7892_v26  ;;  %5831 = vmatprep.mubr.msk.f32.mxu0 %vm7627_vm0, %v10423_v28  ;;  %v10428_v26 = vand.u32 4294901760, %v7963_v13  ;;  %v10433_v13 = vand.u32 4294901760, %v10432_v17  ;;  %v1430_v17 = vand.u32 4294901760, %v1408_v24 }
  0x8d   :  { %6616 = vmatprep.subr.bf16.mxu0 %v10417_v40  ;;  %5937 = vmatmul.mubr.f32.vlgmr.msra.gmra.mrb[4].mxu1 %v8262_v42 }
  0x8e   :  { %6735 = vmatpush3.bf16.msra.mxu1 %v6662_v43  ;;  %6006 = vmatprep.mubr.msk.f32.mxu1 %vm7627_vm0, %v10423_v28  ;;  %v6665_v12 = vpack.c.bf16 %v10428_v26, %v10427_v44  ;;  %v6671_v46 = vpack.c.bf16 %v10435_v18, %v10433_v13  ;;  %v10459_v44 = vpack.c.bf16 %v8086_v8, %v8081_v10  ;;  %v1410_v13 = vld [vmem:[#allocation5 + $0x18] sm:$0xff]  ;;  %v1411_v18 = vld [vmem:[#allocation5 + $0x20] sm:$0xff] }
  0x8f   :  { %6736 = vmatprep.subr.bf16.mxu1 %v10417_v40  ;;  %v10460_v26 = vpack.c.bf16 %v8096_v29, %v8091_v53  ;;  %v10463_v8 = vpack.c.bf16 %v8169_v55, %v8164_v1  ;;  %v10464_v29 = vld [vmem:[#allocation26_spill] sm:$0xff]  ;;  %v1439_v19 = vand.u32 4294901760, %v1411_v18  ;;  %v8415_v15 = vsub.f32 %v1408_v24, %v1430_v17 }
  0x90   :  { %6618 = vmatpush3.bf16.msra.mxu0 %v7894_v27  ;;  %v10431_v27 = vld [vmem:[#allocation11_spill] sm:$0xff] }
  0x91   :  { %6619 = vmatprep.subr.bf16.mxu0 %v10417_v40  ;;  %v8421_v50 = vsub.f32 %v1411_v18, %v1439_v19 }
  0x92   :  { %6738 = vmatpush3.bf16.msra.mxu1 %v6665_v12 }
  0x93   :  { %6739 = vmatprep.subr.bf16.mxu1 %v10417_v40 }
  0x94   :  { %6621 = vmatpush3.bf16.msra.mxu0 %v7900_v34  ;;  %v10436_v34 = vld [vmem:[#allocation12_spill] sm:$0xff] }
  0x95   :  { %6622 = vmatprep.subr.bf16.mxu0 %v10417_v40 }
  0x96   :  { %6741 = vmatpush3.bf16.msra.mxu1 %v6668_v6 }
  0x97   :  { %6742 = vmatprep.subr.bf16.mxu1 %v10417_v40 }
  0x98   :  { %6624 = vmatpush3.bf16.msra.mxu0 %v10431_v27 }
  0x99   :  { %6625 = vmatprep.subr.bf16.mxu0 %v10417_v40 }
  0x9a   :  { %6744 = vmatpush3.bf16.msra.mxu1 %v6671_v46 }
  0x9b   :  { %6745 = vmatprep.subr.bf16.mxu1 %v10417_v40 }
  0x9c   :  { %6627 = vmatpush3.bf16.msra.mxu0 %v10436_v34  ;;  %v1436_v34 = vand.u32 4294901760, %v1410_v13 }
  0x9d   :  { %6628 = vmatprep.subr.bf16.mxu0 %v10417_v40 }
  0x9e   :  { %6747 = vmatpush3.bf16.msra.mxu1 %v6674_v48  ;;  %v8419_v51 = vsub.f32 %v1410_v13, %v1436_v34 }
  0x9f   :  { %6748 = vmatprep.subr.bf16.mxu1 %v10417_v40 }
  0xa0   :  { %6630 = vmatpush3.bf16.msra.mxu0 %v10441_v7 }
  0xa1   :  { %6631 = vmatprep.subr.bf16.mxu0 %v10417_v40 }
  0xa2   :  { %6750 = vmatpush3.bf16.msra.mxu1 %v6677_v54 }
  0xa3   :  { %6751 = vmatprep.subr.bf16.mxu1 %v10417_v40 }
  0xa4   :  { %6633 = vmatpush3.bf16.msra.mxu0 %v10446_v3 }
  0xa5   :  { %6634 = vmatprep.subr.bf16.mxu0 %v10417_v40 }
  0xa6   :  { %6753 = vmatpush3.bf16.msra.mxu1 %v6680_v22 }
  0xa7   :  { %6754 = vmatprep.subr.bf16.mxu1 %v10417_v40 }
  0xa8   :  { %6636 = vmatpush3.bf16.msra.mxu0 %v10449_v61 }
  0xa9   :  { %6661 = vmatprep.subr.bf16.mxu0 %v10417_v40 }
  0xaa   :  { %6756 = vmatpush3.bf16.msra.mxu1 %v6683_v62 }
  0xab   :  { %5832 = vmatmul.mubr.f32.vlgmr.msra.gmra.mrb[6].mxu0 %v7806_v31  ;;  %6781 = vmatprep.subr.bf16.mxu1 %v10417_v40  ;;  %v836_v31 = vsub.f32 %v8319_v35, %v835_v21 }
  0xac   :  { %6663 = vmatpush3.bf16.msra.mxu0 %v6662_v43  ;;  %5901 = vmatprep.mubr.msk.f32.mxu0 %vm7627_vm0, %v10423_v28 }
  0xad   :  { %6664 = vmatprep.subr.bf16.mxu0 %v10417_v40  ;;  %6007 = vmatmul.mubr.f32.vlgmr.msra.gmra.mrb[6].mxu1 %v835_v21  ;;  %v837_v30 = vand.u32 4294901760, %v836_v31 }
  0xae   :  { %6783 = vmatpush3.bf16.msra.mxu1 %v6662_v43  ;;  %6076 = vmatprep.mubr.msk.f32.mxu1 %vm7627_vm0, %v10423_v28  ;;  %v10458_v43 = vpack.c.bf16 %v8076_v23, %v8071_v25  ;;  %v10462_v23 = vpack.c.bf16 %v8145_v37, %v8140_v59 }
  0xaf   :  { %6784 = vmatprep.subr.bf16.mxu1 %v10417_v40 }
  0xb0   :  { %6666 = vmatpush3.bf16.msra.mxu0 %v6665_v12 }
  0xb1   :  { %6667 = vmatprep.subr.bf16.mxu0 %v10417_v40 }
  0xb2   :  { %6786 = vmatpush3.bf16.msra.mxu1 %v6665_v12  ;;  %v10461_v12 = vpack.c.bf16 %v8108_v52, %v8103_v56  ;;  %v10465_v52 = vld [vmem:[#allocation27_spill] sm:$0xff] }
  0xb3   :  { %6787 = vmatprep.subr.bf16.mxu1 %v10417_v40 }
  0xb4   :  { %6669 = vmatpush3.bf16.msra.mxu0 %v6668_v6 }
  0xb5   :  { %6670 = vmatprep.subr.bf16.mxu0 %v10417_v40 }
  0xb6   :  { %6789 = vmatpush3.bf16.msra.mxu1 %v6668_v6  ;;  %v1409_v6 = vld [vmem:[#allocation5 + $0x10] sm:$0xff] }
  0xb7   :  { %6790 = vmatprep.subr.bf16.mxu1 %v10417_v40  ;;  %v1433_v49 = vand.u32 4294901760, %v1409_v6 }
  0xb8   :  { %6672 = vmatpush3.bf16.msra.mxu0 %v6671_v46 }
  0xb9   :  { %6673 = vmatprep.subr.bf16.mxu0 %v10417_v40  ;;  %v8417_v33 = vsub.f32 %v1409_v6, %v1433_v49 }
  0xba   :  { %6792 = vmatpush3.bf16.msra.mxu1 %v6671_v46  ;;  %v1412_v46 = vld [vmem:[#allocation5 + $0x28] sm:$0xff] }
  0xbb   :  { %6793 = vmatprep.subr.bf16.mxu1 %v10417_v40  ;;  %v1442_v45 = vand.u32 4294901760, %v1412_v46  ;;  %v6833_v6 = vpack.c.bf16 %v8419_v51, %v8417_v33 }
  0xbc   :  { %6675 = vmatpush3.bf16.msra.mxu0 %v6674_v48 }
  0xbd   :  { %6676 = vmatprep.subr.bf16.mxu0 %v10417_v40  ;;  %v8426_v3 = vsub.f32 %v1412_v46, %v1442_v45  ;;  %v8434_v61 = vpack.c.bf16 %v1442_v45, %v1439_v19 }
  0xbe   :  { %6795 = vmatpush3.bf16.msra.mxu1 %v6674_v48 }
  0xbf   :  { %6796 = vmatprep.subr.bf16.mxu1 %v10417_v40  ;;  %v6836_v18 = vpack.c.bf16 %v8426_v3, %v8421_v50 }
  0xc0   :  { %6678 = vmatpush3.bf16.msra.mxu0 %v6677_v54 }
  0xc1   :  { %6679 = vmatprep.subr.bf16.mxu0 %v10417_v40 }
  0xc2   :  { %6798 = vmatpush3.bf16.msra.mxu1 %v6677_v54  ;;  %v8424_v54 = vpack.c.bf16 %v1436_v34, %v1433_v49 }
  0xc3   :  { %6799 = vmatprep.subr.bf16.mxu1 %v10417_v40 }
  0xc4   :  { %6681 = vmatpush3.bf16.msra.mxu0 %v6680_v22 }
  0xc5   :  { %6682 = vmatprep.subr.bf16.mxu0 %v10417_v40 }
  0xc6   :  { %6801 = vmatpush3.bf16.msra.mxu1 %v6680_v22  ;;  %v8429_v22 = vsub.f32 %v1413_v47, %v1445_v60 }
  0xc7   :  { %6802 = vmatprep.subr.bf16.mxu1 %v10417_v40 }
  0xc8   :  { %6684 = vmatpush3.bf16.msra.mxu0 %v6683_v62 }
  0xc9   :  { %6709 = vmatprep.subr.bf16.mxu0 %v10417_v40 }
  0xca   :  { %6804 = vmatpush3.bf16.msra.mxu1 %v6683_v62 }
  0xcb   :  { %5902 = vmatmul.mubr.f32.vlgmr.msra.gmra.mrb[8].mxu0 %v837_v30 }
  0xcc   :  { %6711 = vmatpush3.bf16.msra.mxu0 %v10454_v63  ;;  %5971 = vmatprep.mubr.msk.f32.mxu0 %vm7627_vm0, %v10423_v28  ;;  %v1519_v63 = vand.u32 4294901760, %v8415_v15 }
  0xcd   :  { %6712 = vmatprep.subr.bf16.mxu0 %v10417_v40  ;;  %6077 = vmatmul.mubr.f32.vlgmr.msra.gmra.mrb[8].mxu1 %v8262_v42 }
  0xce   :  { %2109 = vmatprep.mubr.f32.mxu1 %v10423_v28  ;;  %v1520_v4 = vsub.f32 %v8415_v15, %v1519_v63 }
  0xd0   :  { %6714 = vmatpush3.bf16.msra.mxu0 %v10457_v5 }
  0xd1   :  { %6715 = vmatprep.subr.bf16.mxu0 %v10417_v40 }
  0xd4   :  { %6717 = vmatpush3.bf16.msra.mxu0 %v10458_v43  ;;  %v1521_v43 = vand.u32 4294901760, %v1520_v4 }
  0xd5   :  { %6718 = vmatprep.subr.bf16.mxu0 %v10417_v40 }
  0xd8   :  { %6720 = vmatpush3.bf16.msra.mxu0 %v10459_v44  ;;  %v1526_v44 = vand.u32 4294901760, %v8417_v33 }
  0xd9   :  { %6721 = vmatprep.subr.bf16.mxu0 %v10417_v40 }
  0xdc   :  { %6723 = vmatpush3.bf16.msra.mxu0 %v10460_v26  ;;  %v1533_v26 = vand.u32 4294901760, %v8419_v51 }
  0xdd   :  { %6724 = vmatprep.subr.bf16.mxu0 %v10417_v40 }
  0xde   :  { %v6857_v47 = vpack.c.bf16 %v1533_v26, %v1526_v44 }
  0xe0   :  { %6726 = vmatpush3.bf16.msra.mxu0 %v10461_v12 }
  0xe1   :  { %6727 = vmatprep.subr.bf16.mxu0 %v10417_v40 }
  0xe4   :  { %6729 = vmatpush3.bf16.msra.mxu0 %v10462_v23  ;;  %v1527_v23 = vsub.f32 %v8417_v33, %v1526_v44 }
  0xe5   :  { %6730 = vmatprep.subr.bf16.mxu0 %v10417_v40 }
  0xe8   :  { %6732 = vmatpush3.bf16.msra.mxu0 %v10463_v8  ;;  %v1534_v8 = vsub.f32 %v8419_v51, %v1533_v26 }
  0xe9   :  { %6757 = vmatprep.subr.bf16.mxu0 %v10417_v40 }
  0xeb   :  { %5972 = vmatmul.mubr.f32.vlgmr.msra.gmra.mrb[10].mxu0 %v8319_v35  ;;  %v8431_v35 = vsub.f32 %v1414_v38, %v1448_v58 }
  0xec   :  { %6759 = vmatpush3.bf16.msra.mxu0 %v10464_v29  ;;  %6041 = vmatprep.mubr.msk.f32.mxu0 %vm7627_vm0, %v10423_v28  ;;  %v1528_v29 = vand.u32 4294901760, %v1527_v23 }
  0xed   :  { %6760 = vmatprep.subr.bf16.mxu0 %v10417_v40  ;;  %v6839_v19 = vpack.c.bf16 %v8431_v35, %v8429_v22 }
  0xf0   :  { %6762 = vmatpush3.bf16.msra.mxu0 %v10465_v52  ;;  %v1535_v52 = vand.u32 4294901760, %v1534_v8  ;;  %v8548_v8 = vld [vmem:[%s10203_s7 + $0x28] sm:$0xff] }
  0xf1   :  { %6763 = vmatprep.subr.bf16.mxu0 %v10417_v40 }
  0xf4   :  { %6765 = vmatpush3.bf16.msra.mxu0 %v8214_v9 }
  0xf5   :  { %6766 = vmatprep.subr.bf16.mxu0 %v10417_v40 }
  0xf8   :  { %6768 = vmatpush3.bf16.msra.mxu0 %v8222_v14 }
  0xf9   :  { %6769 = vmatprep.subr.bf16.mxu0 %v10417_v40 }
  0xfc   :  { %6771 = vmatpush3.bf16.msra.mxu0 %v8230_v32 }
  0xfd   :  { %6772 = vmatprep.subr.bf16.mxu0 %v10417_v40 }
 0x100   :  { %6774 = vmatpush3.bf16.msra.mxu0 %v8240_v20 }
 0x101   :  { %6775 = vmatprep.subr.bf16.mxu0 %v10417_v40 }
 0x104   :  { %6777 = vmatpush3.bf16.msra.mxu0 %v8248_v57 }
 0x105   :  { %6778 = vmatprep.subr.bf16.mxu0 %v10417_v40 }
 0x108   :  { %6780 = vmatpush3.bf16.msra.mxu0 %v8254_v39 }
 0x109   :  { %6805 = vmatprep.subr.bf16.mxu0 %v10417_v40 }
 0x10b   :  { %6042 = vmatmul.mubr.f32.vlgmr.msra.gmra.mrb[12].mxu0 %v8262_v42  ;;  %v1407_v42 = vld [vmem:[#allocation5] sm:$0xff] }
 0x10c   :  { %6095 = vmatprep.mubr.msk.f32.mxu0 %vm7627_vm0, %v10423_v28  ;;  %v1427_v27 = vand.u32 4294901760, %v1407_v42 }
 0x10e   :  { %v8411_v48 = vpack.c.bf16 %v1430_v17, %v1427_v27  ;;  %v8413_v7 = vsub.f32 %v1407_v42, %v1427_v27 }
 0x110   :  { %6807 = vmatpush3.bf16.msra.mxu0 %v8411_v48  ;;  %v1512_v0 = vand.u32 4294901760, %v8413_v7  ;;  %v6830_v24 = vpack.c.bf16 %v8415_v15, %v8413_v7 }
 0x111   :  { %6808 = vmatprep.subr.bf16.mxu0 %v10417_v40 }
 0x112   :  { %v1513_v2 = vsub.f32 %v8413_v7, %v1512_v0  ;;  %v6854_v45 = vpack.c.bf16 %v1519_v63, %v1512_v0 }
 0x114   :  { %6810 = vmatpush3.bf16.msra.mxu0 %v8424_v54  ;;  %v1514_v5 = vand.u32 4294901760, %v1513_v2 }
 0x115   :  { %6811 = vmatprep.subr.bf16.mxu0 %v10417_v40 }
 0x116   :  { %v6818_v12 = vpack.c.bf16 %v1521_v43, %v1514_v5  ;;  %v8517_v5 = vld [vmem:[%s10203_s7 + $0x18] sm:$0xff] }
 0x117   :  { %v2017_v43 = vand.u32 4294901760, %v8517_v5 }
 0x118   :  { %6813 = vmatpush3.bf16.msra.mxu0 %v8434_v61 }
 0x119   :  { %6814 = vmatprep.subr.bf16.mxu0 %v10417_v40 }
 0x11c   :  { %6816 = vmatpush3.bf16.msra.mxu0 %v8438_v41 }
 0x11d   :  { %6817 = vmatprep.subr.bf16.mxu0 %v10417_v40 }
 0x11e   :  { %v198_v37 = vpop.f32.mrb[0].mxu0  ;;  %v542_v59 = vpop.f32.mrb[0].mxu1 }
 0x11f   :  { %v5693_v10 = vpop.f32.mrb[1].mxu0  ;;  %v5798_v25 = vpop.f32.mrb[1].mxu1 }
 0x120   :  { %v6821_v10 = vpack.c.bf16 %v1535_v52, %v1528_v29  ;;  %v8553_v29 = vld [vmem:[%s10203_s7 + $0x38] sm:$0xff]  ;;  %v10236_v52 = vand.u32 4294901760, %v8548_v8 }
 0x13e   :  { %v349_v53 = vpop.f32.mrb[2].mxu0 }
 0x13f   :  { %v350_v56 = vadd.f32 %v349_v53, %v198_v37  ;;  %v5728_v1 = vpop.f32.mrb[3].mxu0  ;;  %v1540_v37 = vand.u32 4294901760, %v8421_v50 }
 0x140   :  { %v748_v55 = vpop.f32.mrb[2].mxu1 }
 0x141   :  { %v5868_v9 = vpop.f32.mrb[3].mxu1  ;;  %v1541_v25 = vsub.f32 %v8421_v50, %v1540_v37  ;;  %v5025_v50 = vld [vmem:[%s10200_s4] ss:$0 sm:$0xff] }
 0x142   :  { %v1561_v9 = vand.u32 4294901760, %v8431_v35 }
 0x15e   :  { %v453_v14 = vpop.f32.mrb[4].mxu0 }
 0x15f   :  { %v454_v32 = vadd.f32 %v453_v14, %v350_v56  ;;  %v5763_v20 = vpop.f32.mrb[5].mxu0  ;;  %v1542_v56 = vand.u32 4294901760, %v1541_v25 }
 0x160   :  { %v8409_v57 = vpop.f32.mrb[4].mxu1  ;;  %v1562_v20 = vsub.f32 %v8431_v35, %v1561_v9 }
 0x161   :  { %v543_v39 = vadd.f32 %v542_v59, %v454_v32  ;;  %v5938_v16 = vpop.f32.mrb[5].mxu1  ;;  %v1547_v59 = vand.u32 4294901760, %v8426_v3 }
 0x162   :  { %v1563_v16 = vand.u32 4294901760, %v1562_v20  ;;  %v8599_v20 = vld [vmem:[%s10203_s7 + $0x40] sm:$0xff] }
 0x163   :  { %v1548_v53 = vsub.f32 %v8426_v3, %v1547_v59  ;;  %v6860_v60 = vpack.c.bf16 %v1547_v59, %v1540_v37  ;;  %v10235_v37 = vand.u32 4294901760, %v8553_v29  ;;  %v8561_v59 = vld [vmem:[%s10203_s7 + $0x20] sm:$0xff] }
 0x164   :  { %v10234_v25 = vand.u32 4294901760, %v8561_v59 }
 0x165   :  { %v1549_v1 = vand.u32 4294901760, %v1548_v53 }
 0x167   :  { %v6824_v14 = vpack.c.bf16 %v1549_v1, %v1542_v56  ;;  %v8575_v56 = vpack.c.bf16 %v10235_v37, %v10236_v52 }
 0x169   :  { %10468 = vst [vmem:[#allocation17_spill] sm:$0xff] %v8575_v56 }
 0x17e   :  { %v661_v11 = vpop.f32.mrb[6].mxu0 }
 0x17f   :  { %v662_v36 = vadd.f32 %v661_v11, %v543_v39  ;;  %v5833_v62 = vpop.f32.mrb[7].mxu0 }
 0x180   :  { %v1183_v21 = vpop.f32.mrb[6].mxu1 }
 0x181   :  { %v749_v31 = vadd.f32 %v748_v55, %v662_v36  ;;  %v6008_v30 = vpop.f32.mrb[7].mxu1  ;;  %v1554_v55 = vand.u32 4294901760, %v8429_v22 }
 0x183   :  { %v1555_v32 = vsub.f32 %v8429_v22, %v1554_v55  ;;  %v6863_v51 = vpack.c.bf16 %v1561_v9, %v1554_v55  ;;  %v8586_v55 = vld [vmem:[%s10203_s7 + $0x48] sm:$0xff]  ;;  %v8591_v9 = vld [vmem:[%s10203_s7 + $0x58] sm:$0xff] }
 0x185   :  { %v1556_v39 = vand.u32 4294901760, %v1555_v32  ;;  %v10231_v32 = vand.u32 4294901760, %v8591_v9 }
 0x187   :  { %v6827_v42 = vpack.c.bf16 %v1563_v16, %v1556_v39  ;;  %v8604_v39 = vld [vmem:[%s10203_s7 + $0x50] sm:$0xff]  ;;  %v2031_v16 = vand.u32 4294901760, %v8599_v20 }
 0x19e   :  { %v839_v27 = vpop.f32.mrb[8].mxu0 }
 0x19f   :  { %v840_v17 = vadd.f32 %v839_v27, %v749_v31  ;;  %v5903_v13 = vpop.f32.mrb[9].mxu0  ;;  %v1982_v27 = vld [vmem:[%s10203_s7 + $0x68] sm:$0xff] }
 0x1a0   :  { %v1389_v49 = vpop.f32.mrb[8].mxu1  ;;  %v2037_v13 = vand.u32 4294901760, %v1982_v27 }
 0x1a1   :  { %v991_v46 = vadd.f32 %v8409_v57, %v840_v17  ;;  %v6078_v34 = vpop.f32.mrb[9].mxu1  ;;  %v1984_v17 = vld [vmem:[%s10203_s7 + $0x78] sm:$0xff] }
 0x1be   :  { %v1094_v38 = vpop.f32.mrb[10].mxu0 }
 0x1bf   :  { %v1095_v7 = vadd.f32 %v1094_v38, %v991_v46  ;;  %v5973_v15 = vpop.f32.mrb[11].mxu0  ;;  %v1983_v46 = vld [vmem:[%s10203_s7 + $0x70] sm:$0xff]  ;;  %v1986_v38 = vld [vmem:[%s10203_s7 + $0x88] sm:$0xff] }
 0x1c0   :  { %v2045_v15 = vand.u32 4294901760, %v1986_v38 }
 0x1c1   :  { %v1184_v33 = vadd.f32 %v1183_v21, %v1095_v7  ;;  %v1988_v7 = vld [vmem:[%s10203_s7 + $0x98] sm:$0xff] }
 0x1de   :  { %v1302_v58 = vpop.f32.mrb[12].mxu0 }
 0x1df   :  { %v1303_v11 = vadd.f32 %v1302_v58, %v1184_v33  ;;  %v6043_v36 = vpop.f32.mrb[13].mxu0  ;;  %v1985_v33 = vld [vmem:[%s10203_s7 + $0x80] sm:$0xff] }
 0x1e0   :  { %v2047_v58 = vand.u32 4294901760, %v1985_v33 }
 0x1e1   :  { %v1390_v57 = vadd.f32 %v1389_v49, %v1303_v11  ;;  %v2041_v49 = vand.u32 4294901760, %v1984_v17 }
 0x1e3   :  { %v1400_v3 = vadd.f32 %v5025_v50, %v1390_v57  ;;  %v1990_v57 = vld [vmem:[%s10203_s7 + $0xa8] sm:$0xff] }
 0x1e5   :  { %v5026_v62 = vmul.f32 -1.442695, %v1400_v3  ;;  %v1992_v3 = vld [vmem:[%s10203_s7 + $0xb8] sm:$0xff] }
 0x1e7   :  { %7530 = vpow2.f32 %v5026_v62  ;;  %v2053_v62 = vand.u32 4294901760, %v1990_v57 }
 0x1f1   :  { %v7531_v22 = vpop.eup %7530 }
 0x1f2   :  { %v1404_v35 = vadd.f32 1.0, %v7531_v22  ;;  %v2057_v22 = vand.u32 4294901760, %v1992_v3 }
 0x1f4   :  { %7532 = vrcp.f32 %v1404_v35  ;;  %v1989_v35 = vld [vmem:[%s10203_s7 + $0xa0] sm:$0xff] }
 0x1fe   :  { %v7533_v31 = vpop.eup %7532 }
 0x1ff   :  { %v1424_v30 = vsel %vm1422_vm1, %v7533_v31, 0  ;;  %v1991_v31 = vld [vmem:[%s10203_s7 + $0xb0] sm:$0xff] }
 0x200   :  { %v1499_v21 = vand.u32 4294901760, %v1424_v30 }
 0x202   :  { %v1500_v0 = vsub.f32 %v1424_v30, %v1499_v21  ;;  %v2055_v30 = vand.u32 4294901760, %v1989_v35 }
 0x204   :  { %v1501_v63 = vand.u32 4294901760, %v1500_v0 }
 0x206   :  { %v1502_v2 = vsub.f32 %v1500_v0, %v1501_v63 }
 0x208   :  { %v1503_v4 = vand.u32 4294901760, %v1502_v2  ;;  %v1994_v2 = vld [vmem:[%s10203_s7 + $0xc8] sm:$0xff] }
 0x20a   :  { %6096 = vmatmul.mubr.f32.vlgmr.msra.gmra.mrb[14].mxu0 %v1503_v4  ;;  %v1996_v4 = vld [vmem:[%s10203_s7 + $0xd8] sm:$0xff] }
 0x20b   :  { %6819 = vmatpush3.bf16.msra.mxu0 %v6818_v12  ;;  %6114 = vmatprep.mubr.msk.f32.mxu0 %vm7627_vm0, %v10423_v28 }
 0x20c   :  { %6820 = vmatprep.subr.bf16.mxu0 %v10417_v40 }
 0x20f   :  { %6822 = vmatpush3.bf16.msra.mxu0 %v6821_v10  ;;  %v8566_v10 = vld [vmem:[%s10203_s7 + $0x30] sm:$0xff] }
 0x210   :  { %6823 = vmatprep.subr.bf16.mxu0 %v10417_v40  ;;  %v10233_v53 = vand.u32 4294901760, %v8566_v10 }
 0x212   :  { %v8581_v1 = vpack.c.bf16 %v10233_v53, %v10234_v25  ;;  %v1993_v53 = vld [vmem:[%s10203_s7 + $0xc0] sm:$0xff]  ;;  %v1995_v25 = vld [vmem:[%s10203_s7 + $0xd0] sm:$0xff] }
 0x213   :  { %6825 = vmatpush3.bf16.msra.mxu0 %v6824_v14  ;;  %v10232_v14 = vand.u32 4294901760, %v8586_v55  ;;  %v2063_v37 = vand.u32 4294901760, %v1993_v53 }
 0x214   :  { %6826 = vmatprep.subr.bf16.mxu0 %v10417_v40  ;;  %10469 = vst [vmem:[#allocation12_spill] sm:$0xff] %v8581_v1 }
 0x217   :  { %6828 = vmatpush3.bf16.msra.mxu0 %v6827_v42  ;;  %v2035_v42 = vand.u32 4294901760, %v8604_v39 }
 0x218   :  { %6829 = vmatprep.subr.bf16.mxu0 %v10417_v40 }
 0x21a   :  { %6115 = vmatmul.mubr.f32.vlgmr.msra.gmra.mrb[14].mxu0 %v1499_v21 }
 0x21b   :  { %6831 = vmatpush3.bf16.msra.mxu0 %v6830_v24  ;;  %6133 = vmatprep.mubr.msk.f32.mxu0 %vm7627_vm0, %v10423_v28  ;;  %v8613_v24 = vpack.c.bf16 %v10231_v32, %v10232_v14  ;;  %v2061_v32 = vand.u32 4294901760, %v1994_v2  ;;  %v2065_v14 = vand.u32 4294901760, %v1996_v4 }
 0x21c   :  { %6832 = vmatprep.subr.bf16.mxu0 %v10417_v40 }
 0x21d   :  { %10470 = vst [vmem:[#allocation18_spill] sm:$0xff] %v8613_v24 }
 0x21f   :  { %6834 = vmatpush3.bf16.msra.mxu0 %v6833_v6  ;;  %v8615_v6 = vpack.c.bf16 %v2035_v42, %v2031_v16 }
 0x220   :  { %6835 = vmatprep.subr.bf16.mxu0 %v10417_v40 }
 0x221   :  { %10471 = vst [vmem:[#allocation19_spill] sm:$0xff] %v8615_v6 }
 0x223   :  { %6837 = vmatpush3.bf16.msra.mxu0 %v6836_v18  ;;  %v1981_v18 = vld [vmem:[%s10203_s7 + $0x60] sm:$0xff] }
 0x224   :  { %6838 = vmatprep.subr.bf16.mxu0 %v10417_v40  ;;  %v2039_v34 = vand.u32 4294901760, %v1981_v18 }
 0x227   :  { %6840 = vmatpush3.bf16.msra.mxu0 %v6839_v19  ;;  %v2043_v19 = vand.u32 4294901760, %v1983_v46 }
 0x228   :  { %6841 = vmatprep.subr.bf16.mxu0 %v10417_v40 }
 0x22a   :  { %6134 = vmatmul.mubr.f32.vlgmr.msra.gmra.mrb[14].mxu0 %v1500_v0  ;;  %v8667_v0 = vpack.c.bf16 %v2057_v22, %v2053_v62 }
 0x22b   :  { %6843 = vmatpush3.bf16.msra.mxu0 %v8411_v48  ;;  %6152 = vmatprep.mubr.msk.f32.mxu0 %vm7627_vm0, %v10423_v28 }
 0x22c   :  { %6844 = vmatprep.subr.bf16.mxu0 %v10417_v40  ;;  %10476 = vst [vmem:[#allocation15_spill] sm:$0xff] %v8667_v0 }
 0x22f   :  { %6846 = vmatpush3.bf16.msra.mxu0 %v8424_v54 }
 0x230   :  { %6847 = vmatprep.subr.bf16.mxu0 %v10417_v40 }
 0x233   :  { %6849 = vmatpush3.bf16.msra.mxu0 %v8434_v61 }
 0x234   :  { %6850 = vmatprep.subr.bf16.mxu0 %v10417_v40 }
 0x237   :  { %6852 = vmatpush3.bf16.msra.mxu0 %v8438_v41 }
 0x238   :  { %6853 = vmatprep.subr.bf16.mxu0 %v10417_v40 }
 0x23a   :  { %6153 = vmatmul.mubr.f32.vlgmr.msra.gmra.mrb[14].mxu0 %v1501_v63 }
 0x23b   :  { %6855 = vmatpush3.bf16.msra.mxu0 %v6854_v45  ;;  %6171 = vmatprep.mubr.msk.f32.mxu0 %vm7627_vm0, %v10423_v28  ;;  %v8631_v45 = vpack.c.bf16 %v2041_v49, %v2037_v13 }
 0x23c   :  { %6856 = vmatprep.subr.bf16.mxu0 %v10417_v40 }
 0x23d   :  { %10472 = vst [vmem:[#allocation13_spill] sm:$0xff] %v8631_v45 }
 0x23f   :  { %6858 = vmatpush3.bf16.msra.mxu0 %v6857_v47  ;;  %v8633_v47 = vpack.c.bf16 %v2043_v19, %v2039_v34 }
 0x240   :  { %6859 = vmatprep.subr.bf16.mxu0 %v10417_v40 }
 0x241   :  { %10473 = vst [vmem:[#allocation20_spill] sm:$0xff] %v8633_v47 }
 0x243   :  { %6861 = vmatpush3.bf16.msra.mxu0 %v6860_v60  ;;  %v2049_v60 = vand.u32 4294901760, %v1988_v7 }
 0x244   :  { %6862 = vmatprep.subr.bf16.mxu0 %v10417_v40 }
 0x245   :  { %v8649_v36 = vpack.c.bf16 %v2049_v60, %v2045_v15 }
 0x247   :  { %6864 = vmatpush3.bf16.msra.mxu0 %v6863_v51  ;;  %v1987_v51 = vld [vmem:[%s10203_s7 + $0x90] sm:$0xff]  ;;  %10474 = vst [vmem:[#allocation21_spill] sm:$0xff] %v8649_v36 }
 0x248   :  { %6865 = vmatprep.subr.bf16.mxu0 %v10417_v40  ;;  %v2051_v11 = vand.u32 4294901760, %v1987_v51 }
 0x24a   :  { %6172 = vmatmul.mubr.f32.vlgmr.msra.gmra.mrb[14].mxu0 %v1499_v21  ;;  %v8651_v50 = vpack.c.bf16 %v2051_v11, %v2047_v58 }
 0x24b   :  { %6867 = vmatpush3.bf16.msra.mxu0 %v8411_v48  ;;  %6190 = vmatprep.mubr.msk.f32.mxu0 %vm7627_vm0, %v10423_v28  ;;  %v8512_v48 = vld [vmem:[%s10203_s7 + $0x8] sm:$0xff] }
 0x24c   :  { %6868 = vmatprep.subr.bf16.mxu0 %v10417_v40  ;;  %10475 = vst [vmem:[#allocation14_spill] sm:$0xff] %v8651_v50 }
 0x24f   :  { %6870 = vmatpush3.bf16.msra.mxu0 %v8424_v54  ;;  %v2013_v54 = vand.u32 4294901760, %v8512_v48 }
 0x250   :  { %6871 = vmatprep.subr.bf16.mxu0 %v10417_v40 }
 0x251   :  { %v8537_v12 = vpack.c.bf16 %v2017_v43, %v2013_v54  ;;  %v8688_v52 = vsub.f32 %v8512_v48, %v2013_v54  ;;  %v10481_v48 = vand.u32 4294901760, %v8548_v8 }
 0x253   :  { %6873 = vmatpush3.bf16.msra.mxu0 %v8434_v61  ;;  %v8524_v61 = vld [vmem:[%s10203_s7] sm:$0xff]  ;;  %10466 = vst [vmem:[#allocation11_spill] sm:$0xff] %v8537_v12  ;;  %6878 = vmatprep.subr.bf16.mxu1 %v8537_v12  ;;  %v8710_v54 = vsub.f32 %v8548_v8, %v10481_v48  ;;  %v10486_v48 = vand.u32 4294901760, %v8591_v9 }
 0x254   :  { %6874 = vmatprep.subr.bf16.mxu0 %v10417_v40  ;;  %v10238_v44 = vand.u32 4294901760, %v8524_v61  ;;  %v2067_v40 = vand.u32 4294901760, %v1995_v25 }
 0x257   :  { %6876 = vmatpush3.bf16.msra.mxu0 %v8438_v41  ;;  %v8529_v41 = vld [vmem:[%s10203_s7 + $0x10] sm:$0xff] }
 0x258   :  { %v10237_v26 = vand.u32 4294901760, %v8529_v41 }
 0x25a   :  { %6191 = vmatmul.mubr.f32.vlgmr.msra.gmra.mrb[14].mxu0 %v1499_v21  ;;  %v8543_v23 = vpack.c.bf16 %v10237_v26, %v10238_v44  ;;  %v2059_v21 = vand.u32 4294901760, %v1991_v31  ;;  %v8693_v26 = vsub.f32 %v8517_v5, %v2017_v43  ;;  %v8695_v44 = vpack.c.bf16 %v2065_v14, %v2061_v32 }
 0x25b   :  { %v10482_v5 = vand.u32 4294901760, %v8553_v29 }
 0x25c   :  { %10467 = vst [vmem:[#allocation16_spill] sm:$0xff] %v8543_v23  ;;  %6880 = vmatpush1.bf16.msra.mxu1 %v8543_v23  ;;  %v8669_v63 = vpack.c.bf16 %v2059_v21, %v2055_v30  ;;  %10478 = vst [vmem:[#allocation22_spill] sm:$0xff] %v8695_v44 }
 0x25d   :  { %6882 = vmatprep.subr.bf16.mxu1 %v8575_v56  ;;  %v8715_v43 = vsub.f32 %v8553_v29, %v10482_v5  ;;  %v8735_v29 = vsub.f32 %v8591_v9, %v10486_v48  ;;  %v8746_v5 = vsub.f32 %v1984_v17, %v2041_v49  ;;  %v8754_v9 = vsub.f32 %v1988_v7, %v2049_v60  ;;  %v2000_v17 = vld [vmem:[%s10203_s7 + $0xf8] sm:$0xff]  ;;  %v1999_v49 = vld [vmem:[%s10203_s7 + $0xf0] sm:$0xff] }
 0x25e   :  { %10477 = vst [vmem:[#allocation23_spill] sm:$0xff] %v8669_v63  ;;  %v8786_v7 = vsub.f32 %v1993_v53, %v2063_v37 }
 0x260   :  { %6884 = vmatpush1.bf16.msra.mxu1 %v8581_v1  ;;  %10496 = vst [vmem:[#allocation33_spill] sm:$0xff] %v8786_v7 }
 0x261   :  { %6886 = vmatprep.subr.bf16.mxu1 %v8613_v24 }
 0x264   :  { %6888 = vmatpush1.bf16.msra.mxu1 %v8615_v6 }
 0x265   :  { %6890 = vmatprep.subr.bf16.mxu1 %v8631_v45 }
 0x268   :  { %6892 = vmatpush1.bf16.msra.mxu1 %v8633_v47  ;;  %v10483_v47 = vand.u32 4294901760, %v8561_v59 }
 0x269   :  { %6894 = vmatprep.subr.bf16.mxu1 %v8649_v36 }
 0x26c   :  { %6896 = vmatpush1.bf16.msra.mxu1 %v8651_v50 }
 0x26d   :  { %6898 = vmatprep.subr.bf16.mxu1 %v8667_v0  ;;  %v10479_v0 = vand.u32 4294901760, %v8524_v61 }
 0x26f   :  { %v8700_v50 = vsub.f32 %v8524_v61, %v10479_v0  ;;  %v8720_v61 = vsub.f32 %v8561_v59, %v10483_v47  ;;  %v10484_v0 = vand.u32 4294901760, %v8566_v10  ;;  %v8739_v59 = vsub.f32 %v8599_v20, %v2031_v16  ;;  %v1998_v20 = vld [vmem:[%s10203_s7 + $0xe8] sm:$0xff] }
 0x270   :  { %6900 = vmatpush1.bf16.msra.mxu1 %v8669_v63  ;;  %v10480_v63 = vand.u32 4294901760, %v8529_v41  ;;  %v8742_v47 = vsub.f32 %v8604_v39, %v2035_v42  ;;  %v8759_v16 = vsub.f32 %v1985_v33, %v2047_v58  ;;  %v8761_v39 = vsub.f32 %v1987_v51, %v2051_v11 }
 0x271   :  { %6902 = vmatprep.subr.bf16.mxu1 %v8695_v44  ;;  %v8763_v42 = vsub.f32 %v1990_v57, %v2053_v62  ;;  %v2069_v60 = vand.u32 4294901760, %v1998_v20  ;;  %v2073_v33 = vand.u32 4294901760, %v2000_v17  ;;  %v2075_v58 = vand.u32 4294901760, %v1999_v49 }
 0x272   :  { %v8705_v36 = vsub.f32 %v8529_v41, %v10480_v63  ;;  %v8725_v41 = vsub.f32 %v8566_v10, %v10484_v0  ;;  %v10485_v63 = vand.u32 4294901760, %v8586_v55  ;;  %v8744_v10 = vsub.f32 %v1982_v27, %v2037_v13  ;;  %10487 = vst [vmem:[#allocation25_spill] sm:$0xff] %v8759_v16  ;;  %10488 = vst [vmem:[#allocation24_spill] sm:$0xff] %v8761_v39  ;;  %v1997_v13 = vld [vmem:[%s10203_s7 + $0xe0] sm:$0xff] }
 0x273   :  { %v8748_v0 = vsub.f32 %v1981_v18, %v2039_v34  ;;  %10489 = vst [vmem:[#allocation26_spill] sm:$0xff] %v8763_v42  ;;  %v8765_v27 = vsub.f32 %v1992_v3, %v2057_v22  ;;  %v8776_v18 = vsub.f32 %v1989_v35, %v2055_v30  ;;  %v8780_v34 = vsub.f32 %v1994_v2, %v2061_v32 }
 0x274   :  { %v8730_v8 = vsub.f32 %v8586_v55, %v10485_v63  ;;  %v8750_v55 = vsub.f32 %v1983_v46, %v2043_v19  ;;  %v8752_v63 = vsub.f32 %v1986_v38, %v2045_v15  ;;  %v8778_v46 = vsub.f32 %v1991_v31, %v2059_v21 }
 0x275   :  { %10490 = vst [vmem:[#allocation27_spill] sm:$0xff] %v8765_v27  ;;  %10491 = vst [vmem:[#allocation28_spill] sm:$0xff] %v8776_v18  ;;  %v8782_v19 = vsub.f32 %v1996_v4, %v2065_v14  ;;  %v8784_v38 = vpack.c.bf16 %v2067_v40, %v2063_v37  ;;  %v8788_v15 = vsub.f32 %v1995_v25, %v2067_v40  ;;  %v2071_v51 = vand.u32 4294901760, %v1997_v13 }
 0x276   :  { %10492 = vst [vmem:[#allocation29_spill] sm:$0xff] %v8778_v46  ;;  %10493 = vst [vmem:[#allocation30_spill] sm:$0xff] %v8780_v34  ;;  %v10263_v11 = vand.u32 4294901760, %v8688_v52  ;;  %v8792_v57 = vsub.f32 %v1998_v20, %v2069_v60  ;;  %v10259_v32 = vand.u32 4294901760, %v8693_v26  ;;  %v10252_v14 = vand.u32 4294901760, %v8700_v50 }
 0x277   :  { %10494 = vst [vmem:[#allocation31_spill] sm:$0xff] %v8782_v19  ;;  %10495 = vst [vmem:[#allocation32_spill] sm:$0xff] %v8784_v38  ;;  %6904 = vmatpush1.bf16.msra.mxu1 %v8784_v38  ;;  %v10251_v3 = vand.u32 4294901760, %v8705_v36  ;;  %v8797_v37 = vpack.c.bf16 %v2073_v33, %v2069_v60  ;;  %v8799_v40 = vsub.f32 %v2000_v17, %v2073_v33  ;;  %v10250_v21 = vand.u32 4294901760, %v8710_v54 }
 0x278   :  { %10497 = vst [vmem:[#allocation34_spill] sm:$0xff] %v8788_v15  ;;  %10498 = vst [vmem:[#allocation35_spill] sm:$0xff] %v8792_v57  ;;  %v8801_v25 = vpack.c.bf16 %v2075_v58, %v2071_v51  ;;  %v8803_v53 = vsub.f32 %v1997_v13, %v2071_v51  ;;  %v8805_v62 = vsub.f32 %v1999_v49, %v2075_v58  ;;  %v10253_v2 = vand.u32 4294901760, %v8715_v43 }
 0x279   :  { %10499 = vst [vmem:[#allocation36_spill] sm:$0xff] %v8797_v37  ;;  %10500 = vst [vmem:[#allocation37_spill] sm:$0xff] %v8799_v40  ;;  %v2124_v22 = vsub.f32 %v8688_v52, %v10263_v11  ;;  %v2136_v35 = vsub.f32 %v8693_v26, %v10259_v32  ;;  %v2130_v31 = vsub.f32 %v8700_v50, %v10252_v14  ;;  %6906 = vmatprep.subr.bf16.mxu1 %v8797_v37 }
 0x27a   :  { %10501 = vst [vmem:[#allocation38_spill] sm:$0xff] %v8801_v25  ;;  %10502 = vst [vmem:[#allocation39_spill] sm:$0xff] %v8805_v62  ;;  %v2142_v30 = vsub.f32 %v8705_v36, %v10251_v3  ;;  %v10254_v4 = vand.u32 4294901760, %v8720_v61  ;;  %v10255_v13 = vand.u32 4294901760, %v8725_v41  ;;  %v2148_v60 = vsub.f32 %v8710_v54, %v10250_v21 }
 0x27b   :  { %6908 = vmatpush1.bf16.msra.mxu1 %v8801_v25  ;;  %v2125_v48 = vand.u32 4294901760, %v2124_v22  ;;  %v2137_v20 = vand.u32 4294901760, %v2136_v35  ;;  %v2131_v17 = vand.u32 4294901760, %v2130_v31  ;;  %v2160_v33 = vsub.f32 %v8715_v43, %v10253_v2 }
 0x27c   :  { %v2143_v49 = vand.u32 4294901760, %v2142_v30  ;;  %v2154_v51 = vsub.f32 %v8720_v61, %v10254_v4  ;;  %v2166_v22 = vsub.f32 %v8725_v41, %v10255_v13  ;;  %v10258_v35 = vand.u32 4294901760, %v8730_v8 }
 0x27d   :  { %v6909_v58 = vpack.c.bf16 %v2137_v20, %v2125_v48  ;;  %v10256_v31 = vand.u32 4294901760, %v8735_v29  ;;  %v2149_v21 = vand.u32 4294901760, %v2148_v60  ;;  %v2161_v3 = vand.u32 4294901760, %v2160_v33 }
 0x27e   :  { %v8839_v30 = vpack.c.bf16 %v2143_v49, %v2131_v17  ;;  %v2155_v14 = vand.u32 4294901760, %v2154_v51  ;;  %v2167_v2 = vand.u32 4294901760, %v2166_v22  ;;  %v2172_v4 = vsub.f32 %v8730_v8, %v10258_v35 }
 0x27f   :  { %6910 = vmatprep.subr.bf16.mxu1 %v6909_v58  ;;  %v2184_v48 = vsub.f32 %v8735_v29, %v10256_v31  ;;  %v10257_v20 = vand.u32 4294901760, %v8739_v59  ;;  %v8848_v13 = vpack.c.bf16 %v2161_v3, %v2149_v21  ;;  %v10260_v17 = vand.u32 4294901760, %v8742_v47 }
 0x280   :  { %v10261_v49 = vand.u32 4294901760, %v8744_v10  ;;  %v10262_v60 = vand.u32 4294901760, %v8746_v5  ;;  %v8853_v33 = vpack.c.bf16 %v2167_v2, %v2155_v14  ;;  %v2173_v51 = vand.u32 4294901760, %v2172_v4 }
 0x281   :  { %v2185_v58 = vand.u32 4294901760, %v2184_v48  ;;  %v2178_v22 = vsub.f32 %v8739_v59, %v10257_v20  ;;  %v2190_v31 = vsub.f32 %v8742_v47, %v10260_v17  ;;  %v10264_v14 = vand.u32 4294901760, %v8748_v0 }
 0x282   :  { %v2196_v3 = vsub.f32 %v8744_v10, %v10261_v49  ;;  %v2208_v21 = vsub.f32 %v8746_v5, %v10262_v60  ;;  %v10267_v48 = vand.u32 4294901760, %v8750_v55  ;;  %v10268_v20 = vand.u32 4294901760, %v8752_v63 }
 0x283   :  { %v8868_v2 = vpack.c.bf16 %v2185_v58, %v2173_v51  ;;  %v2179_v4 = vand.u32 4294901760, %v2178_v22  ;;  %v2191_v35 = vand.u32 4294901760, %v2190_v31  ;;  %v2202_v49 = vsub.f32 %v8748_v0, %v10264_v14 }
 0x284   :  { %v2197_v32 = vand.u32 4294901760, %v2196_v3  ;;  %v2209_v17 = vand.u32 4294901760, %v2208_v21  ;;  %v2214_v60 = vsub.f32 %v8750_v55, %v10267_v48  ;;  %v2220_v51 = vsub.f32 %v8752_v63, %v10268_v20 }
 0x285   :  { %v10269_v58 = vand.u32 4294901760, %v8754_v9  ;;  %v10272_v22 = vand.u32 4294901760, %v8759_v16  ;;  %v8883_v11 = vpack.c.bf16 %v2191_v35, %v2179_v4  ;;  %v2203_v3 = vand.u32 4294901760, %v2202_v49 }
 0x286   :  { %v8885_v31 = vpack.c.bf16 %v2209_v17, %v2197_v32  ;;  %v10273_v21 = vand.u32 4294901760, %v8761_v39  ;;  %v2215_v14 = vand.u32 4294901760, %v2214_v60  ;;  %v2221_v25 = vand.u32 4294901760, %v2220_v51 }
 0x287   :  { %v2232_v48 = vsub.f32 %v8754_v9, %v10269_v58  ;;  %v2226_v20 = vsub.f32 %v8759_v16, %v10272_v22  ;;  %v10278_v32 = vand.u32 4294901760, %v8763_v42  ;;  %v10281_v17 = vand.u32 4294901760, %v8765_v27 }
 0x288   :  { %v2238_v35 = vsub.f32 %v8761_v39, %v10273_v21  ;;  %v10282_v49 = vand.u32 4294901760, %v8776_v18  ;;  %v8900_v60 = vpack.c.bf16 %v2215_v14, %v2203_v3  ;;  %v10283_v58 = vand.u32 4294901760, %v8778_v46 }
 0x289   :  { %v2233_v4 = vand.u32 4294901760, %v2232_v48  ;;  %v2227_v51 = vand.u32 4294901760, %v2226_v20  ;;  %v2244_v22 = vsub.f32 %v8763_v42, %v10278_v32  ;;  %v2256_v21 = vsub.f32 %v8765_v27, %v10281_v17 }
 0x28a   :  { %v2239_v37 = vand.u32 4294901760, %v2238_v35  ;;  %v2250_v38 = vsub.f32 %v8776_v18, %v10282_v49  ;;  %v2262_v20 = vsub.f32 %v8778_v46, %v10283_v58  ;;  %v10287_v14 = vand.u32 4294901760, %v8780_v34 }
 0x28b   :  { %v8912_v44 = vpack.c.bf16 %v2233_v4, %v2221_v25  ;;  %v10286_v48 = vand.u32 4294901760, %v8782_v19  ;;  %v2245_v35 = vand.u32 4294901760, %v2244_v22  ;;  %v2257_v32 = vand.u32 4294901760, %v2256_v21 }
 0x28c   :  { %v8919_v3 = vpack.c.bf16 %v2239_v37, %v2227_v51  ;;  %v2251_v45 = vand.u32 4294901760, %v2250_v38  ;;  %v2263_v17 = vand.u32 4294901760, %v2262_v20  ;;  %v2268_v49 = vsub.f32 %v8780_v34, %v10287_v14 }
 0x28d   :  { %v2280_v25 = vsub.f32 %v8782_v19, %v10286_v48  ;;  %v10288_v4 = vand.u32 4294901760, %v8786_v7  ;;  %v8928_v58 = vpack.c.bf16 %v2257_v32, %v2245_v35  ;;  %v10291_v6 = vand.u32 4294901760, %v8788_v15 }
 0x28e   :  { %v10292_v37 = vand.u32 4294901760, %v8792_v57  ;;  %v10297_v22 = vand.u32 4294901760, %v8799_v40  ;;  %v8933_v38 = vpack.c.bf16 %v2263_v17, %v2251_v45  ;;  %v2269_v21 = vand.u32 4294901760, %v2268_v49 }
 0x28f   :  { %v2281_v51 = vand.u32 4294901760, %v2280_v25  ;;  %v2274_v20 = vsub.f32 %v8786_v7, %v10288_v4  ;;  %v2286_v48 = vsub.f32 %v8788_v15, %v10291_v6  ;;  %v10303_v45 = vand.u32 4294901760, %v8803_v53 }
 0x290   :  { %v2292_v32 = vsub.f32 %v8792_v57, %v10292_v37  ;;  %v2304_v35 = vsub.f32 %v8799_v40, %v10297_v22  ;;  %v10302_v25 = vand.u32 4294901760, %v8805_v62 }
 0x291   :  { %v6933_v17 = vpack.c.bf16 %v2281_v51, %v2269_v21  ;;  %v2275_v49 = vand.u32 4294901760, %v2274_v20  ;;  %v2287_v14 = vand.u32 4294901760, %v2286_v48  ;;  %v2298_v6 = vsub.f32 %v8803_v53, %v10303_v45 }
 0x292   :  { %v2293_v4 = vand.u32 4294901760, %v2292_v32  ;;  %v2305_v24 = vand.u32 4294901760, %v2304_v35  ;;  %v2310_v37 = vsub.f32 %v8805_v62, %v10302_v25  ;;  %v6941_v21 = vpack.c.bf16 %v8693_v26, %v8688_v52 }
 0x293   :  { %v6935_v1 = vpack.c.bf16 %v2287_v14, %v2275_v49  ;;  %v2299_v22 = vand.u32 4294901760, %v2298_v6  ;;  %v6943_v48 = vpack.c.bf16 %v8705_v36, %v8700_v50  ;;  %v6945_v51 = vpack.c.bf16 %v8715_v43, %v8710_v54 }
 0x294   :  { %v6937_v56 = vpack.c.bf16 %v2305_v24, %v2293_v4  ;;  %v2311_v23 = vand.u32 4294901760, %v2310_v37  ;;  %v6947_v20 = vpack.c.bf16 %v8725_v41, %v8720_v61  ;;  %v6949_v32 = vpack.c.bf16 %v8735_v29, %v8730_v8 }
 0x295   :  { %v6951_v24 = vpack.c.bf16 %v8742_v47, %v8739_v59  ;;  %v6955_v6 = vpack.c.bf16 %v8750_v55, %v8748_v0  ;;  %v6957_v14 = vpack.c.bf16 %v8754_v9, %v8752_v63  ;;  %v6959_v4 = vpack.c.bf16 %v8761_v39, %v8759_v16  ;;  %v5027_v39 = vld [vmem:[%s10202_s6] ss:$0 sm:$0xff] }
 0x296   :  { %v6939_v12 = vpack.c.bf16 %v2311_v23, %v2299_v22  ;;  %v6953_v23 = vpack.c.bf16 %v8746_v5, %v8744_v10  ;;  %v6961_v37 = vpack.c.bf16 %v8765_v27, %v8763_v42  ;;  %v6963_v22 = vpack.c.bf16 %v8778_v46, %v8776_v18 }
 0x297   :  { %v6965_v35 = vpack.c.bf16 %v8782_v19, %v8780_v34  ;;  %v6967_v49 = vpack.c.bf16 %v8788_v15, %v8786_v7  ;;  %v6969_v25 = vpack.c.bf16 %v8799_v40, %v8792_v57  ;;  %v6971_v45 = vpack.c.bf16 %v8805_v62, %v8803_v53 }
 0x32d   :  { %v1959_v27 = vpop.f32.mrb[14].mxu0 }
 0x32e   :  { %v7477_v42 = vadd.f32 %v5027_v39, %v1959_v27  ;;  %v6192_v16 = vpop.f32.mrb[15].mxu0  ;;  %v10508_v39 = vld [vmem:[#allocation19_spill] sm:$0xff]  ;;  %v10510_v27 = vld [vmem:[#allocation20_spill] sm:$0xff] }
 0x32f   :  { %v10507_v16 = vld [vmem:[#allocation18_spill] sm:$0xff] }
 0x330   :  { %v5028_v46 = vmul.f32 -1.442695, %v7477_v42  ;;  %v10509_v42 = vld [vmem:[#allocation13_spill] sm:$0xff] }
 0x332   :  { %7534 = vpow2.f32 %v5028_v46  ;;  %v10512_v46 = vld [vmem:[#allocation14_spill] sm:$0xff] }
 0x33c   :  { %v7535_v18 = vpop.eup %7534 }
 0x33d   :  { %v1966_v19 = vadd.f32 1.0, %v7535_v18  ;;  %v10511_v18 = vld [vmem:[#allocation21_spill] sm:$0xff] }
 0x33f   :  { %7536 = vrcp.f32 %v1966_v19  ;;  %v10514_v19 = vld [vmem:[#allocation23_spill] sm:$0xff] }
 0x349   :  { %v7537_v34 = vpop.eup %7536 }
 0x34a   :  { %v8990_v15 = vand.u32 4294901760, %v7537_v34 }
 0x34c   :  { %v2111_v40 = vsub.f32 %v7537_v34, %v8990_v15  ;;  %v10513_v34 = vld [vmem:[#allocation15_spill] sm:$0xff] }
 0x34e   :  { %v2112_v57 = vand.u32 4294901760, %v2111_v40 }
 0x350   :  { %v2113_v7 = vsub.f32 %v2111_v40, %v2112_v57 }
 0x352   :  { %v2114_v62 = vand.u32 4294901760, %v2113_v7  ;;  %v10515_v7 = vld [vmem:[#allocation22_spill] sm:$0xff] }
 0x354   :  { %2115 = vmatmul.mubr.f32.vlgmr.msra.gmra.mrb[10].mxu1 %v2114_v62  ;;  %v10518_v62 = vand.u32 4294901760, %v8688_v52  ;;  %v10525_v52 = vand.u32 4294901760, %v8720_v61  ;;  %v10531_v61 = vand.u32 4294901760, %v8744_v10 }
 0x355   :  { %6912 = vmatpush1.bf16.msra.mxu1 %v8839_v30  ;;  %2345 = vmatprep.mubr.f32.mxu1 %v10423_v28 }
 0x356   :  { %6914 = vmatprep.subr.bf16.mxu1 %v8848_v13  ;;  %v10519_v13 = vand.u32 4294901760, %v8693_v26  ;;  %v10526_v26 = vand.u32 4294901760, %v8725_v41  ;;  %v10532_v41 = vand.u32 4294901760, %v8746_v5  ;;  %v10541_v5 = vld [vmem:[#allocation26_spill] sm:$0xff] }
 0x358   :  { %v7005_v30 = vpack.c.bf16 %v10519_v13, %v10518_v62 }
 0x359   :  { %6916 = vmatpush1.bf16.msra.mxu1 %v8853_v33  ;;  %v10520_v33 = vld [vmem:[#allocation38_spill] sm:$0xff] }
 0x35a   :  { %6918 = vmatprep.subr.bf16.mxu1 %v8868_v2  ;;  %v10521_v2 = vand.u32 4294901760, %v8700_v50  ;;  %v10527_v50 = vand.u32 4294901760, %v8730_v8  ;;  %v10534_v8 = vand.u32 4294901760, %v8750_v55  ;;  %v10545_v55 = vld [vmem:[#allocation28_spill] sm:$0xff] }
 0x35d   :  { %6920 = vmatpush1.bf16.msra.mxu1 %v8883_v11  ;;  %v10516_v11 = vld [vmem:[#allocation32_spill] sm:$0xff] }
 0x35e   :  { %6922 = vmatprep.subr.bf16.mxu1 %v8885_v31 }
 0x361   :  { %6924 = vmatpush1.bf16.msra.mxu1 %v8900_v60  ;;  %v10523_v60 = vand.u32 4294901760, %v8710_v54  ;;  %v10529_v54 = vand.u32 4294901760, %v8739_v59  ;;  %v10536_v59 = vand.u32 4294901760, %v8754_v9  ;;  %v10549_v9 = vld [vmem:[#allocation30_spill] sm:$0xff] }
 0x362   :  { %6926 = vmatprep.subr.bf16.mxu1 %v8912_v44  ;;  %v10503_v44 = vld [vmem:[#allocation11_spill] sm:$0xff] }
 0x365   :  { %6928 = vmatpush1.bf16.msra.mxu1 %v8919_v3  ;;  %v10524_v3 = vand.u32 4294901760, %v8715_v43  ;;  %v10530_v43 = vand.u32 4294901760, %v8742_v47  ;;  %v10537_v47 = vld [vmem:[#allocation25_spill] sm:$0xff] }
 0x366   :  { %6930 = vmatprep.subr.bf16.mxu1 %v8928_v58  ;;  %v10522_v58 = vand.u32 4294901760, %v8705_v36  ;;  %v10528_v36 = vand.u32 4294901760, %v8735_v29  ;;  %v10535_v29 = vand.u32 4294901760, %v8752_v63 }
 0x368   :  { %v7007_v31 = vpack.c.bf16 %v10522_v58, %v10521_v2  ;;  %v10555_v58 = vld [vmem:[#allocation34_spill] sm:$0xff] }
 0x369   :  { %6932 = vmatpush1.bf16.msra.mxu1 %v8933_v38  ;;  %v7009_v38 = vpack.c.bf16 %v10524_v3, %v10523_v60  ;;  %v10557_v3 = vld [vmem:[#allocation35_spill] sm:$0xff] }
 0x36a   :  { %6934 = vmatprep.subr.bf16.mxu1 %v6933_v17  ;;  %v7013_v17 = vpack.c.bf16 %v10528_v36, %v10527_v50  ;;  %v10561_v50 = vand.u32 4294901760, %v8803_v53  ;;  %v10562_v36 = vld [vmem:[#allocation39_spill] sm:$0xff]  ;;  %v2896_v53 = vld [vmem:[%s10205_s9 + $0x80] sm:$0xff] }
 0x36d   :  { %6936 = vmatpush1.bf16.msra.mxu1 %v6935_v1  ;;  %v10506_v1 = vld [vmem:[#allocation12_spill] sm:$0xff] }
 0x36e   :  { %6938 = vmatprep.subr.bf16.mxu1 %v6937_v56  ;;  %v10505_v56 = vld [vmem:[#allocation17_spill] sm:$0xff] }
 0x371   :  { %6940 = vmatpush1.bf16.msra.mxu1 %v6939_v12  ;;  %v10504_v12 = vld [vmem:[#allocation16_spill] sm:$0xff] }
 0x372   :  { %6942 = vmatprep.subr.bf16.mxu1 %v6941_v21  ;;  %v10533_v21 = vand.u32 4294901760, %v8748_v0 }
 0x374   :  { %2347 = vmatmul.mubr.f32.vlgmr.msra.gmra.mrb[10].mxu1 %v8990_v15 }
 0x375   :  { %6944 = vmatpush1.bf16.msra.mxu1 %v6943_v48  ;;  %2481 = vmatprep.mubr.f32.mxu1 %v10423_v28  ;;  %v7019_v48 = vpack.c.bf16 %v10534_v8, %v10533_v21 }
 0x376   :  { %6946 = vmatprep.subr.bf16.mxu1 %v6945_v51  ;;  %v7021_v51 = vpack.c.bf16 %v10536_v59, %v10535_v29 }
 0x379   :  { %6948 = vmatpush1.bf16.msra.mxu1 %v6947_v20  ;;  %v10538_v20 = vand.u32 4294901760, %v10537_v47  ;;  %v9182_v47 = vld [vmem:[%s10205_s9 + $0xa0] sm:$0xff] }
 0x37a   :  { %6950 = vmatprep.subr.bf16.mxu1 %v6949_v32  ;;  %v10539_v32 = vld [vmem:[#allocation24_spill] sm:$0xff] }
 0x37b   :  { %v10540_v10 = vand.u32 4294901760, %v10539_v32 }
 0x37d   :  { %6952 = vmatpush1.bf16.msra.mxu1 %v6951_v24  ;;  %v7023_v24 = vpack.c.bf16 %v10540_v10, %v10538_v20  ;;  %v9187_v20 = vld [vmem:[%s10205_s9 + $0xa8] sm:$0xff] }
 0x37e   :  { %6954 = vmatprep.subr.bf16.mxu1 %v6953_v23  ;;  %v10542_v23 = vand.u32 4294901760, %v10541_v5  ;;  %v2980_v5 = vand.u32 4294901760, %v9182_v47 }
 0x381   :  { %6956 = vmatpush1.bf16.msra.mxu1 %v6955_v6  ;;  %v10543_v6 = vld [vmem:[#allocation27_spill] sm:$0xff] }
 0x382   :  { %6958 = vmatprep.subr.bf16.mxu1 %v6957_v14  ;;  %v10544_v0 = vand.u32 4294901760, %v10543_v6  ;;  %v9203_v6 = vld [vmem:[%s10205_s9 + $0x28] sm:$0xff] }
 0x384   :  { %v7025_v14 = vpack.c.bf16 %v10544_v0, %v10542_v23  ;;  %v9198_v23 = vld [vmem:[%s10205_s9 + $0x20] sm:$0xff] }
 0x385   :  { %6960 = vmatpush1.bf16.msra.mxu1 %v6959_v4  ;;  %v10546_v4 = vand.u32 4294901760, %v10545_v55  ;;  %v2932_v55 = vand.u32 4294901760, %v9198_v23 }
 0x386   :  { %6962 = vmatprep.subr.bf16.mxu1 %v6961_v37  ;;  %v10547_v37 = vld [vmem:[#allocation29_spill] sm:$0xff] }
 0x387   :  { %v10548_v63 = vand.u32 4294901760, %v10547_v37 }
 0x389   :  { %6964 = vmatpush1.bf16.msra.mxu1 %v6963_v22  ;;  %v7027_v22 = vpack.c.bf16 %v10548_v63, %v10546_v4  ;;  %v2935_v4 = vand.u32 4294901760, %v9203_v6 }
 0x38a   :  { %6966 = vmatprep.subr.bf16.mxu1 %v6965_v35  ;;  %v10550_v35 = vand.u32 4294901760, %v10549_v9 }
 0x38d   :  { %6968 = vmatpush1.bf16.msra.mxu1 %v6967_v49  ;;  %v10551_v49 = vld [vmem:[#allocation31_spill] sm:$0xff] }
 0x38e   :  { %6970 = vmatprep.subr.bf16.mxu1 %v6969_v25  ;;  %v7017_v25 = vpack.c.bf16 %v10532_v41, %v10531_v61  ;;  %v10552_v62 = vand.u32 4294901760, %v10551_v49  ;;  %v9232_v49 = vsub.f32 %v9203_v6, %v2935_v4  ;;  %v2908_v6 = vld [vmem:[%s10205_s9 + $0xe0] sm:$0xff] }
 0x390   :  { %v7029_v13 = vpack.c.bf16 %v10552_v62, %v10550_v35  ;;  %v9227_v35 = vsub.f32 %v9198_v23, %v2932_v55  ;;  %v9237_v62 = vld [vmem:[%s10205_s9 + $0xb0] sm:$0xff] }
 0x391   :  { %6972 = vmatpush1.bf16.msra.mxu1 %v6971_v45  ;;  %v7011_v45 = vpack.c.bf16 %v10526_v26, %v10525_v52  ;;  %v10559_v52 = vld [vmem:[#allocation37_spill] sm:$0xff] }
 0x392   :  { %6974 = vmatprep.subr.bf16.mxu1 %v10503_v44  ;;  %v10560_v26 = vand.u32 4294901760, %v10559_v52 }
 0x394   :  { %2484 = vmatmul.mubr.f32.vlgmr.msra.gmra.mrb[10].mxu1 %v2111_v40  ;;  %v10517_v40 = vld [vmem:[#allocation36_spill] sm:$0xff] }
 0x395   :  { %6976 = vmatpush1.bf16.msra.mxu1 %v10504_v12  ;;  %2586 = vmatprep.mubr.f32.mxu1 %v10423_v28 }
 0x396   :  { %6978 = vmatprep.subr.bf16.mxu1 %v10505_v56 }
 0x399   :  { %6980 = vmatpush1.bf16.msra.mxu1 %v10506_v1 }
 0x39a   :  { %6982 = vmatprep.subr.bf16.mxu1 %v10507_v16 }
 0x39d   :  { %6984 = vmatpush1.bf16.msra.mxu1 %v10508_v39 }
 0x39e   :  { %6986 = vmatprep.subr.bf16.mxu1 %v10509_v42 }
 0x3a1   :  { %6988 = vmatpush1.bf16.msra.mxu1 %v10510_v27 }
 0x3a2   :  { %6990 = vmatprep.subr.bf16.mxu1 %v10511_v18 }
 0x3a5   :  { %6992 = vmatpush1.bf16.msra.mxu1 %v10512_v46 }
 0x3a6   :  { %6994 = vmatprep.subr.bf16.mxu1 %v10513_v34 }
 0x3a9   :  { %6996 = vmatpush1.bf16.msra.mxu1 %v10514_v19 }
 0x3aa   :  { %6998 = vmatprep.subr.bf16.mxu1 %v10515_v7 }
 0x3ad   :  { %7000 = vmatpush1.bf16.msra.mxu1 %v10516_v11 }
 0x3ae   :  { %7002 = vmatprep.subr.bf16.mxu1 %v10517_v40 }
 0x3b1   :  { %7004 = vmatpush1.bf16.msra.mxu1 %v10520_v33 }
 0x3b2   :  { %7006 = vmatprep.subr.bf16.mxu1 %v7005_v30  ;;  %v10553_v30 = vld [vmem:[#allocation33_spill] sm:$0xff] }
 0x3b3   :  { %v10554_v2 = vand.u32 4294901760, %v10553_v30 }
 0x3b4   :  { %2590 = vmatmul.mubr.f32.vlgmr.msra.gmra.mrb[10].mxu1 %v2112_v57  ;;  %v7015_v57 = vpack.c.bf16 %v10530_v43, %v10529_v54  ;;  %v9145_v43 = vld [vmem:[%s10205_s9 + $0x10] sm:$0xff] }
 0x3b5   :  { %7008 = vmatpush1.bf16.msra.mxu1 %v7007_v31  ;;  %2756 = vmatprep.mubr.f32.mxu1 %v10423_v28  ;;  %v10556_v31 = vand.u32 4294901760, %v10555_v58  ;;  %v2986_v58 = vand.u32 4294901760, %v9237_v62 }
 0x3b6   :  { %7010 = vmatprep.subr.bf16.mxu1 %v7009_v38  ;;  %v10558_v38 = vand.u32 4294901760, %v10557_v3  ;;  %v9259_v3 = vld [vmem:[%s10205_s9 + $0x38] sm:$0xff] }
 0x3b7   :  { %v7031_v60 = vpack.c.bf16 %v10556_v31, %v10554_v2 }
 0x3b9   :  { %7012 = vmatpush1.bf16.msra.mxu1 %v7011_v45  ;;  %v7033_v45 = vpack.c.bf16 %v10560_v26, %v10558_v38  ;;  %v10318_v26 = vand.u32 4294901760, %v9227_v35 }
 0x3ba   :  { %7014 = vmatprep.subr.bf16.mxu1 %v7013_v17  ;;  %v10563_v17 = vand.u32 4294901760, %v10562_v36  ;;  %v9271_v36 = vsub.f32 %v9237_v62, %v2986_v58 }
 0x3bc   :  { %v7035_v54 = vpack.c.bf16 %v10563_v17, %v10561_v50 }
 0x3bd   :  { %7016 = vmatpush1.bf16.msra.mxu1 %v7015_v57  ;;  %v9150_v57 = vld [vmem:[%s10205_s9 + $0x18] sm:$0xff] }
 0x3be   :  { %7018 = vmatprep.subr.bf16.mxu1 %v7017_v25  ;;  %v2926_v25 = vand.u32 4294901760, %v9145_v43  ;;  %v2929_v29 = vand.u32 4294901760, %v9150_v57 }
 0x3c1   :  { %7020 = vmatpush1.bf16.msra.mxu1 %v7019_v48 }
 0x3c2   :  { %7022 = vmatprep.subr.bf16.mxu1 %v7021_v51  ;;  %v9177_v51 = vsub.f32 %v9145_v43, %v2926_v25 }
 0x3c4   :  { %v10324_v0 = vand.u32 4294901760, %v9177_v51 }
 0x3c5   :  { %7024 = vmatpush1.bf16.msra.mxu1 %v7023_v24  ;;  %v9192_v24 = vsub.f32 %v9150_v57, %v2929_v29 }
 0x3c6   :  { %7026 = vmatprep.subr.bf16.mxu1 %v7025_v14  ;;  %v2983_v14 = vand.u32 4294901760, %v9187_v20 }
 0x3c7   :  { %v10323_v63 = vand.u32 4294901760, %v9192_v24 }
 0x3c8   :  { %v9222_v9 = vsub.f32 %v9187_v20, %v2983_v14 }
 0x3c9   :  { %7028 = vmatpush1.bf16.msra.mxu1 %v7027_v22  ;;  %v9217_v22 = vsub.f32 %v9182_v47, %v2980_v5  ;;  %v7203_v30 = vpack.c.bf16 %v10323_v63, %v10324_v0  ;;  %v9380_v0 = vpack.c.bf16 %v2935_v4, %v2932_v55 }
 0x3ca   :  { %7030 = vmatprep.subr.bf16.mxu1 %v7029_v13  ;;  %v9242_v13 = vld [vmem:[%s10205_s9 + $0xb8] sm:$0xff]  ;;  %v10319_v52 = vand.u32 4294901760, %v9222_v9 }
 0x3cb   :  { %v10322_v2 = vand.u32 4294901760, %v9217_v22  ;;  %v2989_v31 = vand.u32 4294901760, %v9242_v13  ;;  %10569 = vst [vmem:[#allocation19_spill] sm:$0xff] %v9380_v0 }
 0x3cd   :  { %7032 = vmatpush1.bf16.msra.mxu1 %v7031_v60  ;;  %v9254_v60 = vld [vmem:[%s10205_s9 + $0x30] sm:$0xff]  ;;  %v9276_v17 = vsub.f32 %v9242_v13, %v2989_v31 }
 0x3ce   :  { %7034 = vmatprep.subr.bf16.mxu1 %v7033_v45  ;;  %v10317_v45 = vand.u32 4294901760, %v9232_v49 }
 0x3d1   :  { %7036 = vmatpush1.bf16.msra.mxu1 %v7035_v54  ;;  %v2938_v54 = vand.u32 4294901760, %v9254_v60 }
 0x3d2   :  { %7038 = vmatprep.subr.bf16.mxu1 %v10503_v44  ;;  %v2897_v44 = vld [vmem:[%s10205_s9 + $0x88] sm:$0xff] }
 0x3d4   :  { %2758 = vmatmul.mubr.f32.vlgmr.msra.gmra.mrb[10].mxu1 %v8990_v15 }
 0x3d5   :  { %7040 = vmatpush1.bf16.msra.mxu1 %v10504_v12  ;;  %2860 = vmatprep.mubr.f32.mxu1 %v10423_v28  ;;  %v2968_v12 = vand.u32 4294901760, %v2896_v53 }
 0x3d6   :  { %7042 = vmatprep.subr.bf16.mxu1 %v10505_v56  ;;  %v2971_v56 = vand.u32 4294901760, %v2897_v44 }
 0x3d8   :  { %v9261_v38 = vpack.c.bf16 %v2971_v56, %v2968_v12 }
 0x3d9   :  { %7044 = vmatpush1.bf16.msra.mxu1 %v10506_v1  ;;  %v2880_v1 = vld [vmem:[%s10205_s9] sm:$0xff] }
 0x3da   :  { %7046 = vmatprep.subr.bf16.mxu1 %v10507_v16  ;;  %v2881_v16 = vld [vmem:[%s10205_s9 + $0x8] sm:$0xff]  ;;  %10564 = vst [vmem:[#allocation11_spill] sm:$0xff] %v9261_v38  ;;  %7070 = vmatprep.subr.bf16.mxu0 %v9261_v38 }
 0x3dd   :  { %7048 = vmatpush1.bf16.msra.mxu1 %v10508_v39  ;;  %v2920_v39 = vand.u32 4294901760, %v2880_v1 }
 0x3de   :  { %7050 = vmatprep.subr.bf16.mxu1 %v10509_v42  ;;  %v9120_v42 = vsub.f32 %v2896_v53, %v2968_v12  ;;  %v7205_v53 = vpack.c.bf16 %v10319_v52, %v10322_v2  ;;  %v2941_v12 = vand.u32 4294901760, %v9259_v3  ;;  %v9331_v52 = vpack.c.bf16 %v2929_v29, %v2926_v25  ;;  %v2906_v29 = vld [vmem:[%s10205_s9 + $0xd0] sm:$0xff] }
 0x3e0   :  { %10567 = vst [vmem:[#allocation12_spill] sm:$0xff] %v9331_v52  ;;  %v9426_v13 = vpack.c.bf16 %v2941_v12, %v2938_v54 }
 0x3e1   :  { %7052 = vmatpush1.bf16.msra.mxu1 %v10510_v27  ;;  %v9122_v27 = vsub.f32 %v2897_v44, %v2971_v56  ;;  %v7207_v44 = vpack.c.bf16 %v10317_v45, %v10318_v26  ;;  %v9292_v56 = vld [vmem:[%s10205_s9 + $0xc0] sm:$0xff] }
 0x3e2   :  { %7054 = vmatprep.subr.bf16.mxu1 %v10511_v18  ;;  %v9124_v18 = vsub.f32 %v2880_v1, %v2920_v39  ;;  %v9297_v1 = vld [vmem:[%s10205_s9 + $0xc8] sm:$0xff]  ;;  %v2992_v57 = vand.u32 4294901760, %v9292_v56  ;;  %10571 = vst [vmem:[#allocation20_spill] sm:$0xff] %v9426_v13 }
 0x3e3   :  { %v2995_v45 = vand.u32 4294901760, %v9297_v1 }
 0x3e4   :  { %v10336_v61 = vand.u32 4294901760, %v9124_v18 }
 0x3e5   :  { %7056 = vmatpush1.bf16.msra.mxu1 %v10512_v46 }
 0x3e6   :  { %7058 = vmatprep.subr.bf16.mxu1 %v10513_v34  ;;  %v9131_v34 = vld [vmem:[%s10205_s9 + $0x90] sm:$0xff] }
 0x3e9   :  { %7060 = vmatpush1.bf16.msra.mxu1 %v10514_v19  ;;  %v9136_v19 = vld [vmem:[%s10205_s9 + $0x98] sm:$0xff] }
 0x3ea   :  { %7062 = vmatprep.subr.bf16.mxu1 %v10515_v7  ;;  %v10338_v7 = vand.u32 4294901760, %v9120_v42 }
 0x3ed   :  { %7064 = vmatpush1.bf16.msra.mxu1 %v10516_v11  ;;  %v10337_v11 = vand.u32 4294901760, %v9122_v27 }
 0x3ee   :  { %7066 = vmatprep.subr.bf16.mxu1 %v10517_v40  ;;  %v2974_v40 = vand.u32 4294901760, %v9131_v34 }
 0x3ef   :  { %v7197_v21 = vpack.c.bf16 %v10337_v11, %v10338_v7 }
 0x3f0   :  { %v9162_v8 = vsub.f32 %v9131_v34, %v2974_v40 }
 0x3f1   :  { %7068 = vmatpush1.bf16.msra.mxu1 %v10520_v33  ;;  %v2977_v33 = vand.u32 4294901760, %v9136_v19 }
 0x3f2   :  { %7198 = vmatprep.subr.bf16.mxu1 %v7197_v21  ;;  %v10330_v32 = vand.u32 4294901760, %v9162_v8  ;;  %v9311_v21 = vld [vmem:[%s10205_s9 + $0x40] sm:$0xff] }
 0x3f3   :  { %v9167_v48 = vsub.f32 %v9136_v19, %v2977_v33  ;;  %v2944_v26 = vand.u32 4294901760, %v9311_v21 }
 0x3f4   :  { %2862 = vmatmul.mubr.f32.vlgmr.msra.gmra.mrb[10].mxu1 %v8990_v15  ;;  %v2923_v15 = vand.u32 4294901760, %v2881_v16 }
 0x3f5   :  { %v10325_v10 = vand.u32 4294901760, %v9167_v48  ;;  %v9348_v25 = vsub.f32 %v9311_v21, %v2944_v26  ;;  %v2890_v21 = vld [vmem:[%s10205_s9 + $0x50] sm:$0xff] }
 0x3f6   :  { %v9126_v46 = vsub.f32 %v2881_v16, %v2923_v15  ;;  %v9266_v50 = vpack.c.bf16 %v2923_v15, %v2920_v39  ;;  %v10321_v16 = vand.u32 4294901760, %v9271_v36  ;;  %v10320_v39 = vand.u32 4294901760, %v9276_v17 }
 0x3f7   :  { %v7201_v37 = vpack.c.bf16 %v10325_v10, %v10330_v32  ;;  %v9305_v15 = vsub.f32 %v9254_v60, %v2938_v54  ;;  %v10334_v63 = vand.u32 4294901760, %v9348_v25  ;;  %v2893_v32 = vld [vmem:[%s10205_s9 + $0x68] sm:$0xff]  ;;  %v2911_v54 = vld [vmem:[%s10205_s9 + $0xf8] sm:$0xff] }
 0x3f8   :  { %v10335_v41 = vand.u32 4294901760, %v9126_v46  ;;  %10565 = vst [vmem:[#allocation16_spill] sm:$0xff] %v9266_v50  ;;  %7072 = vmatpush3.bf16.msra.mxu0 %v9266_v50  ;;  %v7209_v34 = vpack.c.bf16 %v10320_v39, %v10321_v16  ;;  %v2891_v39 = vld [vmem:[%s10205_s9 + $0x58] sm:$0xff] }
 0x3f9   :  { %v10329_v19 = vand.u32 4294901760, %v9305_v15  ;;  %v2953_v23 = vand.u32 4294901760, %v2891_v39 }
 0x3fa   :  { %v7199_v59 = vpack.c.bf16 %v10335_v41, %v10336_v61  ;;  %v3013_v61 = vand.u32 4294901760, %v2911_v54 }
 0x3fc   :  { %7200 = vmatpush3.bf16.msra.mxu1 %v7199_v59  ;;  %v9316_v59 = vld [vmem:[%s10205_s9 + $0x48] sm:$0xff] }
 0x3fd   :  { %7202 = vmatprep.subr.bf16.mxu1 %v7201_v37  ;;  %v9322_v37 = vpack.c.bf16 %v2977_v33, %v2974_v40  ;;  %v9339_v40 = vsub.f32 %v9292_v56, %v2992_v57  ;;  %v2947_v43 = vand.u32 4294901760, %v9316_v59  ;;  %v2998_v56 = vand.u32 4294901760, %v2906_v29 }
 0x3ff   :  { %10566 = vst [vmem:[#allocation17_spill] sm:$0xff] %v9322_v37  ;;  %7074 = vmatprep.subr.bf16.mxu0 %v9322_v37  ;;  %v9383_v10 = vsub.f32 %v9316_v59, %v2947_v43  ;;  %v3004_v59 = vand.u32 4294901760, %v2908_v6 }
 0x400   :  { %7204 = vmatpush3.bf16.msra.mxu1 %v7203_v30  ;;  %v9325_v30 = vsub.f32 %v9259_v3, %v2941_v12  ;;  %v9344_v3 = vsub.f32 %v9297_v1, %v2995_v45  ;;  %7076 = vmatpush3.bf16.msra.mxu0 %v9331_v52 }
 0x401   :  { %7206 = vmatprep.subr.bf16.mxu1 %v7205_v53  ;;  %v2907_v53 = vld [vmem:[%s10205_s9 + $0xd8] sm:$0xff]  ;;  %v10333_v55 = vand.u32 4294901760, %v9383_v10  ;;  %v9440_v60 = vsub.f32 %v2908_v6, %v3004_v59 }
 0x402   :  { %v10326_v33 = vand.u32 4294901760, %v9325_v30  ;;  %v3001_v1 = vand.u32 4294901760, %v2907_v53  ;;  %v10327_v2 = vand.u32 4294901760, %v9344_v3  ;;  %v2895_v6 = vld [vmem:[%s10205_s9 + $0x78] sm:$0xff] }
 0x403   :  { %v7215_v62 = vpack.c.bf16 %v10333_v55, %v10334_v63 }
 0x404   :  { %7208 = vmatpush3.bf16.msra.mxu1 %v7207_v44  ;;  %v10328_v44 = vand.u32 4294901760, %v9339_v40  ;;  %v7211_v16 = vpack.c.bf16 %v10326_v33, %v10329_v19  ;;  %v9385_v33 = vsub.f32 %v2906_v29, %v2998_v56  ;;  %v9387_v47 = vsub.f32 %v2907_v53, %v3001_v1  ;;  %v2892_v19 = vld [vmem:[%s10205_s9 + $0x60] sm:$0xff] }
 0x405   :  { %7210 = vmatprep.subr.bf16.mxu1 %v7209_v34  ;;  %v9372_v34 = vpack.c.bf16 %v2983_v14, %v2980_v5  ;;  %v2950_v5 = vand.u32 4294901760, %v2890_v21  ;;  %v2909_v14 = vld [vmem:[%s10205_s9 + $0xe8] sm:$0xff]  ;;  %v9408_v29 = vpack.c.bf16 %v2989_v31, %v2986_v58  ;;  %v9432_v31 = vpack.c.bf16 %v2995_v45, %v2992_v57 }
 0x406   :  { %v7213_v20 = vpack.c.bf16 %v10327_v2, %v10328_v44  ;;  %v10332_v4 = vand.u32 4294901760, %v9385_v33  ;;  %v9412_v2 = vsub.f32 %v2891_v39, %v2953_v23  ;;  %v3007_v44 = vand.u32 4294901760, %v2909_v14  ;;  %v2910_v39 = vld [vmem:[%s10205_s9 + $0xf0] sm:$0xff] }
 0x407   :  { %10568 = vst [vmem:[#allocation18_spill] sm:$0xff] %v9372_v34  ;;  %7078 = vmatprep.subr.bf16.mxu0 %v9372_v34  ;;  %10570 = vst [vmem:[#allocation13_spill] sm:$0xff] %v9408_v29  ;;  %v9410_v53 = vsub.f32 %v2890_v21, %v2950_v5  ;;  %v9446_v45 = vpack.c.bf16 %v2947_v43, %v2944_v26  ;;  %v2956_v57 = vand.u32 4294901760, %v2892_v19  ;;  %v10341_v26 = vand.u32 4294901760, %v9440_v60 }
 0x408   :  { %7212 = vmatpush3.bf16.msra.mxu1 %v7211_v16  ;;  %7080 = vmatpush3.bf16.msra.mxu0 %v9380_v0  ;;  %v10331_v16 = vand.u32 4294901760, %v9387_v47  ;;  %10572 = vst [vmem:[#allocation21_spill] sm:$0xff] %v9432_v31  ;;  %v9448_v12 = vsub.f32 %v2909_v14, %v3007_v44  ;;  %v9462_v43 = vpack.c.bf16 %v3001_v1, %v2998_v56  ;;  %v3010_v14 = vand.u32 4294901760, %v2910_v39 }
 0x409   :  { %7214 = vmatprep.subr.bf16.mxu1 %v7213_v20  ;;  %7082 = vmatprep.subr.bf16.mxu0 %v9408_v29  ;;  %v10342_v21 = vand.u32 4294901760, %v9410_v53  ;;  %v10339_v20 = vand.u32 4294901760, %v9412_v2  ;;  %10573 = vst [vmem:[#allocation14_spill] sm:$0xff] %v9446_v45  ;;  %v9465_v63 = vsub.f32 %v2892_v19, %v2956_v57  ;;  %v9480_v1 = vsub.f32 %v2911_v54, %v3013_v61 }
 0x40a   :  { %v7217_v58 = vpack.c.bf16 %v10331_v16, %v10332_v4  ;;  %v2959_v16 = vand.u32 4294901760, %v2893_v32  ;;  %v2894_v4 = vld [vmem:[%s10205_s9 + $0x70] sm:$0xff]  ;;  %10574 = vst [vmem:[#allocation15_spill] sm:$0xff] %v9462_v43  ;;  %v10340_v55 = vand.u32 4294901760, %v9448_v12  ;;  %v9471_v11 = vsub.f32 %v2910_v39, %v3010_v14 }
 0x40b   :  { %v2962_v7 = vand.u32 4294901760, %v2894_v4  ;;  %v10348_v19 = vand.u32 4294901760, %v9465_v63  ;;  %10577 = vst [vmem:[#allocation32_spill] sm:$0xff] %v9480_v1 }
 0x40c   :  { %7216 = vmatpush3.bf16.msra.mxu1 %v7215_v62  ;;  %7084 = vmatpush3.bf16.msra.mxu0 %v9426_v13  ;;  %v7219_v62 = vpack.c.bf16 %v10339_v20, %v10342_v21  ;;  %v9467_v41 = vsub.f32 %v2893_v32, %v2959_v16  ;;  %10576 = vst [vmem:[#allocation22_spill] sm:$0xff] %v9471_v11  ;;  %v2965_v20 = vand.u32 4294901760, %v2895_v6 }
 0x40d   :  { %7218 = vmatprep.subr.bf16.mxu1 %v7217_v58  ;;  %7086 = vmatprep.subr.bf16.mxu0 %v9432_v31  ;;  %v9469_v58 = vpack.c.bf16 %v2953_v23, %v2950_v5  ;;  %v7221_v56 = vpack.c.bf16 %v10340_v55, %v10341_v26  ;;  %v10344_v5 = vand.u32 4294901760, %v9471_v11  ;;  %v9484_v23 = vsub.f32 %v2894_v4, %v2962_v7 }
 0x40e   :  { %v10347_v32 = vand.u32 4294901760, %v9467_v41  ;;  %v9486_v39 = vsub.f32 %v2895_v6, %v2965_v20  ;;  %v10343_v26 = vand.u32 4294901760, %v9480_v1  ;;  %v9512_v6 = vpack.c.bf16 %v2965_v20, %v2962_v7 }
 0x40f   :  { %10575 = vst [vmem:[#allocation23_spill] sm:$0xff] %v9469_v58  ;;  %10578 = vst [vmem:[#allocation36_spill] sm:$0xff] %v9484_v23  ;;  %v10346_v54 = vand.u32 4294901760, %v9484_v23 }
 0x410   :  { %7220 = vmatpush3.bf16.msra.mxu1 %v7219_v62  ;;  %7088 = vmatpush3.bf16.msra.mxu0 %v9446_v45  ;;  %v9488_v62 = vpack.c.bf16 %v3007_v44, %v3004_v59  ;;  %v7223_v55 = vpack.c.bf16 %v10347_v32, %v10348_v19  ;;  %v10345_v21 = vand.u32 4294901760, %v9486_v39  ;;  %v7225_v44 = vpack.c.bf16 %v10343_v26, %v10344_v5 }
 0x411   :  { %7090 = vmatprep.subr.bf16.mxu0 %v9462_v43  ;;  %7222 = vmatprep.subr.bf16.mxu1 %v7221_v56  ;;  %v9507_v59 = vpack.c.bf16 %v2959_v16, %v2956_v57  ;;  %10582 = vst [vmem:[#allocation26_spill] sm:$0xff] %v9512_v6  ;;  %v10583_v56 = vand.u32 4294901760, %v9120_v42  ;;  %v10584_v5 = vand.u32 4294901760, %v9122_v27  ;;  %v10586_v16 = vand.u32 4294901760, %v9124_v18 }
 0x412   :  { %10579 = vst [vmem:[#allocation38_spill] sm:$0xff] %v9488_v62  ;;  %v7227_v4 = vpack.c.bf16 %v10345_v21, %v10346_v54  ;;  %v10585_v54 = vmov 0.0|0.0   ;;  %v10588_v32 = vand.u32 4294901760, %v9162_v8 }
 0x413   :  { %10580 = vst [vmem:[#allocation25_spill] sm:$0xff] %v9507_v59  ;;  %v3147_v26 = vsub.f32 %v9120_v42, %v10583_v56  ;;  %v3154_v21 = vsub.f32 %v9122_v27, %v10584_v5  ;;  %v3035_v57 = vsub.f32 %v9124_v18, %v10586_v16 }
 0x414   :  { %7224 = vmatpush3.bf16.msra.mxu1 %v7223_v55  ;;  %7092 = vmatpush3.bf16.msra.mxu0 %v9469_v58  ;;  %v9510_v55 = vpack.c.bf16 %v3013_v61, %v3010_v14  ;;  %v10587_v61 = vand.u32 4294901760, %v9126_v46  ;;  %v3161_v19 = vsub.f32 %v9162_v8, %v10588_v32  ;;  %v10592_v32 = vand.u32 4294901760, %v9217_v22 }
 0x415   :  { %7094 = vmatprep.subr.bf16.mxu0 %v9488_v62  ;;  %7226 = vmatprep.subr.bf16.mxu1 %v7225_v44  ;;  %v3148_v20 = vand.u32 4294901760, %v3147_v26  ;;  %v3155_v14 = vand.u32 4294901760, %v3154_v21  ;;  %v3036_v44 = vand.u32 4294901760, %v3035_v57  ;;  %v10591_v26 = vand.u32 4294901760, %v9192_v24 }
 0x416   :  { %10581 = vst [vmem:[#allocation24_spill] sm:$0xff] %v9510_v55  ;;  %v3042_v7 = vsub.f32 %v9126_v46, %v10587_v61  ;;  %v10590_v61 = vand.u32 4294901760, %v9177_v51 }
 0x417   :  { %v7101_v56 = vpack.c.bf16 %v3155_v14, %v3148_v20  ;;  %v3056_v57 = vsub.f32 %v9192_v24, %v10591_v26 }
 0x418   :  { %7228 = vmatpush3.bf16.msra.mxu1 %v7227_v4  ;;  %7096 = vmatpush3.bf16.msra.mxu0 %v9507_v59  ;;  %v3043_v4 = vand.u32 4294901760, %v3042_v7  ;;  %v3049_v21 = vsub.f32 %v9177_v51, %v10590_v61  ;;  %v3162_v7 = vand.u32 4294901760, %v3161_v19  ;;  %v10594_v61 = vand.u32 4294901760, %v9227_v35 }
 0x419   :  { %7261 = vmatprep.subr.bf16.mxu1 %v10585_v54  ;;  %7098 = vmatprep.subr.bf16.mxu0 %v9510_v55  ;;  %v10589_v54 = vand.u32 4294901760, %v9167_v48  ;;  %v10595_v19 = vand.u32 4294901760, %v9232_v49 }
 0x41a   :  { %v9529_v5 = vpack.c.bf16 %v3043_v4, %v3036_v44  ;;  %v3050_v14 = vand.u32 4294901760, %v3049_v21  ;;  %v3057_v44 = vand.u32 4294901760, %v3056_v57  ;;  %v3063_v26 = vsub.f32 %v9227_v35, %v10594_v61 }
 0x41b   :  { %v3168_v16 = vsub.f32 %v9167_v48, %v10589_v54  ;;  %v10593_v54 = vand.u32 4294901760, %v9222_v9  ;;  %v10598_v61 = vand.u32 4294901760, %v9305_v15 }
 0x41c   :  { %7100 = vmatpush3.bf16.msra.mxu0 %v9512_v6  ;;  %v3175_v6 = vsub.f32 %v9217_v22, %v10592_v32  ;;  %v9551_v55 = vpack.c.bf16 %v3057_v44, %v3050_v14  ;;  %v10596_v32 = vand.u32 4294901760, %v9271_v36  ;;  %v10597_v14 = vand.u32 4294901760, %v9276_v17 }
 0x41d   :  { %7102 = vmatprep.subr.bf16.mxu0 %v7101_v56  ;;  %v3169_v20 = vand.u32 4294901760, %v3168_v16  ;;  %v3182_v56 = vsub.f32 %v9222_v9, %v10593_v54  ;;  %v3070_v16 = vsub.f32 %v9232_v49, %v10595_v19  ;;  %v3077_v19 = vsub.f32 %v9305_v15, %v10598_v61 }
 0x41e   :  { %v3176_v21 = vand.u32 4294901760, %v3175_v6  ;;  %v3189_v54 = vsub.f32 %v9271_v36, %v10596_v32  ;;  %v3196_v44 = vsub.f32 %v9276_v17, %v10597_v14  ;;  %v10599_v6 = vand.u32 4294901760, %v9325_v30 }
 0x41f   :  { %v9543_v4 = vpack.c.bf16 %v3169_v20, %v3162_v7  ;;  %v3183_v57 = vand.u32 4294901760, %v3182_v56  ;;  %v3064_v7 = vand.u32 4294901760, %v3063_v26  ;;  %v3071_v20 = vand.u32 4294901760, %v3070_v16 }
 0x420   :  { %v3084_v56 = vsub.f32 %v9325_v30, %v10599_v6  ;;  %v3190_v26 = vand.u32 4294901760, %v3189_v54  ;;  %v3197_v16 = vand.u32 4294901760, %v3196_v44  ;;  %v10600_v32 = vand.u32 4294901760, %v9339_v40 }
 0x421   :  { %v9559_v59 = vpack.c.bf16 %v3183_v57, %v3176_v21  ;;  %v9567_v62 = vpack.c.bf16 %v3071_v20, %v3064_v7  ;;  %v3078_v21 = vand.u32 4294901760, %v3077_v19  ;;  %v10601_v7 = vand.u32 4294901760, %v9344_v3 }
 0x422   :  { %v3085_v57 = vand.u32 4294901760, %v3084_v56  ;;  %v9575_v58 = vpack.c.bf16 %v3197_v16, %v3190_v26  ;;  %v3203_v14 = vsub.f32 %v9339_v40, %v10600_v32  ;;  %v10602_v61 = vand.u32 4294901760, %v9348_v25 }
 0x423   :  { %v3210_v20 = vsub.f32 %v9344_v3, %v10601_v7  ;;  %v10603_v54 = vand.u32 4294901760, %v9383_v10  ;;  %v10604_v32 = vand.u32 4294901760, %v9385_v33 }
 0x424   :  { %v9583_v43 = vpack.c.bf16 %v3085_v57, %v3078_v21  ;;  %v3091_v6 = vsub.f32 %v9348_v25, %v10602_v61  ;;  %v3204_v19 = vand.u32 4294901760, %v3203_v14  ;;  %v10605_v21 = vand.u32 4294901760, %v9387_v47 }
 0x425   :  { %v3098_v44 = vsub.f32 %v9383_v10, %v10603_v54  ;;  %v3211_v56 = vand.u32 4294901760, %v3210_v20  ;;  %v3217_v7 = vsub.f32 %v9385_v33, %v10604_v32  ;;  %v10606_v61 = vand.u32 4294901760, %v9410_v53 }
 0x426   :  { %v3092_v26 = vand.u32 4294901760, %v3091_v6  ;;  %v3224_v57 = vsub.f32 %v9387_v47, %v10605_v21  ;;  %v10607_v14 = vand.u32 4294901760, %v9412_v2  ;;  %v10608_v32 = vand.u32 4294901760, %v9440_v60 }
 0x427   :  { %v3099_v16 = vand.u32 4294901760, %v3098_v44  ;;  %v9591_v45 = vpack.c.bf16 %v3211_v56, %v3204_v19  ;;  %v3105_v54 = vsub.f32 %v9410_v53, %v10606_v61  ;;  %v3218_v6 = vand.u32 4294901760, %v3217_v7 }
 0x428   :  { %v3112_v20 = vsub.f32 %v9412_v2, %v10607_v14  ;;  %v3225_v44 = vand.u32 4294901760, %v3224_v57  ;;  %v3231_v21 = vsub.f32 %v9440_v60, %v10608_v32  ;;  %v10610_v61 = vand.u32 4294901760, %v9465_v63 }
 0x429   :  { %v9599_v31 = vpack.c.bf16 %v3099_v16, %v3092_v26  ;;  %v3106_v19 = vand.u32 4294901760, %v3105_v54  ;;  %v10609_v26 = vand.u32 4294901760, %v9448_v12  ;;  %v10611_v7 = vand.u32 4294901760, %v9467_v41 }
 0x42a   :  { %v3113_v56 = vand.u32 4294901760, %v3112_v20  ;;  %v9607_v13 = vpack.c.bf16 %v3225_v44, %v3218_v6  ;;  %v3119_v14 = vsub.f32 %v9465_v63, %v10610_v61  ;;  %v3232_v54 = vand.u32 4294901760, %v3231_v21 }
 0x42b   :  { %v3238_v16 = vsub.f32 %v9448_v12, %v10609_v26  ;;  %v3126_v57 = vsub.f32 %v9467_v41, %v10611_v7  ;;  %v10612_v32 = vand.u32 4294901760, %v9471_v11  ;;  %v10614_v61 = vand.u32 4294901760, %v9484_v23 }
 0x42c   :  { %v9615_v29 = vpack.c.bf16 %v3113_v56, %v3106_v19  ;;  %v3120_v6 = vand.u32 4294901760, %v3119_v14  ;;  %v10613_v19 = vand.u32 4294901760, %v9480_v1  ;;  %v10615_v7 = vand.u32 4294901760, %v9486_v39 }
 0x42d   :  { %v3239_v20 = vand.u32 4294901760, %v3238_v16  ;;  %v3127_v44 = vand.u32 4294901760, %v3126_v57  ;;  %v3245_v34 = vsub.f32 %v9471_v11, %v10612_v32  ;;  %v3133_v52 = vsub.f32 %v9484_v23, %v10614_v61 }
 0x42e   :  { %v3252_v56 = vsub.f32 %v9480_v1, %v10613_v19  ;;  %v3140_v21 = vsub.f32 %v9486_v39, %v10615_v7  ;;  %v2003_v32 = vlaneseq }
 0x42f   :  { %v7125_v0 = vpack.c.bf16 %v3239_v20, %v3232_v54  ;;  %v7127_v26 = vpack.c.bf16 %v3127_v44, %v3120_v6  ;;  %v3246_v16 = vand.u32 4294901760, %v3245_v34  ;;  %v3134_v57 = vand.u32 4294901760, %v3133_v52  ;;  %v2001_v6 = vld [vmem:[%s10204_s8] sm:$0x3]  ;;  %s7629_s8 = smov [#allocation7]  }
 0x430   :  { %v3253_v14 = vand.u32 4294901760, %v3252_v56  ;;  %v3141_v54 = vand.u32 4294901760, %v3140_v21  ;;  %v2004_v50 = vshrl.u32 %v2003_v32, 7  ;;  %s5015_s26 = sshll.u32 %s7629_s8, 4  ;;  %s5016_s26 = int_to_ptr.vmem [resolvable:$true] %s5015_s26 }
 0x431   :  { %s7594_s4 = scalar_lea.vmem %s5016_s26, 128  ;;  %p7599_p3 = scmp.lt.s32.totalorder %s5016_s26, %s5016_s26 }
 0x432   :  { %v7129_v20 = vpack.c.bf16 %v3253_v14, %v3246_v16  ;;  %v7131_v37 = vpack.c.bf16 %v3141_v54, %v3134_v57  ;;  %v2005_v38 = vsub.s32 0, %v2004_v50  ;;  %v2009_v44 = vsub.s32 1, %v2004_v50  ;;  %p7595_p2 = scmp.ne.s32.totalorder %s5016_s26, %s7594_s4  ;;  %p7600_p4 = scmp.lt.s32.totalorder %s7594_s4, %s7594_s4 }
 0x434   :  { %v2006_v19 = vrot.slane %v2001_v6, %v2005_v38  ;;  %v2010_v61 = vrot.slane %v2001_v6, %v2009_v44  ;;  %p7601_p5 = por %p7600_p4, %p7599_p3 }
 0x436   :  { %p7602_p6 = pnand %p7601_p5, %p7595_p2 }
 0x4c7   :  { %v2863_v23 = vpop.f32.mrb[10].mxu1 }
 0x4c8   :  { %v7478_v1 = vadd.f32 %v2863_v23, %v2006_v19  ;;  %v2865_v11 = vpop.f32.mrb[11].mxu1 }
 0x4c9   :  { %v7479_v7 = vadd.f32 %v2865_v11, %v2010_v61 }
 0x4ca   :  { %v5029_v34 = vmul.f32 -1.442695, %v7478_v1 }
 0x4cb   :  { %v5030_v56 = vmul.f32 -1.442695, %v7479_v7 }
 0x4cc   :  { %7538 = vpow2.f32 %v5029_v34 }
 0x4cd   :  { %7540 = vpow2.f32 %v5030_v56 }
 0x4d6   :  { %v7539_v52 = vpop.eup %7538 }
 0x4d7   :  { %v7541_v21 = vpop.eup %7540  ;;  %v2874_v16 = vadd.f32 1.0, %v7539_v52  ;;  %v3789_v52 = vld [vmem:[%s10207_s11 + $0x10] sm:$0xff] }
 0x4d8   :  { %v2875_v14 = vadd.f32 1.0, %v7541_v21  ;;  %v3790_v21 = vld [vmem:[%s10207_s11 + $0x18] sm:$0xff] }
 0x4d9   :  { %7542 = vrcp.f32 %v2874_v16  ;;  %v3817_v16 = vand.u32 4294901760, %v3789_v52 }
 0x4da   :  { %7544 = vrcp.f32 %v2875_v14  ;;  %v3820_v14 = vand.u32 4294901760, %v3790_v21 }
 0x4e3   :  { %v7543_v57 = vpop.eup %7542 }
 0x4e4   :  { %v7545_v54 = vpop.eup %7544  ;;  %v9638_v32 = vand.u32 4294901760, %v7543_v57 }
 0x4e5   :  { %v9640_v38 = vand.u32 4294901760, %v7545_v54 }
 0x4e6   :  { %v9643_v50 = vsub.f32 %v7543_v57, %v9638_v32  ;;  %v9762_v57 = vpack.c.bf16 %v3820_v14, %v3817_v16 }
 0x4e7   :  { %3670 = vmatprep.mubr.f32.mxu1 %v9640_v38  ;;  %v9647_v11 = vsub.f32 %v7545_v54, %v9640_v38  ;;  %v3791_v54 = vld [vmem:[%s10207_s11 + $0x20] sm:$0xff] }
 0x4e8   :  { %3672 = vmatmul.mubr.f32.vlgmr.msra.gmra.mrb[12].mxu1 %v9638_v32  ;;  %v3023_v1 = vand.u32 4294901760, %v9643_v50 }
 0x4e9   :  { %v3017_v23 = vand.u32 4294901760, %v9647_v11  ;;  %6225 = vmatprep.mubr.msk.f32.mxu1 %vm7627_vm0, %v10423_v28 }
 0x4ea   :  { %v3024_v6 = vsub.f32 %v9643_v50, %v3023_v1 }
 0x4eb   :  { %v3018_v44 = vsub.f32 %v9647_v11, %v3017_v23 }
 0x4ec   :  { %v3025_v61 = vand.u32 4294901760, %v3024_v6 }
 0x4ed   :  { %v3019_v19 = vand.u32 4294901760, %v3018_v44 }
 0x4ef   :  { %3020 = vmatprep.mubr.f32.mxu0 %v3019_v19 }
 0x4f0   :  { %3026 = vmatmul.mubr.f32.vlgmr.msra.gmra.mrb[16].mxu0 %v3025_v61  ;;  %v3795_v61 = vld [vmem:[%s10207_s11 + $0x40] sm:$0xff] }
 0x4f1   :  { %7104 = vmatpush3.bf16.msra.mxu0 %v9529_v5  ;;  %3256 = vmatprep.mubr.f32.mxu0 %v9640_v38 }
 0x4f2   :  { %7106 = vmatprep.subr.bf16.mxu0 %v9543_v4 }
 0x4f5   :  { %7108 = vmatpush3.bf16.msra.mxu0 %v9551_v55 }
 0x4f6   :  { %7110 = vmatprep.subr.bf16.mxu0 %v9559_v59  ;;  %v7133_v59 = vpack.c.bf16 %v9122_v27, %v9120_v42  ;;  %v7141_v42 = vpack.c.bf16 %v9222_v9, %v9217_v22  ;;  %v7143_v27 = vpack.c.bf16 %v9232_v49, %v9227_v35  ;;  %v7157_v22 = vpack.c.bf16 %v9448_v12, %v9440_v60  ;;  %v10616_v35 = vld [vmem:[#allocation22_spill] sm:$0xff]  ;;  %v10617_v49 = vld [vmem:[#allocation32_spill] sm:$0xff] }
 0x4f7   :  { %v7159_v9 = vpack.c.bf16 %v9467_v41, %v9465_v63  ;;  %v10622_v41 = vld [vmem:[#allocation12_spill] sm:$0xff]  ;;  %v10623_v63 = vld [vmem:[#allocation18_spill] sm:$0xff]  ;;  %v10635_v12 = vmov 0.0|0.0  }
 0x4f8   :  { %v10634_v60 = vld [vmem:[#allocation26_spill] sm:$0xff] }
 0x4f9   :  { %7112 = vmatpush3.bf16.msra.mxu0 %v9567_v62 }
 0x4fa   :  { %7114 = vmatprep.subr.bf16.mxu0 %v9575_v58  ;;  %v7135_v58 = vpack.c.bf16 %v9126_v46, %v9124_v18  ;;  %v7145_v18 = vpack.c.bf16 %v9276_v17, %v9271_v36  ;;  %v7147_v46 = vpack.c.bf16 %v9325_v30, %v9305_v15  ;;  %v10618_v36 = vld [vmem:[#allocation36_spill] sm:$0xff]  ;;  %v10619_v15 = vld [vmem:[#allocation11_spill] sm:$0xff] }
 0x4fb   :  { %v7163_v17 = vpack.c.bf16 %v9486_v39, %v10618_v36  ;;  %v10624_v30 = vld [vmem:[#allocation19_spill] sm:$0xff] }
 0x4fd   :  { %7116 = vmatpush3.bf16.msra.mxu0 %v9583_v43 }
 0x4fe   :  { %7118 = vmatprep.subr.bf16.mxu0 %v9591_v45  ;;  %v7137_v45 = vpack.c.bf16 %v9167_v48, %v9162_v8  ;;  %v7149_v8 = vpack.c.bf16 %v9344_v3, %v9339_v40  ;;  %v7151_v48 = vpack.c.bf16 %v9383_v10, %v9348_v25  ;;  %v7161_v10 = vpack.c.bf16 %v10617_v49, %v10616_v35  ;;  %v10625_v40 = vld [vmem:[#allocation13_spill] sm:$0xff]  ;;  %v10628_v25 = vld [vmem:[#allocation14_spill] sm:$0xff] }
 0x4ff   :  { %v10627_v3 = vld [vmem:[#allocation21_spill] sm:$0xff] }
 0x501   :  { %7120 = vmatpush3.bf16.msra.mxu0 %v9599_v31  ;;  %v10633_v31 = vld [vmem:[#allocation24_spill] sm:$0xff] }
 0x502   :  { %7122 = vmatprep.subr.bf16.mxu0 %v9607_v13  ;;  %v10632_v13 = vld [vmem:[#allocation25_spill] sm:$0xff] }
 0x505   :  { %7124 = vmatpush3.bf16.msra.mxu0 %v9615_v29  ;;  %v10630_v29 = vld [vmem:[#allocation23_spill] sm:$0xff] }
 0x506   :  { %7126 = vmatprep.subr.bf16.mxu0 %v7125_v0  ;;  %v7139_v0 = vpack.c.bf16 %v9192_v24, %v9177_v51  ;;  %v7153_v51 = vpack.c.bf16 %v9387_v47, %v9385_v33  ;;  %v7155_v24 = vpack.c.bf16 %v9412_v2, %v9410_v53  ;;  %v10620_v2 = vld [vmem:[#allocation16_spill] sm:$0xff]  ;;  %v10629_v47 = vld [vmem:[#allocation15_spill] sm:$0xff]  ;;  %v10631_v53 = vld [vmem:[#allocation38_spill] sm:$0xff] }
 0x507   :  { %v10626_v33 = vld [vmem:[#allocation20_spill] sm:$0xff] }
 0x509   :  { %7128 = vmatpush3.bf16.msra.mxu0 %v7127_v26  ;;  %v3787_v26 = vld [vmem:[%s10207_s11] sm:$0xff] }
 0x50a   :  { %7130 = vmatprep.subr.bf16.mxu0 %v7129_v20  ;;  %v3788_v20 = vld [vmem:[%s10207_s11 + $0x8] sm:$0xff]  ;;  %v3811_v7 = vand.u32 4294901760, %v3787_v26 }
 0x50b   :  { %v3814_v34 = vand.u32 4294901760, %v3788_v20 }
 0x50d   :  { %7132 = vmatpush3.bf16.msra.mxu0 %v7131_v37  ;;  %v10621_v37 = vld [vmem:[#allocation17_spill] sm:$0xff]  ;;  %v9752_v56 = vpack.c.bf16 %v3814_v34, %v3811_v7  ;;  %v9817_v36 = vsub.f32 %v3788_v20, %v3814_v34 }
 0x50e   :  { %7134 = vmatprep.subr.bf16.mxu0 %v7133_v59  ;;  %v3796_v59 = vld [vmem:[%s10207_s11 + $0x48] sm:$0xff] }
 0x50f   :  { %7263 = vmatpush3.bf16.msra.mxu1 %v9752_v56 }
 0x510   :  { %3258 = vmatmul.mubr.f32.vlgmr.msra.gmra.mrb[18].mxu0 %v9638_v32  ;;  %7264 = vmatprep.subr.bf16.mxu1 %v10635_v12 }
 0x511   :  { %7136 = vmatpush3.bf16.msra.mxu0 %v7135_v58  ;;  %3393 = vmatprep.mubr.f32.mxu0 %v9647_v11  ;;  %v3835_v58 = vand.u32 4294901760, %v3795_v61 }
 0x512   :  { %7138 = vmatprep.subr.bf16.mxu0 %v7137_v45  ;;  %v3838_v45 = vand.u32 4294901760, %v3796_v59 }
 0x513   :  { %7266 = vmatpush3.bf16.msra.mxu1 %v9762_v57 }
 0x514   :  { %7267 = vmatprep.subr.bf16.mxu1 %v10635_v12 }
 0x515   :  { %7140 = vmatpush3.bf16.msra.mxu0 %v7139_v0  ;;  %v9792_v0 = vpack.c.bf16 %v3838_v45, %v3835_v58 }
 0x516   :  { %7142 = vmatprep.subr.bf16.mxu0 %v7141_v42  ;;  %v3797_v42 = vld [vmem:[%s10207_s11 + $0x50] sm:$0xff] }
 0x519   :  { %7144 = vmatpush3.bf16.msra.mxu0 %v7143_v27  ;;  %v3798_v27 = vld [vmem:[%s10207_s11 + $0x58] sm:$0xff] }
 0x51a   :  { %7146 = vmatprep.subr.bf16.mxu0 %v7145_v18  ;;  %v3841_v18 = vand.u32 4294901760, %v3797_v42 }
 0x51d   :  { %7148 = vmatpush3.bf16.msra.mxu0 %v7147_v46  ;;  %v3844_v46 = vand.u32 4294901760, %v3798_v27 }
 0x51e   :  { %7150 = vmatprep.subr.bf16.mxu0 %v7149_v8  ;;  %v5031_v8 = vld [vmem:[%s10206_s10] ss:$0 sm:$0xff] }
 0x521   :  { %7152 = vmatpush3.bf16.msra.mxu0 %v7151_v48  ;;  %v9805_v48 = vpack.c.bf16 %v3844_v46, %v3841_v18 }
 0x522   :  { %7154 = vmatprep.subr.bf16.mxu0 %v7153_v51  ;;  %v3799_v51 = vld [vmem:[%s10207_s11 + $0x60] sm:$0xff] }
 0x525   :  { %7156 = vmatpush3.bf16.msra.mxu0 %v7155_v24  ;;  %v3800_v24 = vld [vmem:[%s10207_s11 + $0x68] sm:$0xff] }
 0x526   :  { %7158 = vmatprep.subr.bf16.mxu0 %v7157_v22  ;;  %v3850_v35 = vand.u32 4294901760, %v3800_v24 }
 0x529   :  { %7160 = vmatpush3.bf16.msra.mxu0 %v7159_v9  ;;  %v3847_v9 = vand.u32 4294901760, %v3799_v51 }
 0x52a   :  { %7162 = vmatprep.subr.bf16.mxu0 %v7161_v10  ;;  %v9815_v10 = vsub.f32 %v3787_v26, %v3811_v7 }
 0x52d   :  { %7164 = vmatpush3.bf16.msra.mxu0 %v7163_v17  ;;  %v9819_v17 = vsub.f32 %v3789_v52, %v3817_v16 }
 0x52e   :  { %7166 = vmatprep.subr.bf16.mxu0 %v10619_v15 }
 0x530   :  { %3396 = vmatmul.mubr.f32.vlgmr.msra.gmra.mrb[20].mxu0 %v9643_v50 }
 0x531   :  { %7168 = vmatpush3.bf16.msra.mxu0 %v10620_v2  ;;  %3500 = vmatprep.mubr.f32.mxu0 %v3017_v23  ;;  %v3794_v23 = vld [vmem:[%s10207_s11 + $0x38] sm:$0xff] }
 0x532   :  { %7170 = vmatprep.subr.bf16.mxu0 %v10621_v37  ;;  %v3832_v44 = vand.u32 4294901760, %v3794_v23 }
 0x535   :  { %7172 = vmatpush3.bf16.msra.mxu0 %v10622_v41 }
 0x536   :  { %7174 = vmatprep.subr.bf16.mxu0 %v10623_v63 }
 0x539   :  { %7176 = vmatpush3.bf16.msra.mxu0 %v10624_v30 }
 0x53a   :  { %7178 = vmatprep.subr.bf16.mxu0 %v10625_v40 }
 0x53d   :  { %7180 = vmatpush3.bf16.msra.mxu0 %v10626_v33 }
 0x53e   :  { %7182 = vmatprep.subr.bf16.mxu0 %v10627_v3 }
 0x541   :  { %7184 = vmatpush3.bf16.msra.mxu0 %v10628_v25 }
 0x542   :  { %7186 = vmatprep.subr.bf16.mxu0 %v10629_v47 }
 0x545   :  { %7188 = vmatpush3.bf16.msra.mxu0 %v10630_v29 }
 0x546   :  { %7190 = vmatprep.subr.bf16.mxu0 %v10631_v53 }
 0x549   :  { %7192 = vmatpush3.bf16.msra.mxu0 %v10632_v13 }
 0x54a   :  { %7194 = vmatprep.subr.bf16.mxu0 %v10633_v31 }
 0x54d   :  { %7196 = vmatpush3.bf16.msra.mxu0 %v10634_v60 }
 0x54e   :  { %7230 = vmatprep.subr.bf16.mxu0 %v10619_v15  ;;  %v9821_v15 = vsub.f32 %v3790_v21, %v3820_v14  ;;  %v3918_v21 = vand.u32 4294901760, %v9819_v17 }
 0x550   :  { %3504 = vmatmul.mubr.f32.vlgmr.msra.gmra.mrb[22].mxu0 %v3023_v1  ;;  %v3793_v1 = vld [vmem:[%s10207_s11 + $0x30] sm:$0xff]  ;;  %v3925_v16 = vand.u32 4294901760, %v9821_v15 }
 0x551   :  { %7232 = vmatpush3.bf16.msra.mxu0 %v10620_v2  ;;  %3774 = vmatprep.mubr.f32.mxu0 %v9640_v38  ;;  %v3823_v38 = vand.u32 4294901760, %v3791_v54  ;;  %v3829_v6 = vand.u32 4294901760, %v3793_v1 }
 0x552   :  { %7234 = vmatprep.subr.bf16.mxu0 %v10621_v37 }
 0x553   :  { %v9782_v19 = vpack.c.bf16 %v3832_v44, %v3829_v6  ;;  %v9823_v37 = vsub.f32 %v3791_v54, %v3823_v38 }
 0x555   :  { %7236 = vmatpush3.bf16.msra.mxu0 %v10622_v41 }
 0x556   :  { %7238 = vmatprep.subr.bf16.mxu0 %v10623_v63  ;;  %v9827_v63 = vsub.f32 %v3793_v1, %v3829_v6  ;;  %v3932_v6 = vand.u32 4294901760, %v9823_v37 }
 0x559   :  { %7240 = vmatpush3.bf16.msra.mxu0 %v10624_v30  ;;  %v9829_v30 = vsub.f32 %v3794_v23, %v3832_v44 }
 0x55a   :  { %7242 = vmatprep.subr.bf16.mxu0 %v10625_v40  ;;  %v3801_v40 = vld [vmem:[%s10207_s11 + $0x70] sm:$0xff] }
 0x55d   :  { %7244 = vmatpush3.bf16.msra.mxu0 %v10626_v33  ;;  %v3802_v33 = vld [vmem:[%s10207_s11 + $0x78] sm:$0xff] }
 0x55e   :  { %7246 = vmatprep.subr.bf16.mxu0 %v10627_v3 }
 0x561   :  { %7248 = vmatpush3.bf16.msra.mxu0 %v10628_v25  ;;  %v9837_v25 = vsub.f32 %v3795_v61, %v3835_v58 }
 0x562   :  { %7250 = vmatprep.subr.bf16.mxu0 %v10629_v47  ;;  %v9839_v47 = vsub.f32 %v3796_v59, %v3838_v45  ;;  %v3933_v59 = vsub.f32 %v9823_v37, %v3932_v6 }
 0x564   :  { %v3934_v45 = vand.u32 4294901760, %v3933_v59 }
 0x565   :  { %7252 = vmatpush3.bf16.msra.mxu0 %v10630_v29  ;;  %v9841_v29 = vsub.f32 %v3797_v42, %v3841_v18  ;;  %v10393_v42 = vand.u32 4294901760, %v9827_v63 }
 0x566   :  { %7254 = vmatprep.subr.bf16.mxu0 %v10631_v53  ;;  %v9843_v53 = vsub.f32 %v3798_v27, %v3844_v46  ;;  %v10392_v27 = vand.u32 4294901760, %v9829_v30 }
 0x567   :  { %v3947_v46 = vsub.f32 %v9827_v63, %v10393_v42 }
 0x569   :  { %7256 = vmatpush3.bf16.msra.mxu0 %v10632_v13  ;;  %v9845_v13 = vpack.c.bf16 %v3850_v35, %v3847_v9 }
 0x56a   :  { %7258 = vmatprep.subr.bf16.mxu0 %v10633_v31  ;;  %v9847_v31 = vsub.f32 %v3799_v51, %v3847_v9  ;;  %v10391_v9 = vand.u32 4294901760, %v9837_v25 }
 0x56d   :  { %7260 = vmatpush3.bf16.msra.mxu0 %v10634_v60  ;;  %v9849_v60 = vsub.f32 %v3800_v24, %v3850_v35  ;;  %v3948_v24 = vand.u32 4294901760, %v3947_v46  ;;  %v10390_v35 = vand.u32 4294901760, %v9839_v47 }
 0x56e   :  { %7405 = vmatprep.subr.bf16.mxu0 %v10635_v12 }
 0x570   :  { %3776 = vmatmul.mubr.f32.vlgmr.msra.gmra.mrb[24].mxu0 %v9638_v32  ;;  %v3792_v32 = vld [vmem:[%s10207_s11 + $0x28] sm:$0xff] }
 0x571   :  { %6419 = vmatprep.mubr.msk.f32.mxu0 %vm7627_vm0, %v10423_v28  ;;  %v3826_v50 = vand.u32 4294901760, %v3792_v32 }
 0x573   :  { %v9772_v11 = vpack.c.bf16 %v3826_v50, %v3823_v38  ;;  %v9825_v41 = vsub.f32 %v3792_v32, %v3826_v50  ;;  %v3919_v32 = vsub.f32 %v9819_v17, %v3918_v21  ;;  %v3926_v38 = vsub.f32 %v9821_v15, %v3925_v16 }
 0x575   :  { %7269 = vmatpush3.bf16.msra.mxu1 %v9772_v11  ;;  %v3920_v1 = vand.u32 4294901760, %v3919_v32  ;;  %v3927_v23 = vand.u32 4294901760, %v3926_v38  ;;  %v3939_v44 = vand.u32 4294901760, %v9825_v41  ;;  %v10387_v38 = vand.u32 4294901760, %v9847_v31 }
 0x576   :  { %7270 = vmatprep.subr.bf16.mxu1 %v10635_v12 }
 0x577   :  { %v9883_v61 = vpack.c.bf16 %v3927_v23, %v3920_v1  ;;  %v3940_v58 = vsub.f32 %v9825_v41, %v3939_v44  ;;  %v10386_v1 = vand.u32 4294901760, %v9849_v60  ;;  %v3989_v59 = vsub.f32 %v9847_v31, %v10387_v38 }
 0x579   :  { %7272 = vmatpush3.bf16.msra.mxu1 %v9782_v19  ;;  %v3941_v18 = vand.u32 4294901760, %v3940_v58  ;;  %v3996_v58 = vsub.f32 %v9849_v60, %v10386_v1 }
 0x57a   :  { %7273 = vmatprep.subr.bf16.mxu1 %v10635_v12 }
 0x57b   :  { %v9899_v51 = vpack.c.bf16 %v3941_v18, %v3934_v45  ;;  %v3990_v45 = vand.u32 4294901760, %v3989_v59  ;;  %v3997_v18 = vand.u32 4294901760, %v3996_v58  ;;  %v7310_v59 = vpack.c.bf16 %v9817_v36, %v9815_v10 }
 0x57c   :  { %v7313_v58 = vpack.c.bf16 %v9821_v15, %v9819_v17  ;;  %v10637_v17 = vand.u32 4294901760, %v9829_v30 }
 0x57d   :  { %7275 = vmatpush3.bf16.msra.mxu1 %v9792_v0 }
 0x57e   :  { %7276 = vmatprep.subr.bf16.mxu1 %v10635_v12 }
 0x581   :  { %7278 = vmatpush3.bf16.msra.mxu1 %v9805_v48 }
 0x582   :  { %7279 = vmatprep.subr.bf16.mxu1 %v10635_v12 }
 0x585   :  { %7281 = vmatpush3.bf16.msra.mxu1 %v9845_v13 }
 0x586   :  { %7282 = vmatprep.subr.bf16.mxu1 %v10635_v12 }
 0x5bb   :  { %v5465_v43 = vpop.f32.mrb[12].mxu1 }
 0x5bc   :  { %v5466_v39 = vpop.f32.mrb[13].mxu1 }
 0x5bd   :  { %v9744_v62 = vadd.f32 %v5466_v39, %v5465_v43  ;;  %v3853_v39 = vand.u32 4294901760, %v3801_v40 }
 0x5bf   :  { %v9859_v20 = vsub.f32 %v3801_v40, %v3853_v39  ;;  %v3968_v40 = vsub.f32 %v9839_v47, %v10390_v35 }
 0x5c1   :  { %v10385_v46 = vand.u32 4294901760, %v9859_v20 }
 0x5c3   :  { %v5325_v55 = vpop.f32.mrb[16].mxu0 }
 0x5c4   :  { %v5326_v5 = vpop.f32.mrb[17].mxu0 }
 0x5c5   :  { %v5327_v4 = vadd.f32 %v5326_v5, %v5325_v55  ;;  %v3856_v55 = vand.u32 4294901760, %v3802_v33  ;;  %v3904_v5 = vand.u32 4294901760, %v9815_v10 }
 0x5c7   :  { %v3028_v22 = vadd.f32 %v5327_v4, %v5031_v8  ;;  %v3911_v4 = vand.u32 4294901760, %v9817_v36  ;;  %v9857_v26 = vpack.c.bf16 %v3856_v55, %v3853_v39  ;;  %v9861_v7 = vsub.f32 %v3802_v33, %v3856_v55 }
 0x5c8   :  { %v3905_v34 = vsub.f32 %v9815_v10, %v3904_v5  ;;  %v3954_v8 = vsub.f32 %v9829_v30, %v10392_v27  ;;  %v10389_v39 = vand.u32 4294901760, %v9841_v29  ;;  %v10388_v55 = vand.u32 4294901760, %v9843_v53 }
 0x5c9   :  { %v3912_v52 = vsub.f32 %v9817_v36, %v3911_v4  ;;  %7284 = vmatpush3.bf16.msra.mxu1 %v9857_v26  ;;  %v7364_v10 = vpack.c.bf16 %v3939_v44, %v3932_v6  ;;  %v10636_v36 = vand.u32 4294901760, %v9827_v63 }
 0x5ca   :  { %v3906_v14 = vand.u32 4294901760, %v3905_v34  ;;  %7285 = vmatprep.subr.bf16.mxu1 %v10635_v12 }
 0x5cb   :  { %v3913_v54 = vand.u32 4294901760, %v3912_v52  ;;  %v3975_v52 = vsub.f32 %v9841_v29, %v10389_v39  ;;  %v7367_v15 = vpack.c.bf16 %v10637_v17, %v10636_v36 }
 0x5cd   :  { %v9879_v50 = vpack.c.bf16 %v3913_v54, %v3906_v14  ;;  %v3982_v14 = vsub.f32 %v9843_v53, %v10388_v55  ;;  %v3976_v54 = vand.u32 4294901760, %v3975_v52 }
 0x5cf   :  { %v3983_v32 = vand.u32 4294901760, %v3982_v14 }
 0x5d1   :  { %v7301_v23 = vpack.c.bf16 %v3983_v32, %v3976_v54 }
 0x5e3   :  { %v5360_v49 = vpop.f32.mrb[18].mxu0 }
 0x5e4   :  { %v5361_v2 = vpop.f32.mrb[19].mxu0 }
 0x5e5   :  { %v5362_v3 = vadd.f32 %v5361_v2, %v5360_v49  ;;  %v3961_v2 = vsub.f32 %v9837_v25, %v10391_v9 }
 0x5e7   :  { %v9851_v43 = vadd.f32 %v5362_v3, %v3028_v22  ;;  %v3955_v22 = vand.u32 4294901760, %v3954_v8  ;;  %v3962_v33 = vand.u32 4294901760, %v3961_v2  ;;  %v3969_v3 = vand.u32 4294901760, %v3968_v40 }
 0x5e8   :  { %v10384_v8 = vand.u32 4294901760, %v9861_v7  ;;  %v7304_v2 = vpack.c.bf16 %v3997_v18, %v3990_v45  ;;  %v4003_v40 = vsub.f32 %v9859_v20, %v10385_v46  ;;  %v7316_v45 = vpack.c.bf16 %v9825_v41, %v9823_v37 }
 0x5e9   :  { %v9903_v49 = vpack.c.bf16 %v3955_v22, %v3948_v24  ;;  %v7298_v34 = vpack.c.bf16 %v3969_v3, %v3962_v33  ;;  %v7319_v18 = vpack.c.bf16 %v9829_v30, %v9827_v63  ;;  %v10640_v37 = vand.u32 4294901760, %v9841_v29 }
 0x5ea   :  { %v4010_v33 = vsub.f32 %v9861_v7, %v10384_v8  ;;  %v4004_v52 = vand.u32 4294901760, %v4003_v40  ;;  %v7328_v40 = vpack.c.bf16 %v9849_v60, %v9847_v31  ;;  %v10641_v41 = vand.u32 4294901760, %v9843_v53 }
 0x5eb   :  { %v10642_v63 = vand.u32 4294901760, %v9847_v31  ;;  %v10643_v30 = vand.u32 4294901760, %v9849_v60  ;;  %v4456_v60 = vld [vmem:[%s10209_s13 + $0x20] sm:$0xff] }
 0x5ec   :  { %v4011_v14 = vand.u32 4294901760, %v4010_v33 }
 0x5ed   :  { %v7376_v6 = vpack.c.bf16 %v10643_v30, %v10642_v63 }
 0x5ee   :  { %v7307_v32 = vpack.c.bf16 %v4011_v14, %v4004_v52  ;;  %v7331_v14 = vpack.c.bf16 %v9861_v7, %v9859_v20 }
 0x603   :  { %v5395_v24 = vpop.f32.mrb[20].mxu0 }
 0x604   :  { %v5396_v22 = vpop.f32.mrb[21].mxu0 }
 0x605   :  { %v5397_v3 = vadd.f32 %v5396_v22, %v5395_v24  ;;  %v7322_v24 = vpack.c.bf16 %v9839_v47, %v9837_v25  ;;  %v7325_v22 = vpack.c.bf16 %v9843_v53, %v9841_v29  ;;  %v4455_v29 = vld [vmem:[%s10209_s13 + $0x18] sm:$0xff] }
 0x607   :  { %v3398_v54 = vadd.f32 %v5397_v3, %v9851_v43 }
 0x623   :  { %v5430_v43 = vpop.f32.mrb[22].mxu0 }
 0x624   :  { %v5431_v33 = vpop.f32.mrb[23].mxu0 }
 0x625   :  { %v5432_v3 = vadd.f32 %v5431_v33, %v5430_v43 }
 0x627   :  { %v3506_v52 = vadd.f32 %v5432_v3, %v3398_v54 }
 0x629   :  { %v3674_v8 = vadd.f32 %v9744_v62, %v3506_v52  ;;  %v7358_v62 = vpack.c.bf16 %v3911_v4, %v3904_v5  ;;  %v10638_v5 = vand.u32 4294901760, %v9837_v25  ;;  %v10639_v4 = vand.u32 4294901760, %v9839_v47 }
 0x62a   :  { %v10644_v25 = vand.u32 4294901760, %v9859_v20  ;;  %v10645_v47 = vand.u32 4294901760, %v9861_v7  ;;  %v4483_v20 = vand.u32 4294901760, %v4456_v60 }
 0x62c   :  { %v7379_v44 = vpack.c.bf16 %v10645_v47, %v10644_v25 }
 0x643   :  { %v5500_v46 = vpop.f32.mrb[24].mxu0 }
 0x644   :  { %v5501_v1 = vpop.f32.mrb[25].mxu0 }
 0x645   :  { %v5502_v38 = vadd.f32 %v5501_v1, %v5500_v46  ;;  %v10106_v1 = vsub.f32 %v4456_v60, %v4483_v20 }
 0x647   :  { %v3778_v55 = vadd.f32 %v5502_v38, %v3674_v8 }
 0x649   :  { %v5032_v39 = vmul.f32 -1.442695, %v3778_v55 }
 0x64b   :  { %7546 = vpow2.f32 %v5032_v39 }
 0x655   :  { %v7547_v35 = vpop.eup %7546 }
 0x656   :  { %v3784_v9 = vadd.f32 1.0, %v7547_v35 }
 0x658   :  { %7548 = vrcp.f32 %v3784_v9  ;;  %v4459_v9 = vld [vmem:[%s10209_s13 + $0x38] sm:$0xff] }
 0x662   :  { %v7549_v27 = vpop.eup %7548 }
 0x663   :  { %v9953_v42 = vand.u32 4294901760, %v7549_v27 }
 0x665   :  { %v3892_v43 = vsub.f32 %v7549_v27, %v9953_v42 }
 0x667   :  { %v3893_v54 = vand.u32 4294901760, %v3892_v43 }
 0x669   :  { %v3894_v33 = vsub.f32 %v3892_v43, %v3893_v54 }
 0x66b   :  { %v3895_v3 = vand.u32 4294901760, %v3894_v33 }
 0x66d   :  { %6226 = vmatmul.mubr.f32.vlgmr.msra.gmra.mrb[14].mxu1 %v3895_v3 }
 0x66e   :  { %7287 = vmatpush3.bf16.msra.mxu1 %v9879_v50  ;;  %6260 = vmatprep.mubr.msk.f32.mxu1 %vm7627_vm0, %v10423_v28  ;;  %v7361_v50 = vpack.c.bf16 %v3925_v16, %v3918_v21  ;;  %v7370_v21 = vpack.c.bf16 %v10639_v4, %v10638_v5  ;;  %v7373_v16 = vpack.c.bf16 %v10641_v41, %v10640_v37 }
 0x66f   :  { %7288 = vmatprep.subr.bf16.mxu1 %v10635_v12 }
 0x672   :  { %7290 = vmatpush3.bf16.msra.mxu1 %v9883_v61 }
 0x673   :  { %7291 = vmatprep.subr.bf16.mxu1 %v10635_v12 }
 0x676   :  { %7293 = vmatpush3.bf16.msra.mxu1 %v9899_v51  ;;  %v4458_v51 = vld [vmem:[%s10209_s13 + $0x30] sm:$0xff] }
 0x677   :  { %7294 = vmatprep.subr.bf16.mxu1 %v10635_v12  ;;  %v4489_v35 = vand.u32 4294901760, %v4458_v51 }
 0x679   :  { %v10112_v8 = vsub.f32 %v4458_v51, %v4489_v35 }
 0x67a   :  { %7296 = vmatpush3.bf16.msra.mxu1 %v9903_v49  ;;  %v4492_v49 = vand.u32 4294901760, %v4459_v9 }
 0x67b   :  { %7297 = vmatprep.subr.bf16.mxu1 %v10635_v12  ;;  %v4598_v17 = vand.u32 4294901760, %v10112_v8 }
 0x67c   :  { %v10110_v46 = vpack.c.bf16 %v4492_v49, %v4489_v35 }
 0x67d   :  { %v4599_v4 = vsub.f32 %v10112_v8, %v4598_v17 }
 0x67e   :  { %7299 = vmatpush3.bf16.msra.mxu1 %v7298_v34 }
 0x67f   :  { %7300 = vmatprep.subr.bf16.mxu1 %v10635_v12  ;;  %v4600_v37 = vand.u32 4294901760, %v4599_v4 }
 0x682   :  { %7302 = vmatpush3.bf16.msra.mxu1 %v7301_v23 }
 0x683   :  { %7303 = vmatprep.subr.bf16.mxu1 %v10635_v12 }
 0x686   :  { %7305 = vmatpush3.bf16.msra.mxu1 %v7304_v2  ;;  %v10114_v2 = vsub.f32 %v4459_v9, %v4492_v49 }
 0x687   :  { %7306 = vmatprep.subr.bf16.mxu1 %v10635_v12 }
 0x688   :  { %v7439_v25 = vpack.c.bf16 %v10114_v2, %v10112_v8 }
 0x68a   :  { %7308 = vmatpush3.bf16.msra.mxu1 %v7307_v32 }
 0x68b   :  { %7309 = vmatprep.subr.bf16.mxu1 %v10635_v12 }
 0x68d   :  { %6261 = vmatmul.mubr.f32.vlgmr.msra.gmra.mrb[14].mxu1 %v9953_v42 }
 0x68e   :  { %7311 = vmatpush3.bf16.msra.mxu1 %v7310_v59  ;;  %6295 = vmatprep.mubr.msk.f32.mxu1 %vm7627_vm0, %v10423_v28 }
 0x68f   :  { %7312 = vmatprep.subr.bf16.mxu1 %v10635_v12 }
 0x692   :  { %7314 = vmatpush3.bf16.msra.mxu1 %v7313_v58 }
 0x693   :  { %7315 = vmatprep.subr.bf16.mxu1 %v10635_v12 }
 0x696   :  { %7317 = vmatpush3.bf16.msra.mxu1 %v7316_v45 }
 0x697   :  { %7318 = vmatprep.subr.bf16.mxu1 %v10635_v12 }
 0x69a   :  { %7320 = vmatpush3.bf16.msra.mxu1 %v7319_v18 }
 0x69b   :  { %7321 = vmatprep.subr.bf16.mxu1 %v10635_v12 }
 0x69e   :  { %7323 = vmatpush3.bf16.msra.mxu1 %v7322_v24 }
 0x69f   :  { %7324 = vmatprep.subr.bf16.mxu1 %v10635_v12 }
 0x6a2   :  { %7326 = vmatpush3.bf16.msra.mxu1 %v7325_v22 }
 0x6a3   :  { %7327 = vmatprep.subr.bf16.mxu1 %v10635_v12 }
 0x6a6   :  { %7329 = vmatpush3.bf16.msra.mxu1 %v7328_v40 }
 0x6a7   :  { %7330 = vmatprep.subr.bf16.mxu1 %v10635_v12 }
 0x6aa   :  { %7332 = vmatpush3.bf16.msra.mxu1 %v7331_v14 }
 0x6ab   :  { %7333 = vmatprep.subr.bf16.mxu1 %v10635_v12 }
 0x6ad   :  { %6296 = vmatmul.mubr.f32.vlgmr.msra.gmra.mrb[14].mxu1 %v3892_v43 }
 0x6ae   :  { %7335 = vmatpush3.bf16.msra.mxu1 %v9752_v56  ;;  %6330 = vmatprep.mubr.msk.f32.mxu1 %vm7627_vm0, %v10423_v28 }
 0x6af   :  { %7336 = vmatprep.subr.bf16.mxu1 %v10635_v12 }
 0x6b2   :  { %7338 = vmatpush3.bf16.msra.mxu1 %v9762_v57 }
 0x6b3   :  { %7339 = vmatprep.subr.bf16.mxu1 %v10635_v12 }
 0x6b6   :  { %7341 = vmatpush3.bf16.msra.mxu1 %v9772_v11 }
 0x6b7   :  { %7342 = vmatprep.subr.bf16.mxu1 %v10635_v12 }
 0x6ba   :  { %7344 = vmatpush3.bf16.msra.mxu1 %v9782_v19 }
 0x6bb   :  { %7345 = vmatprep.subr.bf16.mxu1 %v10635_v12 }
 0x6be   :  { %7347 = vmatpush3.bf16.msra.mxu1 %v9792_v0 }
 0x6bf   :  { %7348 = vmatprep.subr.bf16.mxu1 %v10635_v12 }
 0x6c2   :  { %7350 = vmatpush3.bf16.msra.mxu1 %v9805_v48 }
 0x6c3   :  { %7351 = vmatprep.subr.bf16.mxu1 %v10635_v12 }
 0x6c6   :  { %7353 = vmatpush3.bf16.msra.mxu1 %v9845_v13 }
 0x6c7   :  { %7354 = vmatprep.subr.bf16.mxu1 %v10635_v12 }
 0x6ca   :  { %7356 = vmatpush3.bf16.msra.mxu1 %v9857_v26 }
 0x6cb   :  { %7357 = vmatprep.subr.bf16.mxu1 %v10635_v12 }
 0x6cd   :  { %6331 = vmatmul.mubr.f32.vlgmr.msra.gmra.mrb[14].mxu1 %v3893_v54  ;;  %v4584_v54 = vand.u32 4294901760, %v10106_v1 }
 0x6ce   :  { %7359 = vmatpush3.bf16.msra.mxu1 %v7358_v62  ;;  %6365 = vmatprep.mubr.msk.f32.mxu1 %vm7627_vm0, %v10423_v28 }
 0x6cf   :  { %7360 = vmatprep.subr.bf16.mxu1 %v10635_v12  ;;  %v4585_v62 = vsub.f32 %v10106_v1, %v4584_v54 }
 0x6d2   :  { %7362 = vmatpush3.bf16.msra.mxu1 %v7361_v50 }
 0x6d3   :  { %7363 = vmatprep.subr.bf16.mxu1 %v10635_v12 }
 0x6d6   :  { %7365 = vmatpush3.bf16.msra.mxu1 %v7364_v10  ;;  %v4586_v10 = vand.u32 4294901760, %v4585_v62 }
 0x6d7   :  { %7366 = vmatprep.subr.bf16.mxu1 %v10635_v12 }
 0x6da   :  { %7368 = vmatpush3.bf16.msra.mxu1 %v7367_v15  ;;  %v4605_v15 = vand.u32 4294901760, %v10114_v2 }
 0x6db   :  { %7369 = vmatprep.subr.bf16.mxu1 %v10635_v12 }
 0x6de   :  { %7371 = vmatpush3.bf16.msra.mxu1 %v7370_v21  ;;  %v4606_v21 = vsub.f32 %v10114_v2, %v4605_v15 }
 0x6df   :  { %7372 = vmatprep.subr.bf16.mxu1 %v10635_v12 }
 0x6e0   :  { %v4607_v41 = vand.u32 4294901760, %v4606_v21 }
 0x6e2   :  { %7374 = vmatpush3.bf16.msra.mxu1 %v7373_v16  ;;  %v7427_v16 = vpack.c.bf16 %v4607_v41, %v4600_v37 }
 0x6e3   :  { %7375 = vmatprep.subr.bf16.mxu1 %v10635_v12 }
 0x6e6   :  { %7377 = vmatpush3.bf16.msra.mxu1 %v7376_v6 }
 0x6e7   :  { %7378 = vmatprep.subr.bf16.mxu1 %v10635_v12 }
 0x6ea   :  { %7380 = vmatpush3.bf16.msra.mxu1 %v7379_v44 }
 0x6eb   :  { %7381 = vmatprep.subr.bf16.mxu1 %v10635_v12 }
 0x6ed   :  { %6366 = vmatmul.mubr.f32.vlgmr.msra.gmra.mrb[14].mxu1 %v9953_v42 }
 0x6ee   :  { %7383 = vmatpush3.bf16.msra.mxu1 %v9752_v56  ;;  %6400 = vmatprep.mubr.msk.f32.mxu1 %vm7627_vm0, %v10423_v28  ;;  %v4452_v56 = vld [vmem:[%s10209_s13] sm:$0xff] }
 0x6ef   :  { %7384 = vmatprep.subr.bf16.mxu1 %v10635_v12 }
 0x6f2   :  { %7386 = vmatpush3.bf16.msra.mxu1 %v9762_v57  ;;  %v4453_v57 = vld [vmem:[%s10209_s13 + $0x8] sm:$0xff] }
 0x6f3   :  { %7387 = vmatprep.subr.bf16.mxu1 %v10635_v12 }
 0x6f6   :  { %7389 = vmatpush3.bf16.msra.mxu1 %v9772_v11  ;;  %v4471_v11 = vand.u32 4294901760, %v4452_v56 }
 0x6f7   :  { %7390 = vmatprep.subr.bf16.mxu1 %v10635_v12 }
 0x6f8   :  { %v10086_v61 = vsub.f32 %v4452_v56, %v4471_v11 }
 0x6fa   :  { %7392 = vmatpush3.bf16.msra.mxu1 %v9782_v19  ;;  %v4474_v19 = vand.u32 4294901760, %v4453_v57  ;;  %v4556_v39 = vand.u32 4294901760, %v10086_v61 }
 0x6fb   :  { %7393 = vmatprep.subr.bf16.mxu1 %v10635_v12 }
 0x6fc   :  { %v4557_v32 = vsub.f32 %v10086_v61, %v4556_v39 }
 0x6fe   :  { %7395 = vmatpush3.bf16.msra.mxu1 %v9792_v0  ;;  %v10066_v0 = vpack.c.bf16 %v4474_v19, %v4471_v11  ;;  %v4558_v58 = vand.u32 4294901760, %v4557_v32  ;;  %v5033_v11 = vld [vmem:[%s10208_s12] ss:$0 sm:$0xff] }
 0x6ff   :  { %7396 = vmatprep.subr.bf16.mxu1 %v10635_v12 }
 0x700   :  { %7407 = vmatpush3.bf16.msra.mxu0 %v10066_v0 }
 0x701   :  { %7408 = vmatprep.subr.bf16.mxu0 %v10635_v12 }
 0x702   :  { %7398 = vmatpush3.bf16.msra.mxu1 %v9805_v48  ;;  %v4454_v48 = vld [vmem:[%s10209_s13 + $0x10] sm:$0xff] }
 0x703   :  { %7399 = vmatprep.subr.bf16.mxu1 %v10635_v12  ;;  %v4477_v53 = vand.u32 4294901760, %v4454_v48 }
 0x705   :  { %v10102_v34 = vsub.f32 %v4454_v48, %v4477_v53 }
 0x706   :  { %7401 = vmatpush3.bf16.msra.mxu1 %v9845_v13  ;;  %v4480_v13 = vand.u32 4294901760, %v4455_v29 }
 0x707   :  { %7402 = vmatprep.subr.bf16.mxu1 %v10635_v12  ;;  %v4570_v45 = vand.u32 4294901760, %v10102_v34 }
 0x708   :  { %v10076_v31 = vpack.c.bf16 %v4480_v13, %v4477_v53  ;;  %v10104_v38 = vsub.f32 %v4455_v29, %v4480_v13 }
 0x709   :  { %v4571_v22 = vsub.f32 %v10102_v34, %v4570_v45 }
 0x70a   :  { %7404 = vmatpush3.bf16.msra.mxu1 %v9857_v26  ;;  %v4457_v26 = vld [vmem:[%s10209_s13 + $0x28] sm:$0xff]  ;;  %7410 = vmatpush3.bf16.msra.mxu0 %v10076_v31  ;;  %v4577_v18 = vand.u32 4294901760, %v10104_v38  ;;  %v7433_v30 = vpack.c.bf16 %v10104_v38, %v10102_v34 }
 0x70b   :  { %v4486_v7 = vand.u32 4294901760, %v4457_v26  ;;  %7411 = vmatprep.subr.bf16.mxu0 %v10635_v12  ;;  %v4572_v14 = vand.u32 4294901760, %v4571_v22 }
 0x70c   :  { %v4578_v40 = vsub.f32 %v10104_v38, %v4577_v18  ;;  %v7457_v44 = vpack.c.bf16 %v4577_v18, %v4570_v45 }
 0x70d   :  { %6401 = vmatmul.mubr.f32.vlgmr.msra.gmra.mrb[14].mxu1 %v9953_v42  ;;  %v10088_v42 = vsub.f32 %v4453_v57, %v4474_v19  ;;  %v10090_v27 = vpack.c.bf16 %v4486_v7, %v4483_v20  ;;  %v10108_v23 = vsub.f32 %v4457_v26, %v4486_v7  ;;  %v7463_v57 = vpack.c.bf16 %v4605_v15, %v4598_v17 }
 0x70e   :  { %v4579_v43 = vand.u32 4294901760, %v4578_v40 }
 0x70f   :  { %7413 = vmatpush3.bf16.msra.mxu0 %v10090_v27  ;;  %v4563_v55 = vand.u32 4294901760, %v10088_v42  ;;  %v4591_v33 = vand.u32 4294901760, %v10108_v23  ;;  %v7430_v63 = vpack.c.bf16 %v10088_v42, %v10086_v61  ;;  %v7436_v6 = vpack.c.bf16 %v10108_v23, %v10106_v1 }
 0x710   :  { %7414 = vmatprep.subr.bf16.mxu0 %v10635_v12  ;;  %v7421_v3 = vpack.c.bf16 %v4579_v43, %v4572_v14 }
 0x711   :  { %v4564_v59 = vsub.f32 %v10088_v42, %v4563_v55  ;;  %v4592_v50 = vsub.f32 %v10108_v23, %v4591_v33  ;;  %v7454_v47 = vpack.c.bf16 %v4563_v55, %v4556_v39  ;;  %v7460_v56 = vpack.c.bf16 %v4591_v33, %v4584_v54 }
 0x713   :  { %7416 = vmatpush3.bf16.msra.mxu0 %v10110_v46  ;;  %v4565_v24 = vand.u32 4294901760, %v4564_v59  ;;  %v4593_v36 = vand.u32 4294901760, %v4592_v50 }
 0x714   :  { %7417 = vmatprep.subr.bf16.mxu0 %v10635_v12 }
 0x715   :  { %v7418_v52 = vpack.c.bf16 %v4565_v24, %v4558_v58  ;;  %v7424_v5 = vpack.c.bf16 %v4593_v36, %v4586_v10 }
 0x7e0   :  { %v4447_v19 = vpop.f32.mrb[14].mxu1 }
 0x7e1   :  { %v7480_v48 = vadd.f32 %v5033_v11, %v4447_v19  ;;  %v6402_v29 = vpop.f32.mrb[15].mxu1 }
 0x7e3   :  { %v4451_v53 = vmax.f32 %v7480_v48, 0.0 }
 0x7e5   :  { %v4468_v13 = vsel %vm1422_vm1, %v4451_v53, 0 }
 0x7e6   :  { %v4543_v60 = vand.u32 4294901760, %v4468_v13 }
 0x7e8   :  { %v4544_v26 = vsub.f32 %v4468_v13, %v4543_v60 }
 0x7ea   :  { %v4545_v20 = vand.u32 4294901760, %v4544_v26 }
 0x7ec   :  { %v4546_v7 = vsub.f32 %v4544_v26, %v4545_v20 }
 0x7ee   :  { %v4547_v61 = vand.u32 4294901760, %v4546_v7 }
 0x7f0   :  { %6420 = vmatmul.mubr.f32.vlgmr.msra.gmra.mrb[26].mxu0 %v4547_v61 }
 0x7f1   :  { %7419 = vmatpush3.bf16.msra.mxu0 %v7418_v52  ;;  %6438 = vmatprep.mubr.msk.f32.mxu0 %vm7627_vm0, %v10423_v28 }
 0x7f2   :  { %7420 = vmatprep.subr.bf16.mxu0 %v10635_v12 }
 0x7f5   :  { %7422 = vmatpush3.bf16.msra.mxu0 %v7421_v3 }
 0x7f6   :  { %7423 = vmatprep.subr.bf16.mxu0 %v10635_v12 }
 0x7f9   :  { %7425 = vmatpush3.bf16.msra.mxu0 %v7424_v5 }
 0x7fa   :  { %7426 = vmatprep.subr.bf16.mxu0 %v10635_v12 }
 0x7fd   :  { %7428 = vmatpush3.bf16.msra.mxu0 %v7427_v16 }
 0x7fe   :  { %7429 = vmatprep.subr.bf16.mxu0 %v10635_v12 }
 0x800   :  { %6439 = vmatmul.mubr.f32.vlgmr.msra.gmra.mrb[26].mxu0 %v4543_v60 }
 0x801   :  { %7431 = vmatpush3.bf16.msra.mxu0 %v7430_v63  ;;  %6457 = vmatprep.mubr.msk.f32.mxu0 %vm7627_vm0, %v10423_v28 }
 0x802   :  { %7432 = vmatprep.subr.bf16.mxu0 %v10635_v12 }
 0x805   :  { %7434 = vmatpush3.bf16.msra.mxu0 %v7433_v30 }
 0x806   :  { %7435 = vmatprep.subr.bf16.mxu0 %v10635_v12 }
 0x809   :  { %7437 = vmatpush3.bf16.msra.mxu0 %v7436_v6 }
 0x80a   :  { %7438 = vmatprep.subr.bf16.mxu0 %v10635_v12 }
 0x80d   :  { %7440 = vmatpush3.bf16.msra.mxu0 %v7439_v25 }
 0x80e   :  { %7441 = vmatprep.subr.bf16.mxu0 %v10635_v12 }
 0x810   :  { %6458 = vmatmul.mubr.f32.vlgmr.msra.gmra.mrb[26].mxu0 %v4544_v26 }
 0x811   :  { %7443 = vmatpush3.bf16.msra.mxu0 %v10066_v0  ;;  %6476 = vmatprep.mubr.msk.f32.mxu0 %vm7627_vm0, %v10423_v28 }
 0x812   :  { %7444 = vmatprep.subr.bf16.mxu0 %v10635_v12 }
 0x815   :  { %7446 = vmatpush3.bf16.msra.mxu0 %v10076_v31 }
 0x816   :  { %7447 = vmatprep.subr.bf16.mxu0 %v10635_v12 }
 0x819   :  { %7449 = vmatpush3.bf16.msra.mxu0 %v10090_v27 }
 0x81a   :  { %7450 = vmatprep.subr.bf16.mxu0 %v10635_v12 }
 0x81d   :  { %7452 = vmatpush3.bf16.msra.mxu0 %v10110_v46 }
 0x81e   :  { %7453 = vmatprep.subr.bf16.mxu0 %v10635_v12 }
 0x820   :  { %6477 = vmatmul.mubr.f32.vlgmr.msra.gmra.mrb[26].mxu0 %v4545_v20 }
 0x821   :  { %7455 = vmatpush3.bf16.msra.mxu0 %v7454_v47  ;;  %6495 = vmatprep.mubr.msk.f32.mxu0 %vm7627_vm0, %v10423_v28 }
 0x822   :  { %7456 = vmatprep.subr.bf16.mxu0 %v10635_v12 }
 0x825   :  { %7458 = vmatpush3.bf16.msra.mxu0 %v7457_v44 }
 0x826   :  { %7459 = vmatprep.subr.bf16.mxu0 %v10635_v12 }
 0x829   :  { %7461 = vmatpush3.bf16.msra.mxu0 %v7460_v56 }
 0x82a   :  { %7462 = vmatprep.subr.bf16.mxu0 %v10635_v12 }
 0x82d   :  { %7464 = vmatpush3.bf16.msra.mxu0 %v7463_v57 }
 0x82e   :  { %7465 = vmatprep.subr.bf16.mxu0 %v10635_v12 }
 0x830   :  { %6496 = vmatmul.mubr.f32.vlgmr.msra.gmra.mrb[26].mxu0 %v4543_v60 }
 0x831   :  { %7467 = vmatpush3.bf16.msra.mxu0 %v10066_v0  ;;  %6514 = vmatprep.mubr.msk.f32.mxu0 %vm7627_vm0, %v10423_v28  ;;  %v5034_v0 = vld [vmem:[%s10210_s14] ss:$0 sm:$0xff] }
 0x832   :  { %7468 = vmatprep.subr.bf16.mxu0 %v10635_v12 }
 0x835   :  { %7470 = vmatpush3.bf16.msra.mxu0 %v10076_v31 }
 0x836   :  { %7471 = vmatprep.subr.bf16.mxu0 %v10635_v12 }
 0x839   :  { %7473 = vmatpush3.bf16.msra.mxu0 %v10090_v27 }
 0x83a   :  { %7474 = vmatprep.subr.bf16.mxu0 %v10635_v12 }
 0x83d   :  { %7476 = vmatpush3.bf16.msra.mxu0 %v10110_v46 }
 0x840   :  { %6515 = vmatmul.mubr.f32.vlgmr.msra.gmra.mrb[26].mxu0 %v4543_v60 }
 0x913   :  { %v5003_v28 = vpop.f32.mrb[26].mxu0 }
 0x914   :  { %v7481_v42 = vadd.f32 %v5034_v0, %v5003_v28  ;;  %v6516_v51 = vpop.f32.mrb[27].mxu0 }
 0x916   :  { %5008 = vst.msk [vmem:[#allocation7] sm:$0xff] %vm5007_vm2, %v7481_v42 }
 0x917   :  { %7605 = shalt.err (!%p7602_p6)
}
 0x918   :  { %s7606_s10 = scalar_lea.hbm %s10211_s15, 128 }
 0x919   :  { %p7607_p7 = scmp.ne.s32.totalorder %s10211_s15, %s7606_s10  ;;  %p7610_p8 = scmp.lt.u32.totalorder %s7606_s10, %s10211_s15 }
 0x91b   :  { %p7612_p9 = pnand %p7610_p8, %p7607_p7 }
 0x91d   :  { %7615 = shalt.err (!%p7612_p9)
}
 0x91e   :  { %5018 = dma.vmem_to_hbm [thread:$0]  %s5016_s26, 128, %s10211_s15, [#allocation4]  }
 0x91f   :  { %7620 = dma.done.wait [#allocation4], 128  }
 0x920   :  { %7621 = vsyncadd [#allocation4], 4294967168 }
 0x921   :  { %5022 = vsyncpa [#allocation3], 1 }
 0x922   :  { %5023 = vsyncpa [#allocation6], 1 }
 0x923   :  { %5024 = vsyncpa [#allocation4], 1 }

</bundles_post_ra>
